<compile_context>
chip_gen: v7x
topology: tpu7x:2x2x1
jax: 0.10.0
libtpu: 0.0.40
codegen_flags: <defaults>
</compile_context>

<pallas_src>
import jax
import jax.numpy as jnp
from jax.experimental import pallas as pl
from jax.experimental.pallas import tpu as pltpu

# --- hyperparameters from the PyTorch source ---
n_embd = 384
block_size = 8
n_head = 6
head_size = n_embd // n_head          # 64
NEG_INF = -1e30


# ---------------------------------------------------------------------------
# Pallas kernel: Bt batch elements (M = Bt*T flattened rows) per grid step
# ---------------------------------------------------------------------------
def mha_kernel(x_ref, wqkv_ref, projw_ref, projb_ref, bias_ref, o_ref):
    """Multi-head causal self-attention.

    x_ref:     (M, C)      activations, M = Bt*T (batch*seq flattened), f32
    wqkv_ref:  (C, 3C)     packed Q|K|V weights, bf16; D**-0.5 folded into Q cols
    projw_ref: (H, D, C)   output-projection weight, bf16 (head-major)
    projb_ref: (1, C)      output-projection bias, f32
    bias_ref:  (M, M)      additive mask: 0 where attend allowed, -1e30 elsewhere
                           (block-diagonal causal -> also blocks cross-batch attn)
    o_ref:     (M, C)
    """
    M, C = x_ref.shape
    H, D = n_head, head_size

    # --- packed QKV projection: one wide bf16 matmul, f32 accumulation ---
    x2d = x_ref[...].astype(jnp.bfloat16)                                   # (M, C)
    qkv = jnp.dot(x2d, wqkv_ref[...], preferred_element_type=jnp.float32)   # (M, 3C)

    # Head split (D = 64 is a half-lane split; kept in f32 — no extra casts).
    q = qkv[:, 0 * C:1 * C].reshape(M, H, D)
    k = qkv[:, 1 * C:2 * C].reshape(M, H, D)
    v = qkv[:, 2 * C:3 * C].reshape(M, H, D)

    # Head-batched scores; scale already folded into W_q.
    s = jnp.einsum('qhd,khd->hqk', q, k,
                   preferred_element_type=jnp.float32)                      # (H, M, M)
    s = s + bias_ref[...][None, :, :]                                       # causal + batch-block mask

    # Softmax in f32; reciprocal on the EUP slot (approx, ~free).
    s = s - jnp.max(s, axis=-1, keepdims=True)
    p = jnp.exp(s)
    p = p * pl.reciprocal(jnp.sum(p, axis=-1, keepdims=True), approx=True)
    # nn.Dropout(0.2) on p: identity at inference.

    # Head-major weighted values: (H, M, D) — no merge back to (M, C) needed.
    att = jnp.einsum('hqk,khd->hqd', p, v,
                     preferred_element_type=jnp.float32)
    att_b = att.astype(jnp.bfloat16)

    # Output projection accumulated per head (static unroll, H=6):
    # equivalent to concat(heads) @ W_proj, without the lane-merge relayout.
    out = jnp.dot(att_b[0], projw_ref[0], preferred_element_type=jnp.float32)
    for h in range(1, H):
        out = out + jnp.dot(att_b[h], projw_ref[h],
                            preferred_element_type=jnp.float32)
    out = out + projb_ref[...]                                              # (M, C)
    # nn.Dropout(0.2) on out: identity at inference.
    o_ref[...] = out.astype(o_ref.dtype)


# ---------------------------------------------------------------------------
# Wrapper
# ---------------------------------------------------------------------------
def multi_head_attention(x, wqkv, proj_w_hdc, proj_b, batch_tile=None):
    """x: (B, T, C) f32; wqkv: (C, 3C) bf16 (Q cols pre-scaled by D**-0.5);
    proj_w_hdc: (H, D, C) bf16; proj_b: (1, C) f32."""
    B, T, C = x.shape
    H, D = n_head, head_size
    assert C == n_embd and H * D == C

    if batch_tile is None:
        # Largest tile that divides B while keeping >=2 grid steps (v7x has 2 TCs)
        # and M = Bt*T <= 128 MXU rows.  On single-TC v5e/v6e, batch_tile=B is best.
        batch_tile = min(max(B // 2, 1), max(128 // T, 1))
        while B % batch_tile:
            batch_tile -= 1
    Bt = batch_tile
    M = Bt * T
    assert M % 8 == 0, "Bt*T must be a multiple of 8 (sublane tiling)"
    grid = (B // Bt,)

    # Additive mask over the flattened Bt*T rows: causal within a batch element,
    # -1e30 across batch elements.  Tiny resident input (built once at trace time).
    idx = jnp.arange(M)
    b_id, t_id = idx // T, idx % T
    allowed = (b_id[:, None] == b_id[None, :]) & (t_id[None, :] <= t_id[:, None])
    attn_bias = jnp.where(allowed, 0.0, NEG_INF).astype(jnp.float32)        # (M, M)

    x2d = x.reshape(B * T, C)

    flops = (2 * B * T * C * (3 * C)        # qkv matmul
             + 2 * B * H * T * T * D        # scores
             + 2 * B * H * T * T * D        # p @ v
             + 2 * B * T * C * C)           # output projection
    bytes_accessed = (x.size * x.dtype.itemsize
                      + wqkv.size * wqkv.dtype.itemsize
                      + proj_w_hdc.size * proj_w_hdc.dtype.itemsize
                      + proj_b.size * proj_b.dtype.itemsize
                      + attn_bias.size * attn_bias.dtype.itemsize
                      + x.size * x.dtype.itemsize)

    resident = dict(pipeline_mode=pl.Buffered(1))   # constant index_map -> single buffer

    out2d = pl.pallas_call(
        mha_kernel,
        out_shape=jax.ShapeDtypeStruct((B * T, C), x.dtype),
        grid_spec=pltpu.PrefetchScalarGridSpec(
            num_scalar_prefetch=0,
            grid=grid,
            in_specs=[
                pl.BlockSpec((M, C), lambda i: (i, 0)),                     # x rows
                pl.BlockSpec((C, 3 * C), lambda i: (0, 0), **resident),     # wqkv
                pl.BlockSpec((H, D, C), lambda i: (0, 0, 0), **resident),   # proj_w
                pl.BlockSpec((1, C), lambda i: (0, 0), **resident),         # proj_b
                pl.BlockSpec((M, M), lambda i: (0, 0), **resident),         # mask
            ],
            out_specs=pl.BlockSpec((M, C), lambda i: (i, 0)),
        ),
        compiler_params=pltpu.CompilerParams(
            dimension_semantics=("parallel",),       # batch-tile steps split across TCs (v7x)
            vmem_limit_bytes=8 * 1024 * 1024,        # actual footprint ~1.5 MiB
        ),
        cost_estimate=pl.CostEstimate(
            flops=flops,
            transcendentals=B * H * T * T * Bt,
            bytes_accessed=bytes_accessed,
        ),
    )(x2d, wqkv, proj_w_hdc, proj_b, attn_bias)

    return out2d.reshape(B, T, C)


# ---------------------------------------------------------------------------
# Pure-JAX reference (f32 math on the same bf16-rounded weights)
# ---------------------------------------------------------------------------
def mha_reference(x, wqkv_bf16, proj_w_hdc_bf16, proj_b):
    B, T, C = x.shape
    H, D = n_head, head_size
    xb = x.astype(jnp.bfloat16).astype(jnp.float32)
    w = wqkv_bf16.astype(jnp.float32)                 # Q cols already carry D**-0.5
    qkv = xb @ w                                      # (B, T, 3C)
    q = qkv[..., 0 * C:1 * C].reshape(B, T, H, D)
    k = qkv[..., 1 * C:2 * C].reshape(B, T, H, D)
    v = qkv[..., 2 * C:3 * C].reshape(B, T, H, D)
    s = jnp.einsum('bqhd,bkhd->bhqk', q, k)
    causal = jnp.tril(jnp.ones((T, T), bool))
    s = jnp.where(causal[None, None], s, NEG_INF)
    p = jax.nn.softmax(s, axis=-1)
    att = jnp.einsum('bhqk,bkhd->bqhd', p, v).reshape(B, T, C)
    pw = proj_w_hdc_bf16.astype(jnp.float32).reshape(C, C)
    return att @ pw + proj_b


if __name__ == "__main__":
    B, T, C = 8, block_size, n_embd          # (8, 8, 384): batch-tiled, grid=(2,)
    H, D = n_head, head_size

    key = jax.random.PRNGKey(0)
    kx, kq, kk, kv, kw, kb = jax.random.split(key, 6)
    x = jax.random.normal(kx, (B, T, C), jnp.float32)

    scale = 0.02
    # Weights stored as [in_features, out_features] so y = x @ W
    # (transpose of torch.nn.Linear.weight); per-head Q/K/V concatenated along
    # the output dim, matching torch.cat([h(x) for h in heads], dim=-1).
    wq = jax.random.normal(kq, (C, C), jnp.float32) * scale
    wk = jax.random.normal(kk, (C, C), jnp.float32) * scale
    wv = jax.random.normal(kv, (C, C), jnp.float32) * scale
    proj_w = jax.random.normal(kw, (C, C), jnp.float32) * scale
    proj_b = jax.random.normal(kb, (1, C), jnp.float32) * scale

    # Kernel weights: bf16, D**-0.5 folded into the Q columns, proj head-major.
    wqkv_bf16 = jnp.concatenate([wq * (D ** -0.5), wk, wv], axis=1).astype(jnp.bfloat16)
    proj_w_hdc = proj_w.astype(jnp.bfloat16).reshape(H, D, C)

    out = multi_head_attention(x, wqkv_bf16, proj_w_hdc, proj_b)
    out = jax.block_until_ready(out)
    assert out.shape == (B, T, C)
    assert bool(jnp.all(jnp.isfinite(out)))

    ref = mha_reference(x, wqkv_bf16, proj_w_hdc, proj_b)
    max_err = float(jnp.max(jnp.abs(out - ref)))
    assert max_err < 0.05, f"max abs error vs reference: {max_err}"

    # TODO(synk): nn.Dropout(0.2) (train-mode) has no effect at inference and is omitted.
    print("KERNEL_OK")
</pallas_src>

<mosaic_0001>
module attributes {stable_mosaic.version = 11 : i64} {
  func.func @mha_kernel(%arg0: i32, %arg1: memref<32x384xf32, #tpu.memory_space<vmem>>, %arg2: memref<384x1152xbf16, #tpu.memory_space<vmem>>, %arg3: memref<6x64x384xbf16, #tpu.memory_space<vmem>>, %arg4: memref<1x384xf32, #tpu.memory_space<vmem>>, %arg5: memref<32x32xf32, #tpu.memory_space<vmem>>, %arg6: memref<32x384xf32, #tpu.memory_space<vmem>>) attributes {dimension_semantics = [#tpu.dimension_semantics<parallel>], iteration_bounds = array<i64: 2>, scalar_prefetch = 0 : i64, scratch_operands = 0 : i64, tpu.core_type = #tpu.core_type<tc>, window_params = [{transform_indices = @transform_0, window_bounds = array<i64: 32, 384>}, {pipeline_mode = #tpu.pipeline_mode<synchronous>, transform_indices = @transform_1, window_bounds = array<i64: 384, 1152>}, {pipeline_mode = #tpu.pipeline_mode<synchronous>, transform_indices = @transform_2, window_bounds = array<i64: 6, 64, 384>}, {pipeline_mode = #tpu.pipeline_mode<synchronous>, transform_indices = @transform_3, window_bounds = array<i64: 1, 384>}, {pipeline_mode = #tpu.pipeline_mode<synchronous>, transform_indices = @transform_4, window_bounds = array<i64: 32, 32>}, {transform_indices = @transform_5, window_bounds = array<i64: 32, 384>}]} {
    %c0 = arith.constant 0 : index
    %c0_0 = arith.constant 0 : index
    %0 = vector.load %arg1[%c0, %c0_0] : memref<32x384xf32, #tpu.memory_space<vmem>>, vector<32x384xf32>
    %1 = arith.truncf %0 : vector<32x384xf32> to vector<32x384xbf16>
    %c0_1 = arith.constant 0 : index
    %c0_2 = arith.constant 0 : index
    %2 = vector.load %arg2[%c0_1, %c0_2] : memref<384x1152xbf16, #tpu.memory_space<vmem>>, vector<384x1152xbf16>
    %cst = arith.constant dense<0.000000e+00> : vector<32x1152xf32>
    %3 = tpu.matmul %1, %2, %cst {dimension_numbers = #tpu.dot_dimension_numbers<[1], [0], [0], [1], [0, 0, 1, 1], [], []>} : vector<32x384xbf16>, vector<384x1152xbf16>, vector<32x1152xf32> -> vector<32x1152xf32>
    %4 = vector.extract_strided_slice %3 {offsets = [0, 0], sizes = [32, 384], strides = [1, 1]} : vector<32x1152xf32> to vector<32x384xf32>
    %5 = vector.shape_cast %4 : vector<32x384xf32> to vector<32x6x64xf32>
    %6 = vector.extract_strided_slice %3 {offsets = [0, 384], sizes = [32, 384], strides = [1, 1]} : vector<32x1152xf32> to vector<32x384xf32>
    %7 = vector.shape_cast %6 : vector<32x384xf32> to vector<32x6x64xf32>
    %8 = vector.extract_strided_slice %3 {offsets = [0, 768], sizes = [32, 384], strides = [1, 1]} : vector<32x1152xf32> to vector<32x384xf32>
    %9 = vector.shape_cast %8 : vector<32x384xf32> to vector<32x6x64xf32>
    "tpu.trace_start"() <{level = 10 : i32, message = "qhd,khd->hqk"}> : () -> ()
    %cst_3 = arith.constant dense<0.000000e+00> : vector<6x32x32xf32>
    %10 = tpu.matmul %5, %7, %cst_3 {dimension_numbers = #tpu.dot_dimension_numbers<[2], [2], [0], [0], [0, 1, 0, 0, 1, 0], [1], [1]>} : vector<32x6x64xf32>, vector<32x6x64xf32>, vector<6x32x32xf32> -> vector<6x32x32xf32>
    "tpu.trace_stop"() : () -> ()
    %c0_4 = arith.constant 0 : index
    %c0_5 = arith.constant 0 : index
    %11 = vector.load %arg5[%c0_4, %c0_5] : memref<32x32xf32, #tpu.memory_space<vmem>>, vector<32x32xf32>
    %12 = vector.shape_cast %11 : vector<32x32xf32> to vector<1x32x32xf32>
    %13 = vector.broadcast %12 : vector<1x32x32xf32> to vector<6x32x32xf32>
    %14 = arith.addf %10, %13 : vector<6x32x32xf32>
    %cst_6 = arith.constant dense<0xFF800000> : vector<6x32xf32>
    %15 = vector.multi_reduction <maximumf>, %14, %cst_6 [2] : vector<6x32x32xf32> to vector<6x32xf32>
    %16 = vector.shape_cast %15 : vector<6x32xf32> to vector<6x32x1xf32>
    %17 = vector.broadcast %16 : vector<6x32x1xf32> to vector<6x32x32xf32>
    %18 = arith.subf %14, %17 : vector<6x32x32xf32>
    %19 = math.exp %18 : vector<6x32x32xf32>
    %cst_7 = arith.constant dense<0.000000e+00> : vector<6x32xf32>
    %20 = vector.multi_reduction <add>, %19, %cst_7 [2] : vector<6x32x32xf32> to vector<6x32xf32>
    %21 = vector.shape_cast %20 : vector<6x32xf32> to vector<6x32x1xf32>
    %22 = tpu.reciprocal %21 {approx = true} : vector<6x32x1xf32> -> vector<6x32x1xf32>
    %23 = vector.broadcast %22 : vector<6x32x1xf32> to vector<6x32x32xf32>
    %24 = arith.mulf %19, %23 : vector<6x32x32xf32>
    "tpu.trace_start"() <{level = 10 : i32, message = "hqk,khd->hqd"}> : () -> ()
    %cst_8 = arith.constant dense<0.000000e+00> : vector<6x32x64xf32>
    %25 = tpu.matmul %24, %9, %cst_8 {dimension_numbers = #tpu.dot_dimension_numbers<[2], [0], [1], [2], [0, 0, 0, 1, 1, 2], [0], [1]>} : vector<6x32x32xf32>, vector<32x6x64xf32>, vector<6x32x64xf32> -> vector<6x32x64xf32>
    "tpu.trace_stop"() : () -> ()
    %26 = arith.truncf %25 : vector<6x32x64xf32> to vector<6x32x64xbf16>
    %27 = vector.extract_strided_slice %26 {offsets = [0, 0, 0], sizes = [1, 32, 64], strides = [1, 1, 1]} : vector<6x32x64xbf16> to vector<1x32x64xbf16>
    %28 = vector.shape_cast %27 : vector<1x32x64xbf16> to vector<32x64xbf16>
    %c0_9 = arith.constant 0 : index
    %c0_10 = arith.constant 0 : index
    %c0_11 = arith.constant 0 : index
    %29 = vector.load %arg3[%c0_9, %c0_10, %c0_11] : memref<6x64x384xbf16, #tpu.memory_space<vmem>>, vector<1x64x384xbf16>
    %30 = vector.shape_cast %29 : vector<1x64x384xbf16> to vector<64x384xbf16>
    %cst_12 = arith.constant dense<0.000000e+00> : vector<32x384xf32>
    %31 = tpu.matmul %28, %30, %cst_12 {dimension_numbers = #tpu.dot_dimension_numbers<[1], [0], [0], [1], [0, 0, 1, 1], [], []>} : vector<32x64xbf16>, vector<64x384xbf16>, vector<32x384xf32> -> vector<32x384xf32>
    %32 = vector.extract_strided_slice %26 {offsets = [1, 0, 0], sizes = [1, 32, 64], strides = [1, 1, 1]} : vector<6x32x64xbf16> to vector<1x32x64xbf16>
    %33 = vector.shape_cast %32 : vector<1x32x64xbf16> to vector<32x64xbf16>
    %c1 = arith.constant 1 : index
    %c0_13 = arith.constant 0 : index
    %c0_14 = arith.constant 0 : index
    %34 = vector.load %arg3[%c1, %c0_13, %c0_14] : memref<6x64x384xbf16, #tpu.memory_space<vmem>>, vector<1x64x384xbf16>
    %35 = vector.shape_cast %34 : vector<1x64x384xbf16> to vector<64x384xbf16>
    %cst_15 = arith.constant dense<0.000000e+00> : vector<32x384xf32>
    %36 = tpu.matmul %33, %35, %cst_15 {dimension_numbers = #tpu.dot_dimension_numbers<[1], [0], [0], [1], [0, 0, 1, 1], [], []>} : vector<32x64xbf16>, vector<64x384xbf16>, vector<32x384xf32> -> vector<32x384xf32>
    %37 = arith.addf %31, %36 : vector<32x384xf32>
    %38 = vector.extract_strided_slice %26 {offsets = [2, 0, 0], sizes = [1, 32, 64], strides = [1, 1, 1]} : vector<6x32x64xbf16> to vector<1x32x64xbf16>
    %39 = vector.shape_cast %38 : vector<1x32x64xbf16> to vector<32x64xbf16>
    %c2 = arith.constant 2 : index
    %c0_16 = arith.constant 0 : index
    %c0_17 = arith.constant 0 : index
    %40 = vector.load %arg3[%c2, %c0_16, %c0_17] : memref<6x64x384xbf16, #tpu.memory_space<vmem>>, vector<1x64x384xbf16>
    %41 = vector.shape_cast %40 : vector<1x64x384xbf16> to vector<64x384xbf16>
    %cst_18 = arith.constant dense<0.000000e+00> : vector<32x384xf32>
    %42 = tpu.matmul %39, %41, %cst_18 {dimension_numbers = #tpu.dot_dimension_numbers<[1], [0], [0], [1], [0, 0, 1, 1], [], []>} : vector<32x64xbf16>, vector<64x384xbf16>, vector<32x384xf32> -> vector<32x384xf32>
    %43 = arith.addf %37, %42 : vector<32x384xf32>
    %44 = vector.extract_strided_slice %26 {offsets = [3, 0, 0], sizes = [1, 32, 64], strides = [1, 1, 1]} : vector<6x32x64xbf16> to vector<1x32x64xbf16>
    %45 = vector.shape_cast %44 : vector<1x32x64xbf16> to vector<32x64xbf16>
    %c3 = arith.constant 3 : index
    %c0_19 = arith.constant 0 : index
    %c0_20 = arith.constant 0 : index
    %46 = vector.load %arg3[%c3, %c0_19, %c0_20] : memref<6x64x384xbf16, #tpu.memory_space<vmem>>, vector<1x64x384xbf16>
    %47 = vector.shape_cast %46 : vector<1x64x384xbf16> to vector<64x384xbf16>
    %cst_21 = arith.constant dense<0.000000e+00> : vector<32x384xf32>
    %48 = tpu.matmul %45, %47, %cst_21 {dimension_numbers = #tpu.dot_dimension_numbers<[1], [0], [0], [1], [0, 0, 1, 1], [], []>} : vector<32x64xbf16>, vector<64x384xbf16>, vector<32x384xf32> -> vector<32x384xf32>
    %49 = arith.addf %43, %48 : vector<32x384xf32>
    %50 = vector.extract_strided_slice %26 {offsets = [4, 0, 0], sizes = [1, 32, 64], strides = [1, 1, 1]} : vector<6x32x64xbf16> to vector<1x32x64xbf16>
    %51 = vector.shape_cast %50 : vector<1x32x64xbf16> to vector<32x64xbf16>
    %c4 = arith.constant 4 : index
    %c0_22 = arith.constant 0 : index
    %c0_23 = arith.constant 0 : index
    %52 = vector.load %arg3[%c4, %c0_22, %c0_23] : memref<6x64x384xbf16, #tpu.memory_space<vmem>>, vector<1x64x384xbf16>
    %53 = vector.shape_cast %52 : vector<1x64x384xbf16> to vector<64x384xbf16>
    %cst_24 = arith.constant dense<0.000000e+00> : vector<32x384xf32>
    %54 = tpu.matmul %51, %53, %cst_24 {dimension_numbers = #tpu.dot_dimension_numbers<[1], [0], [0], [1], [0, 0, 1, 1], [], []>} : vector<32x64xbf16>, vector<64x384xbf16>, vector<32x384xf32> -> vector<32x384xf32>
    %55 = arith.addf %49, %54 : vector<32x384xf32>
    %56 = vector.extract_strided_slice %26 {offsets = [5, 0, 0], sizes = [1, 32, 64], strides = [1, 1, 1]} : vector<6x32x64xbf16> to vector<1x32x64xbf16>
    %57 = vector.shape_cast %56 : vector<1x32x64xbf16> to vector<32x64xbf16>
    %c5 = arith.constant 5 : index
    %c0_25 = arith.constant 0 : index
    %c0_26 = arith.constant 0 : index
    %58 = vector.load %arg3[%c5, %c0_25, %c0_26] : memref<6x64x384xbf16, #tpu.memory_space<vmem>>, vector<1x64x384xbf16>
    %59 = vector.shape_cast %58 : vector<1x64x384xbf16> to vector<64x384xbf16>
    %cst_27 = arith.constant dense<0.000000e+00> : vector<32x384xf32>
    %60 = tpu.matmul %57, %59, %cst_27 {dimension_numbers = #tpu.dot_dimension_numbers<[1], [0], [0], [1], [0, 0, 1, 1], [], []>} : vector<32x64xbf16>, vector<64x384xbf16>, vector<32x384xf32> -> vector<32x384xf32>
    %61 = arith.addf %55, %60 : vector<32x384xf32>
    %c0_28 = arith.constant 0 : index
    %c0_29 = arith.constant 0 : index
    %62 = vector.load %arg4[%c0_28, %c0_29] : memref<1x384xf32, #tpu.memory_space<vmem>>, vector<1x384xf32>
    %63 = vector.broadcast %62 : vector<1x384xf32> to vector<32x384xf32>
    %64 = arith.addf %61, %63 : vector<32x384xf32>
    %c0_30 = arith.constant 0 : index
    %c0_31 = arith.constant 0 : index
    %65 = vector.load %arg6[%c0_30, %c0_31] : memref<32x384xf32, #tpu.memory_space<vmem>>, vector<32x384xf32>
    tpu.vector_store %arg6[%c0_30, %c0_31], %64 {strides = array<i32>} : memref<32x384xf32, #tpu.memory_space<vmem>>, vector<32x384xf32>,
    return
  }
  func.func @transform_0(%arg0: i32) -> (i32, i32) {
    %c0_i32 = arith.constant 0 : i32
    %c0_i32_0 = arith.constant 0 : i32
    return %arg0, %c0_i32 : i32, i32
  }
  func.func @transform_1(%arg0: i32) -> (i32, i32) {
    %c0_i32 = arith.constant 0 : i32
    %c0_i32_0 = arith.constant 0 : i32
    %c0_i32_1 = arith.constant 0 : i32
    return %c0_i32, %c0_i32_0 : i32, i32
  }
  func.func @transform_2(%arg0: i32) -> (i32, i32, i32) {
    %c0_i32 = arith.constant 0 : i32
    %c0_i32_0 = arith.constant 0 : i32
    %c0_i32_1 = arith.constant 0 : i32
    %c0_i32_2 = arith.constant 0 : i32
    return %c0_i32, %c0_i32_0, %c0_i32_1 : i32, i32, i32
  }
  func.func @transform_3(%arg0: i32) -> (i32, i32) {
    %c0_i32 = arith.constant 0 : i32
    %c0_i32_0 = arith.constant 0 : i32
    %c0_i32_1 = arith.constant 0 : i32
    return %c0_i32, %c0_i32_0 : i32, i32
  }
  func.func @transform_4(%arg0: i32) -> (i32, i32) {
    %c0_i32 = arith.constant 0 : i32
    %c0_i32_0 = arith.constant 0 : i32
    %c0_i32_1 = arith.constant 0 : i32
    return %c0_i32, %c0_i32_0 : i32, i32
  }
  func.func @transform_5(%arg0: i32) -> (i32, i32) {
    %c0_i32 = arith.constant 0 : i32
    %c0_i32_0 = arith.constant 0 : i32
    return %arg0, %c0_i32 : i32, i32
  }
}

</mosaic_0001>

<bundles_post_ra>
// kernel: tpu_custom_call.1
= control target key start
LH: loop header
LB: loop body
LE: loop exit
PB: predicated region body
PF: predicated region fallthrough
CT: control target
= control target key end

     0   :  { %10 = vsyncpa [#allocation3], 0  ;;  %s8323_s0 = inlined_call_operand.hbm [shape: f32[64,384], index: 0, kind: input, shape index: {}]   ;;  %s8324_s1 = inlined_call_operand.hbm [shape: bf16[384,1152], index: 1, kind: input, shape index: {}]   ;;  %s8325_s2 = inlined_call_operand.hbm [shape: bf16[6,64,384], index: 2, kind: input, shape index: {}]   ;;  %s8326_s3 = inlined_call_operand.vmem [shape: f32[1,384], index: 3, kind: input, shape index: {}]   ;;  %s8327_s4 = inlined_call_operand.hbm [shape: f32[32,32], index: 4, kind: input, shape index: {}]   ;;  %s8328_s5 = inlined_call_operand.hbm [shape: f32[64,384], index: 5, kind: output, shape index: {}]  }
   0x1   :  { %12 = vsyncpa [#allocation3 + $0x1], 0 }
   0x2   :  { %13 = vsyncpa [#allocation6], 0 }
   0x3   :  { %14 = vsyncpa [#allocation9], 0 }
   0x4   :  { %15 = vsyncpa [#allocation4], 0 }
   0x5   :  { %17 = vsyncpa [#allocation4 + $0x1], 0  ;;  %s7415_s18 = smov 0   ;;  %s7417_s19 = smov 0  }
   0x6   :  { %s7419_s20 = smov 0   ;;  %s7421_s21 = smov 0  }
   0x7 LB: > { %s7436_s22 = sadd.s32 4294967295, %s7366_s21   ;;  %s5260_s23 = sadd.s32 4294967294, %s7366_s21   ;;  %s7366_s21 = sphi %s7421_s21, %s8351_s21   ;;  %s7362_s20 = sphi %s7419_s20, %s8350_s20   ;;  %s7358_s19 = sphi %s7417_s19, %s8349_s19   ;;  %s7354_s18 = sphi %s7415_s18, %s8348_s18  }
   0x8   : > { %p43_p0 = scmp.ne.s32.totalorder %s7358_s19, %s7354_s18  ;;  %p8329_p1 = scmp.eq.s32.totalorder %s7436_s22, 0 }
   0x9   : > { %p157_p3 = scmp.eq.s32.totalorder %s5260_s23, 1  ;;  %p5261_p5 = scmp.ge.s32.totalorder %s7366_s21, 1 }
   0xa   : > { %p7445_p4 = por %p8329_p1, %p43_p0  ;;  %p164_p7 = scmp.lt.s32.totalorder %s7366_s21, 3 }
   0xb   : > { %p7450_p6 = por %p157_p3, %p43_p0  ;;  %s7368_s27 = smov [#allocation5]  }
   0xc   : > { %s8332_s24 = scalar_select %p7445_p4, 1, 0 }
   0xd   : > { %s8333_s25 = scalar_select %p7450_p6, 1, 0 }
   0xe   : > { %p7455_p8 = pnand %p5261_p5, %p164_p7  ;;  %s176_s28 = sshll.u32 %s7368_s27, 4  ;;  %s7459_s28 = int_to_ptr.vmem [resolvable:$true] %s176_s28 }
   0xf   : > { %s7369_s30 = smov [#allocation7]   ;;  %s7178_s9 = scalar_lea.hbm %s8324_s1, 27648 }
  0x10   : > { %s8334_s26 = scalar_select %p7455_p8, 1, 0 }
  0x11   : > { %p6396_p9 = pneg %p7455_p8  ;;  %s189_s6 = sshll.u32 %s7369_s30, 4  ;;  %s7470_s6 = int_to_ptr.vmem [resolvable:$true] %s189_s6 }
  0x12   : > { %p7179_p12 = scmp.ne.s32.totalorder %s8324_s1, %s7178_s9  ;;  %p7185_p5 = scmp.lt.u32.totalorder %s7178_s9, %s8324_s1 }
  0x13   : > { %p7466_p11 = pnand %p6396_p9, %p8329_p1 }
  0x15   : > { %p7480_p13 = pneg %p7466_p11 }
  0x17   : > { %p7181_p0 = pnand %p7480_p13, %p7179_p12 }
  0x19   : > { %p7182_p3 = pneg %p7181_p0 }
  0x1b   : > { %p7187_p7 = pnand %p7185_p5, %p7182_p3 }
  0x1d   : > { %7190 = shalt.err (!%p7187_p7)
}
  0x1e   : > { %s7191_s15 = scalar_lea.vmem %s7459_s28, 27648  ;;  %p7199_p2 = scmp.lt.s32.totalorder %s7459_s28, %s7459_s28 }
  0x1f   : > { %p7192_p9 = scmp.ne.s32.totalorder %s7459_s28, %s7191_s15  ;;  %p7200_p6 = scmp.lt.s32.totalorder %s7191_s15, %s7191_s15 }
  0x21   : > { %p7194_p10 = pnand %p7192_p9, %p7480_p13  ;;  %p7201_p12 = por %p7200_p6, %p7199_p2 }
  0x23   : > { %p7195_p1 = pneg %p7194_p10 }
  0x25   : > { %p7202_p0 = pnand %p7201_p12, %p7195_p1 }
  0x27   : > { %7205 = shalt.err (!%p7202_p0)
}
  0x28   : > { %s7370_s16 = smov 576   ;;  %s7371_s17 = smov 36  }
  0x29   : > { %6399 = dma.hbm_to_vmem [thread:$0]  (!%p7466_p11), %s8324_s1, 27648, %s7459_s28, [#allocation6], %s7370_s16, %s7370_s16, %s7371_s17  }
  0x2a   : > { %s7206_s8 = scalar_lea.hbm %s8325_s2, 9216 }
  0x2b   : > { %p7207_p2 = scmp.ne.s32.totalorder %s8325_s2, %s7206_s8  ;;  %p7213_p10 = scmp.lt.u32.totalorder %s7206_s8, %s8325_s2 }
  0x2d   : > { %p7209_p1 = pnand %p7207_p2, %p7480_p13 }
  0x2f   : > { %p7210_p6 = pneg %p7209_p1 }
  0x31   : > { %p7215_p3 = pnand %p7213_p10, %p7210_p6 }
  0x33   : > { %7218 = shalt.err (!%p7215_p3)
}
  0x34   : > { %s7219_s28 = scalar_lea.vmem %s7470_s6, 9216  ;;  %p7227_p12 = scmp.lt.s32.totalorder %s7470_s6, %s7470_s6 }
  0x35   : > { %p7220_p5 = scmp.ne.s32.totalorder %s7470_s6, %s7219_s28  ;;  %p7228_p0 = scmp.lt.s32.totalorder %s7219_s28, %s7219_s28 }
  0x37   : > { %p7222_p7 = pnand %p7220_p5, %p7480_p13  ;;  %p7229_p2 = por %p7228_p0, %p7227_p12 }
  0x39   : > { %p7223_p9 = pneg %p7222_p7 }
  0x3b   : > { %p7230_p1 = pnand %p7229_p2, %p7223_p9 }
  0x3d   : > { %7233 = shalt.err (!%p7230_p1)
}
  0x3e   : > { %s7372_s14 = smov 192   ;;  %s7373_s15 = smov 12  }
  0x3f   : > { %6402 = dma.hbm_to_vmem [thread:$0]  (!%p7466_p11), %s8325_s2, 9216, %s7470_s6, [#allocation6], %s7372_s14, %s7372_s14, %s7373_s15  }
  0x40   : > { %s7374_s23 = smov [#allocation8]   ;;  %s7234_s8 = scalar_lea.hbm %s8327_s4, 512 }
  0x41   : > { %s205_s27 = sshll.u32 %s7374_s23, 4  ;;  %p7235_p6 = scmp.ne.s32.totalorder %s8327_s4, %s7234_s8  ;;  %s206_s27 = int_to_ptr.vmem [resolvable:$true] %s205_s27 }
  0x42   : > { %p7241_p5 = scmp.lt.u32.totalorder %s7234_s8, %s8327_s4 }
  0x43   : > { %p7237_p10 = pnand %p7235_p6, %p7480_p13 }
  0x45   : > { %p7238_p3 = pneg %p7237_p10 }
  0x47   : > { %p7243_p7 = pnand %p7241_p5, %p7238_p3 }
  0x49   : > { %7246 = shalt.err (!%p7243_p7)
}
  0x4a   : > { %s7247_s6 = scalar_lea.vmem %s206_s27, 512  ;;  %p7255_p2 = scmp.lt.s32.totalorder %s206_s27, %s206_s27 }
  0x4b   : > { %p7248_p9 = scmp.ne.s32.totalorder %s206_s27, %s7247_s6  ;;  %p7256_p1 = scmp.lt.s32.totalorder %s7247_s6, %s7247_s6 }
  0x4d   : > { %p7250_p12 = pnand %p7248_p9, %p7480_p13  ;;  %p7257_p4 = por %p7256_p1, %p7255_p2 }
  0x4f   : > { %p7251_p0 = pneg %p7250_p12 }
  0x51   : > { %p7258_p8 = pnand %p7257_p4, %p7251_p0 }
  0x53   : > { %7261 = shalt.err (!%p7258_p8)
}
  0x54   : > { %s7375_s28 = smov 128   ;;  %s7376_s12 = smov 8  }
  0x55   : > { %6405 = dma.hbm_to_vmem [thread:$0]  (!%p7466_p11), %s8327_s4, 512, %s206_s27, [#allocation9], %s7375_s28, %s7375_s28, %s7376_s12  }
  0x56   : > { %s7543_s16 = sadd.s32 1, %s7366_s21   ;;  %s30_s23 = sadd.s32 1, %s7362_s20 }
  0x57   : > { %s27_s17 = ssub.s32 %s7366_s21, %s7543_s16  ;;  %p37_p8 = scmp.ne.s32.totalorder %s7362_s20, %s7358_s19 }
  0x58   : > { %p28_p4 = scmp.eq.s32.totalorder %s27_s17, 0  ;;  %p38_p13 = scmp.eq.s32.totalorder %s7366_s21, 0 }
  0x59   : > { %p6417_p6 = scmp.lt.s32.totalorder %s7366_s21, 2  ;;  %p8337_p3 = scmp.eq.s32.totalorder %s7436_s22, 1 }
  0x5a   : > { %s7553_s30 = scalar_select %p28_p4, %s7362_s20, %s30_s23  }
  0x5b   : > { %p39_p10 = por %p38_p13, %p37_p8  ;;  %p7557_p5 = por %p8337_p3, %p37_p8 }
  0x5c   : > { %s219_s29 = sand.u32 1, %s7362_s20   ;;  %s6377_s8 = smul.u32 1536, %s7366_s21 }
  0x5d   : > { %s6376_s27 = smul.u32 96, %s219_s29  ;;  %p7568_p11 = pnand %p6417_p6, %p39_p10 }
  0x5e   : > { %s7566_s11 = scalar_lea.hbm %s8323_s0, %s6377_s8  ;;  %s7574_s12 = scalar_lea.sflag [#allocation3], %s219_s29 }
  0x5f   : > { %s223_s6 = scalar_lea.vmem [#allocation2], %s6376_s27  ;;  %s7262_s14 = scalar_lea.hbm %s7566_s11, 1536 }
  0x60   : > { %s231_s28 = sshll.u32 %s223_s6, 4  ;;  %p7263_p7 = scmp.ne.s32.totalorder %s7566_s11, %s7262_s14  ;;  %s7572_s28 = int_to_ptr.vmem [resolvable:$true] %s231_s28 }
  0x61   : > { %p7264_p9 = pneg %p7568_p11  ;;  %s7267_s23 = scalar_lea.hbm %s8323_s0, 3072 }
  0x62   : > { %p7268_p2 = scmp.lt.u32.totalorder %s7566_s11, %s8323_s0  ;;  %p7269_p1 = scmp.lt.u32.totalorder %s7267_s23, %s7262_s14 }
  0x63   : > { %p7265_p12 = pnand %p7264_p9, %p7263_p7  ;;  %p7271_p8 = scmp.lt.u32.totalorder %s7262_s14, %s7566_s11 }
  0x64   : > { %p7270_p4 = por %p7269_p1, %p7268_p2 }
  0x65   : > { %p7266_p0 = pneg %p7265_p12 }
  0x66   : > { %p7272_p13 = por %p7271_p8, %p7270_p4 }
  0x68   : > { %p7273_p6 = pnand %p7272_p13, %p7266_p0 }
  0x6a   : > { %7276 = shalt.err (!%p7273_p6)
}
  0x6b   : > { %s7277_s29 = scalar_lea.vmem %s7572_s28, 1536  ;;  %s7377_s27 = smov [#allocation2]  }
  0x6c   : > { %p7278_p10 = scmp.ne.s32.totalorder %s7572_s28, %s7277_s29  ;;  %s7282_s10 = sshll.u32 %s7377_s27, 4  ;;  %s7283_s10 = int_to_ptr.vmem [resolvable:$false] %s7282_s10 }
  0x6d   : > { %s7284_s6 = scalar_lea.vmem %s7283_s10, 3072  ;;  %p7285_p12 = scmp.lt.s32.totalorder %s7572_s28, %s7283_s10 }
  0x6e   : > { %p7280_p3 = pnand %p7278_p10, %p7264_p9  ;;  %p7286_p2 = scmp.lt.s32.totalorder %s7284_s6, %s7277_s29 }
  0x70   : > { %p7281_p7 = pneg %p7280_p3  ;;  %p7287_p1 = por %p7286_p2, %p7285_p12 }
  0x72   : > { %p7288_p4 = pnand %p7287_p1, %p7281_p7 }
  0x74   : > { %7291 = shalt.err (!%p7288_p4)
}
  0x75   : > { %s7378_s14 = smov 384   ;;  %s7379_s15 = smov 24  }
  0x76   : > { %6409 = dma.hbm_to_vmem [thread:$0]  (!%p7568_p11), %s7566_s11, 1536, %s7572_s28, %s7574_s12, %s7378_s14, %s7378_s14, %s7379_s15  }
  0x77   : > { %p8340_p9 = scmp.ne.s32.totalorder %s8334_s26, 0 }
  0x78   : > { %s7605_s17 = sand.u32 (!%p8340_p9), 1, %s7358_s19   ;;  %p8341_p0 = scmp.ne.s32.totalorder (!%p8340_p9), %s8332_s24, 0 }
  0x79   : > { %243 = sbr.rel (%p8340_p9) target bundleno = 1947 (0x79b), region = 40  ;;  %s246_s8 = scalar_lea.sflag (!%p8340_p9), [#allocation3], %s7605_s17 }
  0x7a   : > { %s6378_s23 = smul.u32 (!%p8340_p9), 96, %s7605_s17 }
  0x7c   : > { %s7611_s9 = scalar_lea.vmem (!%p8340_p9), [#allocation2], %s6378_s23 }
  0x80   : > { %7337 = dma.done.wait (%p8341_p0), %s246_s8, 1536  }
  0x81   : > { %7339 = vsyncadd (%p8341_p0), %s246_s8, 4294965760  ;;  %p8342_p11 = scmp.eq.s32.totalorder %s7436_s22, 0 }
  0x83   : > { %7341 = dma.done.wait (%p8342_p11), [#allocation6], 36864   ;;  %p8343_p8 = pmov %p8342_p11 }
  0x85   : > { %7343 = vsyncadd (%p8343_p8), [#allocation6], 4294930432  ;;  %p8344_p13 = pmov %p8343_p8 }
  0x86   : > { %p8345_p6 = pmov %p8343_p8 }
  0x87   : > { %7345 = dma.done.wait (%p8344_p13), [#allocation9], 512  }
  0x88   : > { %7347 = vsyncadd (%p8345_p6), [#allocation9], 4294966784  ;;  %v6674_v0 = vld [vmem:[#allocation5 + $0x4] ss:$36 sps:$4 sm:$0xff]   ;;  %v6676_v1 = vld [vmem:[#allocation5 + $0xc] ss:$36 sps:$4 sm:$0xff]  }
  0x89   : > { %1653 = vmatprep.subr.bf16.mxu0 %v6674_v0  ;;  %v6678_v2 = vld [vmem:[#allocation5] ss:$36 sps:$4 sm:$0xff]   ;;  %v6679_v3 = vld [vmem:[#allocation5 + $0x8] ss:$36 sps:$4 sm:$0xff]   ;;  %1759 = vmatprep.subr.bf16.mxu1 %v6676_v1  ;;  %v6682_v5 = vld [vmem:[#allocation5 + $0x54] ss:$36 sps:$4 sm:$0xff]  }
  0x8a   : > { %v6680_v4 = vld [vmem:[#allocation5 + $0x4c] ss:$36 sps:$4 sm:$0xff]   ;;  %1654 = vmatpush1.bf16.msra.mxu0 %v6678_v2  ;;  %1760 = vmatpush1.bf16.msra.mxu1 %v6679_v3  ;;  %v6686_v8 = vld [vmem:[#allocation5 + $0x94] ss:$36 sps:$4 sm:$0xff]   ;;  %v6688_v9 = vld [vmem:[#allocation5 + $0x9c] ss:$36 sps:$4 sm:$0xff]  }
  0x8b   : > { %v6684_v6 = vld [vmem:[#allocation5 + $0x48] ss:$36 sps:$4 sm:$0xff]   ;;  %1655 = vmatprep.subr.bf16.mxu0 %v6680_v4  ;;  %v6685_v7 = vld [vmem:[#allocation5 + $0x50] ss:$36 sps:$4 sm:$0xff]   ;;  %1761 = vmatprep.subr.bf16.mxu1 %v6682_v5  ;;  %v6691_v11 = vld [vmem:[#allocation5 + $0x98] ss:$36 sps:$4 sm:$0xff]  }
  0x8c   : > { %v6690_v10 = vld [vmem:[#allocation5 + $0x90] ss:$36 sps:$4 sm:$0xff]   ;;  %v6692_v12 = vld [vmem:[#allocation5 + $0xdc] ss:$36 sps:$4 sm:$0xff]   ;;  %v6694_v13 = vld [vmem:[#allocation5 + $0xe4] ss:$36 sps:$4 sm:$0xff]  }
  0x8d   : > { %v6696_v14 = vld [vmem:[#allocation5 + $0xd8] ss:$36 sps:$4 sm:$0xff]   ;;  %v6697_v15 = vld [vmem:[#allocation5 + $0xe0] ss:$36 sps:$4 sm:$0xff]   ;;  %v6700_v17 = vld [vmem:[#allocation5 + $0x12c] ss:$36 sps:$4 sm:$0xff]  }
  0x8e   : > { %1656 = vmatpush1.bf16.msra.mxu0 %v6684_v6  ;;  %1762 = vmatpush1.bf16.msra.mxu1 %v6685_v7  ;;  %v6698_v16 = vld [vmem:[#allocation5 + $0x124] ss:$36 sps:$4 sm:$0xff]   ;;  %v6704_v20 = vld [vmem:[#allocation5 + $0x16c] ss:$36 sps:$4 sm:$0xff]   ;;  %v6706_v21 = vld [vmem:[#allocation5 + $0x174] ss:$36 sps:$4 sm:$0xff]  }
  0x8f   : > { %1657 = vmatprep.subr.bf16.mxu0 %v6686_v8  ;;  %1763 = vmatprep.subr.bf16.mxu1 %v6688_v9  ;;  %v6702_v18 = vld [vmem:[#allocation5 + $0x120] ss:$36 sps:$4 sm:$0xff]   ;;  %v6703_v19 = vld [vmem:[#allocation5 + $0x128] ss:$36 sps:$4 sm:$0xff]   ;;  %v6709_v23 = vld [vmem:[#allocation5 + $0x170] ss:$36 sps:$4 sm:$0xff]  }
  0x90   : > { %v6708_v22 = vld [vmem:[#allocation5 + $0x168] ss:$36 sps:$4 sm:$0xff]   ;;  %v6710_v24 = vld [vmem:[#allocation5 + $0x1b4] ss:$36 sps:$4 sm:$0xff]   ;;  %v6712_v25 = vld [vmem:[#allocation5 + $0x1bc] ss:$36 sps:$4 sm:$0xff]  }
  0x91   : > { %v6714_v26 = vld [vmem:[#allocation5 + $0x1b0] ss:$36 sps:$4 sm:$0xff]   ;;  %v6715_v27 = vld [vmem:[#allocation5 + $0x1b8] ss:$36 sps:$4 sm:$0xff]   ;;  %v6718_v29 = vld [vmem:[#allocation5 + $0x204] ss:$36 sps:$4 sm:$0xff]  }
  0x92   : > { %1658 = vmatpush1.bf16.msra.mxu0 %v6690_v10  ;;  %1764 = vmatpush1.bf16.msra.mxu1 %v6691_v11  ;;  %v6716_v28 = vld [vmem:[#allocation5 + $0x1fc] ss:$36 sps:$4 sm:$0xff]   ;;  %v6722_v32 = vld [vmem:[#allocation5 + $0x244] ss:$36 sps:$4 sm:$0xff]   ;;  %v6724_v33 = vld [vmem:[#allocation5 + $0x24c] ss:$36 sps:$4 sm:$0xff]  }
  0x93   : > { %1659 = vmatprep.subr.bf16.mxu0 %v6692_v12  ;;  %1765 = vmatprep.subr.bf16.mxu1 %v6694_v13  ;;  %v6720_v30 = vld [vmem:[#allocation5 + $0x1f8] ss:$36 sps:$4 sm:$0xff]   ;;  %v6721_v31 = vld [vmem:[#allocation5 + $0x200] ss:$36 sps:$4 sm:$0xff]   ;;  %v6727_v35 = vld [vmem:[#allocation5 + $0x248] ss:$36 sps:$4 sm:$0xff]  }
  0x94   : > { %v6726_v34 = vld [vmem:[#allocation5 + $0x240] ss:$36 sps:$4 sm:$0xff]   ;;  %v6728_v36 = vld [vmem:[#allocation5 + $0x28c] ss:$36 sps:$4 sm:$0xff]   ;;  %v6730_v37 = vld [vmem:[#allocation5 + $0x294] ss:$36 sps:$4 sm:$0xff]  }
  0x95   : > { %v6732_v38 = vld [vmem:[#allocation5 + $0x288] ss:$36 sps:$4 sm:$0xff]   ;;  %v6733_v39 = vld [vmem:[#allocation5 + $0x290] ss:$36 sps:$4 sm:$0xff]   ;;  %v6736_v41 = vld [vmem:[#allocation5 + $0x2dc] ss:$36 sps:$4 sm:$0xff]  }
  0x96   : > { %1660 = vmatpush1.bf16.msra.mxu0 %v6696_v14  ;;  %1766 = vmatpush1.bf16.msra.mxu1 %v6697_v15  ;;  %v6734_v40 = vld [vmem:[#allocation5 + $0x2d4] ss:$36 sps:$4 sm:$0xff]   ;;  %v6740_v44 = vld [vmem:[#allocation5 + $0x31c] ss:$36 sps:$4 sm:$0xff]   ;;  %v6742_v45 = vld [vmem:[#allocation5 + $0x324] ss:$36 sps:$4 sm:$0xff]  }
  0x97   : > { %1661 = vmatprep.subr.bf16.mxu0 %v6698_v16  ;;  %1767 = vmatprep.subr.bf16.mxu1 %v6700_v17  ;;  %v6738_v42 = vld [vmem:[#allocation5 + $0x2d0] ss:$36 sps:$4 sm:$0xff]   ;;  %v6739_v43 = vld [vmem:[#allocation5 + $0x2d8] ss:$36 sps:$4 sm:$0xff]   ;;  %v292_v46 = vld [vmem:[%s7611_s9 + $0x8] sm:$0xff]  ;;  %vm2503_vm0 = vcmask 523264  }
  0x98   : > { %v295_v47 = vld [vmem:[%s7611_s9 + $0x20] sm:$0xff]  ;;  %v6744_v48 = vld [vmem:[#allocation5 + $0x318] ss:$36 sps:$4 sm:$0xff]   ;;  %v6748_v52 = vld [vmem:[#allocation5 + $0x36c] ss:$36 sps:$4 sm:$0xff]   ;;  %s7381_s24 = smov 64  }
  0x99   : > { %v6745_v49 = vld [vmem:[#allocation5 + $0x320] ss:$36 sps:$4 sm:$0xff]   ;;  %v7627_v50 = vpack.c.bf16 %v295_v47, %v292_v46  ;;  %v6751_v54 = vld [vmem:[#allocation5 + $0x368] ss:$36 sps:$4 sm:$0xff]   ;;  %v6754_v56 = vld [vmem:[#allocation5 + $0x3b4] ss:$36 sps:$4 sm:$0xff]  }
  0x9a   : > { %1662 = vmatpush1.bf16.msra.mxu0 %v6702_v18  ;;  %1768 = vmatpush1.bf16.msra.mxu1 %v6703_v19  ;;  %v6746_v51 = vld [vmem:[#allocation5 + $0x364] ss:$36 sps:$4 sm:$0xff]   ;;  %v6752_v55 = vld [vmem:[#allocation5 + $0x3ac] ss:$36 sps:$4 sm:$0xff]   ;;  %v6758_v59 = vld [vmem:[#allocation5 + $0x3f4] ss:$36 sps:$4 sm:$0xff]  }
  0x9b   : > { %1663 = vmatprep.subr.bf16.mxu0 %v6704_v20  ;;  %1769 = vmatprep.subr.bf16.mxu1 %v6706_v21  ;;  %v6750_v53 = vld [vmem:[#allocation5 + $0x360] ss:$36 sps:$4 sm:$0xff]   ;;  %v6756_v57 = vld [vmem:[#allocation5 + $0x3a8] ss:$36 sps:$4 sm:$0xff]   ;;  %v6757_v58 = vld [vmem:[#allocation5 + $0x3b0] ss:$36 sps:$4 sm:$0xff]  }
  0x9c   : > { %1685 = vmatprep.mubr.bf16.mxu0 %v7627_v50  ;;  %1791 = vmatprep.mubr.bf16.mxu1 %v7627_v50  ;;  %v6760_v60 = vld [vmem:[#allocation5 + $0x3fc] ss:$36 sps:$4 sm:$0xff]   ;;  %v6762_v61 = vld [vmem:[#allocation5 + $0x3f0] ss:$36 sps:$4 sm:$0xff]   ;;  %v6766_v0 = vld [vmem:[#allocation5 + $0x444] ss:$36 sps:$4 sm:$0xff]  }
  0x9d   : > { %v6763_v62 = vld [vmem:[#allocation5 + $0x3f8] ss:$36 sps:$4 sm:$0xff]   ;;  %v6769_v2 = vld [vmem:[#allocation5 + $0x440] ss:$36 sps:$4 sm:$0xff]   ;;  %v6775_v6 = vld [vmem:[#allocation5 + $0x48c] ss:$36 sps:$4 sm:$0xff]  }
  0x9e   : > { %1664 = vmatpush1.bf16.msra.mxu0 %v6708_v22  ;;  %1770 = vmatpush1.bf16.msra.mxu1 %v6709_v23  ;;  %v6764_v63 = vld [vmem:[#allocation5 + $0x43c] ss:$36 sps:$4 sm:$0xff]   ;;  %v6772_v3 = vld [vmem:[#allocation5 + $0x484] ss:$36 sps:$4 sm:$0xff]   ;;  %v301_v11 = vld [vmem:[%s7611_s9 + $0x50] sm:$0xff]  ;;  %vm3062_vm1 = vcmask 261120  }
  0x9f   : > { %1665 = vmatprep.subr.bf16.mxu0 %v6710_v24  ;;  %1771 = vmatprep.subr.bf16.mxu1 %v6712_v25  ;;  %v6768_v1 = vld [vmem:[#allocation5 + $0x438] ss:$36 sps:$4 sm:$0xff]   ;;  %v291_v4 = vld [vmem:[%s7611_s9] sm:$0xff]  ;;  %v6773_v8 = vld [vmem:[#allocation5 + $0x488] ss:$36 sps:$4 sm:$0xff]   ;;  %s8258_s13 = scalar_lea.vmem [#allocation10], %s6378_s23 }
  0xa0   : > { %v294_v5 = vld [vmem:[%s7611_s9 + $0x18] sm:$0xff]  ;;  %v6770_v7 = vld [vmem:[#allocation5 + $0x480] ss:$36 sps:$4 sm:$0xff]   ;;  %v6778_v12 = vld [vmem:[#allocation5 + $0x4cc] ss:$36 sps:$4 sm:$0xff]   ;;  %s6379_s28 = smul.u32 1536, %s7436_s22 }
  0xa1   : > { %v7633_v9 = vpack.c.bf16 %v294_v5, %v291_v4  ;;  %v298_v10 = vld [vmem:[%s7611_s9 + $0x38] sm:$0xff]  ;;  %v6776_v14 = vld [vmem:[#allocation5 + $0x4c8] ss:$36 sps:$4 sm:$0xff]   ;;  %v6779_v16 = vld [vmem:[#allocation5 + $0x4d0] ss:$36 sps:$4 sm:$0xff]   ;;  %s5158_s12 = sshll.u32 %s8258_s13, 4  ;;  %s8275_s12 = int_to_ptr.vmem [resolvable:$true] %s5158_s12 }
  0xa2   : > { %1666 = vmatpush1.bf16.msra.mxu0 %v6714_v26  ;;  %1772 = vmatpush1.bf16.msra.mxu1 %v6715_v27  ;;  %v6781_v13 = vld [vmem:[#allocation5 + $0x4d4] ss:$36 sps:$4 sm:$0xff]   ;;  %v7637_v15 = vpack.c.bf16 %v301_v11, %v298_v10  ;;  %v300_v18 = vld [vmem:[%s7611_s9 + $0x48] sm:$0xff]  ;;  %v6787_v20 = vld [vmem:[#allocation5 + $0x51c] ss:$36 sps:$4 sm:$0xff]   ;;  %s8271_s27 = scalar_lea.hbm %s8328_s5, %s6379_s28  ;;  %s5144_s10 = scalar_lea.sflag [#allocation4], %s7605_s17 }
  0xa3   : > { %1667 = vmatprep.subr.bf16.mxu0 %v6716_v28  ;;  %1773 = vmatprep.subr.bf16.mxu1 %v6718_v29  ;;  %v297_v17 = vld [vmem:[%s7611_s9 + $0x30] sm:$0xff]  ;;  %v6785_v22 = vld [vmem:[#allocation5 + $0x518] ss:$36 sps:$4 sm:$0xff]   ;;  %v6793_v25 = vld [vmem:[#allocation5 + $0x564] ss:$36 sps:$4 sm:$0xff]   ;;  %s7292_s6 = scalar_lea.vmem %s8275_s12, 1536 }
  0xa4   : > { %v6784_v19 = vld [vmem:[#allocation5 + $0x514] ss:$36 sps:$4 sm:$0xff]   ;;  %v7645_v23 = vpack.c.bf16 %v300_v18, %v297_v17  ;;  %v6790_v24 = vld [vmem:[#allocation5 + $0x55c] ss:$36 sps:$4 sm:$0xff]   ;;  %v6796_v28 = vld [vmem:[#allocation5 + $0x5a4] ss:$36 sps:$4 sm:$0xff]   ;;  %p7293_p10 = scmp.ne.s32.totalorder %s8275_s12, %s7292_s6 }
  0xa5   : > { %v6782_v21 = vld [vmem:[#allocation5 + $0x510] ss:$36 sps:$4 sm:$0xff]   ;;  %v6788_v26 = vld [vmem:[#allocation5 + $0x558] ss:$36 sps:$4 sm:$0xff]   ;;  %v6791_v27 = vld [vmem:[#allocation5 + $0x560] ss:$36 sps:$4 sm:$0xff]  }
  0xa6   : > { %1668 = vmatpush1.bf16.msra.mxu0 %v6720_v30  ;;  %1774 = vmatpush1.bf16.msra.mxu1 %v6721_v31  ;;  %v6799_v29 = vld [vmem:[#allocation5 + $0x5ac] ss:$36 sps:$4 sm:$0xff]   ;;  %v7380_v30 = vmov 0   ;;  %v6794_v31 = vld [vmem:[#allocation5 + $0x5a0] ss:$36 sps:$4 sm:$0xff]   ;;  %p7294_p3 = pnand %p7293_p10, %p7557_p5  ;;  %s7382_s14 = smov [#allocation10]  }
  0xa7   : > { %1669 = vmatprep.subr.bf16.mxu0 %v6722_v32  ;;  %1775 = vmatprep.subr.bf16.mxu1 %v6724_v33  ;;  %v6797_v32 = vld [vmem:[#allocation5 + $0x5a8] ss:$36 sps:$4 sm:$0xff]   ;;  %v6820_v47 = vld [vmem:[#allocation5 + $0x14] ss:$36 sps:$4 sm:$0xff]   ;;  %v6909_v4 = vld [vmem:[#allocation5 + $0x60] ss:$36 sps:$4 sm:$0xff]  }
  0xa8   : > { %v6802_v33 = vld [vmem:[#allocation5 + $0x5ec] ss:$36 sps:$4 sm:$0xff]   ;;  %v6911_v5 = vld [vmem:[#allocation5 + $0x64] ss:$36 sps:$4 sm:$0xff]   ;;  %v6917_v10 = vld [vmem:[#allocation5 + $0xf4] ss:$36 sps:$4 sm:$0xff]   ;;  %p7295_p7 = pneg %p7294_p3 }
  0xa9   : > { %v296_v46 = vld [vmem:[%s7611_s9 + $0x28] sm:$0xff]  ;;  %v6845_v17 = vld [vmem:[#allocation5 + $0x298] ss:$36 sps:$4 sm:$0xff]   ;;  %s7296_s15 = sshll.u32 %s7382_s14, 4  ;;  %s7297_s15 = int_to_ptr.vmem [resolvable:$false] %s7296_s15 }
  0xaa   : > { %1670 = vmatpush1.bf16.msra.mxu0 %v6726_v34  ;;  %1776 = vmatpush1.bf16.msra.mxu1 %v6727_v35  ;;  %v6805_v34 = vld [vmem:[#allocation5 + $0x5f4] ss:$36 sps:$4 sm:$0xff]   ;;  %v6800_v35 = vld [vmem:[#allocation5 + $0x5e8] ss:$36 sps:$4 sm:$0xff]   ;;  %s7298_s23 = scalar_lea.vmem %s7297_s15, 3072  ;;  %p7299_p12 = scmp.lt.s32.totalorder %s8275_s12, %s7297_s15 }
  0xab   : > { %1671 = vmatprep.subr.bf16.mxu0 %v6728_v36  ;;  %1777 = vmatprep.subr.bf16.mxu1 %v6730_v37  ;;  %v6803_v36 = vld [vmem:[#allocation5 + $0x5f0] ss:$36 sps:$4 sm:$0xff]   ;;  %v6839_v11 = vld [vmem:[#allocation5 + $0x208] ss:$36 sps:$4 sm:$0xff]   ;;  %p7300_p2 = scmp.lt.s32.totalorder %s7298_s23, %s7292_s6 }
  0xac   : > { %v6808_v37 = vld [vmem:[#allocation5 + $0x634] ss:$36 sps:$4 sm:$0xff]   ;;  %v6850_v18 = vld [vmem:[#allocation5 + $0x2e4] ss:$36 sps:$4 sm:$0xff]  }
  0xad   : > { %p7301_p1 = por %p7300_p2, %p7299_p12 }
  0xae   : > { %1672 = vmatpush1.bf16.msra.mxu0 %v6732_v38  ;;  %1778 = vmatpush1.bf16.msra.mxu1 %v6733_v39  ;;  %v6811_v38 = vld [vmem:[#allocation5 + $0x63c] ss:$36 sps:$4 sm:$0xff]   ;;  %v6806_v39 = vld [vmem:[#allocation5 + $0x630] ss:$36 sps:$4 sm:$0xff]  }
  0xaf   : > { %1673 = vmatprep.subr.bf16.mxu0 %v6734_v40  ;;  %1779 = vmatprep.subr.bf16.mxu1 %v6736_v41  ;;  %v6809_v40 = vld [vmem:[#allocation5 + $0x638] ss:$36 sps:$4 sm:$0xff]   ;;  %p7302_p4 = pnand %p7301_p1, %p7295_p7 }
  0xb0   : > { %v6814_v41 = vld [vmem:[#allocation5 + $0x67c] ss:$36 sps:$4 sm:$0xff]  }
  0xb2   : > { %1674 = vmatpush1.bf16.msra.mxu0 %v6738_v42  ;;  %1780 = vmatpush1.bf16.msra.mxu1 %v6739_v43  ;;  %v6817_v42 = vld [vmem:[#allocation5 + $0x684] ss:$36 sps:$4 sm:$0xff]   ;;  %v6812_v43 = vld [vmem:[#allocation5 + $0x678] ss:$36 sps:$4 sm:$0xff]  }
  0xb3   : > { %1675 = vmatprep.subr.bf16.mxu0 %v6740_v44  ;;  %1781 = vmatprep.subr.bf16.mxu1 %v6742_v45  ;;  %v6815_v44 = vld [vmem:[#allocation5 + $0x680] ss:$36 sps:$4 sm:$0xff]   ;;  %v293_v45 = vld [vmem:[%s7611_s9 + $0x10] sm:$0xff] }
  0xb6   : > { %1676 = vmatpush1.bf16.msra.mxu0 %v6744_v48  ;;  %1782 = vmatpush1.bf16.msra.mxu1 %v6745_v49  ;;  %v7653_v48 = vpack.c.bf16 %v296_v46, %v293_v45  ;;  %v6818_v49 = vld [vmem:[#allocation5 + $0x10] ss:$36 sps:$4 sm:$0xff]   ;;  %v6920_v45 = vld [vmem:[#allocation5 + $0x13c] ss:$36 sps:$4 sm:$0xff]  }
  0xb7   : > { %1677 = vmatprep.subr.bf16.mxu0 %v6746_v51  ;;  %1783 = vmatprep.subr.bf16.mxu1 %v6748_v52  ;;  %v6823_v51 = vld [vmem:[#allocation5 + $0x5c] ss:$36 sps:$4 sm:$0xff]  }
  0xb8   : > { %v6821_v52 = vld [vmem:[#allocation5 + $0x58] ss:$36 sps:$4 sm:$0xff]   ;;  %v6884_v46 = vld [vmem:[#allocation5 + $0x640] ss:$36 sps:$4 sm:$0xff]  }
  0xba   : > { %1678 = vmatpush1.bf16.msra.mxu0 %v6750_v53  ;;  %1784 = vmatpush1.bf16.msra.mxu1 %v6751_v54  ;;  %v299_v53 = vld [vmem:[%s7611_s9 + $0x40] sm:$0xff]  ;;  %v302_v54 = vld [vmem:[%s7611_s9 + $0x58] sm:$0xff] }
  0xbb   : > { %1679 = vmatprep.subr.bf16.mxu0 %v6752_v55  ;;  %1785 = vmatprep.subr.bf16.mxu1 %v6754_v56  ;;  %v6826_v55 = vld [vmem:[#allocation5 + $0xa4] ss:$36 sps:$4 sm:$0xff]   ;;  %v7661_v56 = vpack.c.bf16 %v302_v54, %v299_v53 }
  0xbc   : > { %v6887_v53 = vld [vmem:[#allocation5 + $0x688] ss:$36 sps:$4 sm:$0xff]   ;;  %v6890_v54 = vld [vmem:[#allocation5 + $0x260] ss:$36 sps:$4 sm:$0xff]  }
  0xbe   : > { %1680 = vmatpush1.bf16.msra.mxu0 %v6756_v57  ;;  %1786 = vmatpush1.bf16.msra.mxu1 %v6757_v58  ;;  %v6824_v57 = vld [vmem:[#allocation5 + $0xa0] ss:$36 sps:$4 sm:$0xff]   ;;  %v6829_v58 = vld [vmem:[#allocation5 + $0xec] ss:$36 sps:$4 sm:$0xff]  }
  0xbf   : > { %1681 = vmatprep.subr.bf16.mxu0 %v6758_v59  ;;  %1787 = vmatprep.subr.bf16.mxu1 %v6760_v60  ;;  %v6827_v59 = vld [vmem:[#allocation5 + $0xe8] ss:$36 sps:$4 sm:$0xff]   ;;  %v6832_v60 = vld [vmem:[#allocation5 + $0x134] ss:$36 sps:$4 sm:$0xff]  }
  0xc2   : > { %1682 = vmatpush1.bf16.msra.mxu0 %v6762_v61  ;;  %1788 = vmatpush1.bf16.msra.mxu1 %v6763_v62  ;;  %v6830_v61 = vld [vmem:[#allocation5 + $0x130] ss:$36 sps:$4 sm:$0xff]   ;;  %v6835_v62 = vld [vmem:[#allocation5 + $0x17c] ss:$36 sps:$4 sm:$0xff]  }
  0xc3   : > { %1683 = vmatprep.subr.bf16.mxu0 %v6764_v63  ;;  %1789 = vmatprep.subr.bf16.mxu1 %v6766_v0  ;;  %v6904_v63 = vld [vmem:[#allocation5 + $0x18] ss:$36 sps:$4 sm:$0xff]  }
  0xc4   : > { %v6906_v0 = vld [vmem:[#allocation5 + $0x1c] ss:$36 sps:$4 sm:$0xff]  }
  0xc6   : > { %1684 = vmatpush1.bf16.msra.mxu0 %v6768_v1  ;;  %1790 = vmatpush1.bf16.msra.mxu1 %v6769_v2  ;;  %v6833_v1 = vld [vmem:[#allocation5 + $0x178] ss:$36 sps:$4 sm:$0xff]   ;;  %v6838_v2 = vld [vmem:[#allocation5 + $0x1c4] ss:$36 sps:$4 sm:$0xff]  }
  0xc7   : > { %1706 = vmatprep.subr.bf16.mxu0 %v6772_v3  ;;  %1812 = vmatprep.subr.bf16.mxu1 %v6775_v6  ;;  %v6836_v3 = vld [vmem:[#allocation5 + $0x1c0] ss:$36 sps:$4 sm:$0xff]   ;;  %v6841_v6 = vld [vmem:[#allocation5 + $0x20c] ss:$36 sps:$4 sm:$0xff]  }
  0xc9   : > { %1686 = vmatmul.mubr.bf16.vlgmr.msra.gmra.mrb[0].mxu0 %v7633_v9  ;;  %1792 = vmatmul.mubr.bf16.vlgmr.msra.gmra.mrb[0].mxu1 %v7633_v9 }
  0xca   : > { %1707 = vmatpush1.bf16.msra.mxu0 %v6770_v7  ;;  %1813 = vmatpush1.bf16.msra.mxu1 %v6773_v8  ;;  %v6914_v7 = vld [vmem:[#allocation5 + $0xac] ss:$36 sps:$4 sm:$0xff]  }
  0xcb   : > { %1708 = vmatprep.subr.bf16.mxu0 %v6778_v12  ;;  %1814 = vmatprep.subr.bf16.mxu1 %v6781_v13  ;;  %v6912_v8 = vld [vmem:[#allocation5 + $0xa8] ss:$36 sps:$4 sm:$0xff]   ;;  %v6844_v12 = vld [vmem:[#allocation5 + $0x254] ss:$36 sps:$4 sm:$0xff]  }
  0xcc   : > { %1695 = vmatprep.mubr.bf16.mxu0 %v7637_v15  ;;  %1801 = vmatprep.mubr.bf16.mxu1 %v7637_v15  ;;  %v6915_v13 = vld [vmem:[#allocation5 + $0xf0] ss:$36 sps:$4 sm:$0xff]  }
  0xce   : > { %1709 = vmatpush1.bf16.msra.mxu0 %v6776_v14  ;;  %1815 = vmatpush1.bf16.msra.mxu1 %v6779_v16  ;;  %v6842_v14 = vld [vmem:[#allocation5 + $0x250] ss:$36 sps:$4 sm:$0xff]   ;;  %v6847_v16 = vld [vmem:[#allocation5 + $0x29c] ss:$36 sps:$4 sm:$0xff]  }
  0xcf   : > { %1710 = vmatprep.subr.bf16.mxu0 %v6784_v19  ;;  %1816 = vmatprep.subr.bf16.mxu1 %v6787_v20  ;;  %v6848_v19 = vld [vmem:[#allocation5 + $0x2e0] ss:$36 sps:$4 sm:$0xff]   ;;  %v6853_v20 = vld [vmem:[#allocation5 + $0x32c] ss:$36 sps:$4 sm:$0xff]  }
  0xd1   : > { %1696 = vmatmul.mubr.bf16.gmra.mrb[4].mxu0 %v7645_v23  ;;  %1802 = vmatmul.mubr.bf16.gmra.mrb[4].mxu1 %v7645_v23 }
  0xd2   : > { %1711 = vmatpush1.bf16.msra.mxu0 %v6782_v21  ;;  %1817 = vmatpush1.bf16.msra.mxu1 %v6785_v22  ;;  %v6851_v21 = vld [vmem:[#allocation5 + $0x328] ss:$36 sps:$4 sm:$0xff]   ;;  %v6856_v22 = vld [vmem:[#allocation5 + $0x374] ss:$36 sps:$4 sm:$0xff]  }
  0xd3   : > { %1712 = vmatprep.subr.bf16.mxu0 %v6790_v24  ;;  %1818 = vmatprep.subr.bf16.mxu1 %v6793_v25  ;;  %v6854_v24 = vld [vmem:[#allocation5 + $0x370] ss:$36 sps:$4 sm:$0xff]   ;;  %v6859_v25 = vld [vmem:[#allocation5 + $0x3bc] ss:$36 sps:$4 sm:$0xff]  }
  0xd4   : > { %1738 = vmatprep.mubr.bf16.mxu0 %v7380_v30  ;;  %1844 = vmatprep.mubr.bf16.mxu1 %v7380_v30 }
  0xd6   : > { %1713 = vmatpush1.bf16.msra.mxu0 %v6788_v26  ;;  %1819 = vmatpush1.bf16.msra.mxu1 %v6791_v27  ;;  %v6857_v26 = vld [vmem:[#allocation5 + $0x3b8] ss:$36 sps:$4 sm:$0xff]   ;;  %v6862_v27 = vld [vmem:[#allocation5 + $0x404] ss:$36 sps:$4 sm:$0xff]  }
  0xd7   : > { %1714 = vmatprep.subr.bf16.mxu0 %v6796_v28  ;;  %1820 = vmatprep.subr.bf16.mxu1 %v6799_v29  ;;  %v6860_v28 = vld [vmem:[#allocation5 + $0x400] ss:$36 sps:$4 sm:$0xff]   ;;  %v6865_v29 = vld [vmem:[#allocation5 + $0x44c] ss:$36 sps:$4 sm:$0xff]  }
  0xda   : > { %1715 = vmatpush1.bf16.msra.mxu0 %v6794_v31  ;;  %1821 = vmatpush1.bf16.msra.mxu1 %v6797_v32  ;;  %v6863_v31 = vld [vmem:[#allocation5 + $0x448] ss:$36 sps:$4 sm:$0xff]   ;;  %v6868_v32 = vld [vmem:[#allocation5 + $0x494] ss:$36 sps:$4 sm:$0xff]  }
  0xdb   : > { %1716 = vmatprep.subr.bf16.mxu0 %v6802_v33  ;;  %1822 = vmatprep.subr.bf16.mxu1 %v6805_v34  ;;  %v6866_v33 = vld [vmem:[#allocation5 + $0x490] ss:$36 sps:$4 sm:$0xff]   ;;  %v6871_v34 = vld [vmem:[#allocation5 + $0x4dc] ss:$36 sps:$4 sm:$0xff]  }
  0xde   : > { %1717 = vmatpush1.bf16.msra.mxu0 %v6800_v35  ;;  %1823 = vmatpush1.bf16.msra.mxu1 %v6803_v36  ;;  %v6869_v35 = vld [vmem:[#allocation5 + $0x4d8] ss:$36 sps:$4 sm:$0xff]   ;;  %v6874_v36 = vld [vmem:[#allocation5 + $0x524] ss:$36 sps:$4 sm:$0xff]  }
  0xdf   : > { %1718 = vmatprep.subr.bf16.mxu0 %v6808_v37  ;;  %1824 = vmatprep.subr.bf16.mxu1 %v6811_v38  ;;  %v6872_v37 = vld [vmem:[#allocation5 + $0x520] ss:$36 sps:$4 sm:$0xff]   ;;  %v6877_v38 = vld [vmem:[#allocation5 + $0x56c] ss:$36 sps:$4 sm:$0xff]  }
  0xe2   : > { %1719 = vmatpush1.bf16.msra.mxu0 %v6806_v39  ;;  %1825 = vmatpush1.bf16.msra.mxu1 %v6809_v40  ;;  %v6875_v39 = vld [vmem:[#allocation5 + $0x568] ss:$36 sps:$4 sm:$0xff]   ;;  %v6880_v40 = vld [vmem:[#allocation5 + $0x5b4] ss:$36 sps:$4 sm:$0xff]  }
  0xe3   : > { %1720 = vmatprep.subr.bf16.mxu0 %v6814_v41  ;;  %1826 = vmatprep.subr.bf16.mxu1 %v6817_v42  ;;  %v6878_v41 = vld [vmem:[#allocation5 + $0x5b0] ss:$36 sps:$4 sm:$0xff]   ;;  %v6883_v42 = vld [vmem:[#allocation5 + $0x5fc] ss:$36 sps:$4 sm:$0xff]  }
  0xe6   : > { %1721 = vmatpush1.bf16.msra.mxu0 %v6812_v43  ;;  %1827 = vmatpush1.bf16.msra.mxu1 %v6815_v44  ;;  %v6881_v43 = vld [vmem:[#allocation5 + $0x5f8] ss:$36 sps:$4 sm:$0xff]   ;;  %v6886_v44 = vld [vmem:[#allocation5 + $0x644] ss:$36 sps:$4 sm:$0xff]  }
  0xe7   : > { %1865 = vmatprep.subr.bf16.mxu0 %v6820_v47  ;;  %1971 = vmatprep.subr.bf16.mxu1 %v6906_v0  ;;  %v6918_v47 = vld [vmem:[#allocation5 + $0x138] ss:$36 sps:$4 sm:$0xff]  }
  0xe8   : > { %v6930_v0 = vld [vmem:[#allocation5 + $0x258] ss:$36 sps:$4 sm:$0xff]  }
  0xe9   : > { %1739 = vmatmul.mubr.bf16.vlgmr.msra.gmra.mrb[0].mxu0 %v7653_v48  ;;  %1845 = vmatmul.mubr.bf16.vlgmr.msra.gmra.mrb[0].mxu1 %v7653_v48 }
  0xea   : > { %1866 = vmatpush1.bf16.msra.mxu0 %v6818_v49  ;;  %1748 = vmatprep.mubr.bf16.mxu0 %v7380_v30  ;;  %v6889_v49 = vld [vmem:[#allocation5 + $0x68c] ss:$36 sps:$4 sm:$0xff]  }
  0xeb   : > { %1867 = vmatprep.subr.bf16.mxu0 %v6823_v51  ;;  %1854 = vmatprep.mubr.bf16.mxu1 %v7380_v30  ;;  %v6921_v51 = vld [vmem:[#allocation5 + $0x180] ss:$36 sps:$4 sm:$0xff]  }
  0xec   : > { %1972 = vmatpush1.bf16.msra.mxu1 %v6904_v63  ;;  %v6894_v63 = vld [vmem:[#allocation5 + $0x2f0] ss:$36 sps:$4 sm:$0xff]  }
  0xed   : > { %1973 = vmatprep.subr.bf16.mxu1 %v6911_v5  ;;  %v6933_v5 = vld [vmem:[#allocation5 + $0x2a0] ss:$36 sps:$4 sm:$0xff]  }
  0xee   : > { %1868 = vmatpush1.bf16.msra.mxu0 %v6821_v52  ;;  %v6923_v52 = vld [vmem:[#allocation5 + $0x184] ss:$36 sps:$4 sm:$0xff]  }
  0xef   : > { %1869 = vmatprep.subr.bf16.mxu0 %v6826_v55  ;;  %v6926_v55 = vld [vmem:[#allocation5 + $0x1cc] ss:$36 sps:$4 sm:$0xff]  }
  0xf0   : > { %1974 = vmatpush1.bf16.msra.mxu1 %v6909_v4  ;;  %v6896_v4 = vld [vmem:[#allocation5 + $0x338] ss:$36 sps:$4 sm:$0xff]  }
  0xf1   : > { %1749 = vmatmul.mubr.bf16.gmra.mrb[4].mxu0 %v7661_v56  ;;  %1855 = vmatmul.mubr.bf16.gmra.mrb[4].mxu1 %v7661_v56 }
  0xf2   : > { %1870 = vmatpush1.bf16.msra.mxu0 %v6824_v57  ;;  %1897 = vmatprep.mubr.bf16.mxu0 %v7627_v50  ;;  %v6891_v57 = vld [vmem:[#allocation5 + $0x20] ss:$36 sps:$4 sm:$0xff]  }
  0xf3   : > { %1871 = vmatprep.subr.bf16.mxu0 %v6829_v58  ;;  %2003 = vmatprep.mubr.bf16.mxu1 %v7627_v50  ;;  %v6924_v58 = vld [vmem:[#allocation5 + $0x1c8] ss:$36 sps:$4 sm:$0xff]  }
  0xf4   : > { %1975 = vmatprep.subr.bf16.mxu1 %v6914_v7  ;;  %v6897_v7 = vld [vmem:[#allocation5 + $0xf8] ss:$36 sps:$4 sm:$0xff]  }
  0xf5   : > { %1976 = vmatpush1.bf16.msra.mxu1 %v6912_v8  ;;  %v6898_v8 = vld [vmem:[#allocation5 + $0x380] ss:$36 sps:$4 sm:$0xff]  }
  0xf6   : > { %1872 = vmatpush1.bf16.msra.mxu0 %v6827_v59  ;;  %1977 = vmatprep.subr.bf16.mxu1 %v6917_v10  ;;  %v6892_v59 = vld [vmem:[#allocation5 + $0x2a8] ss:$36 sps:$4 sm:$0xff]  }
  0xf7   : > { %1873 = vmatprep.subr.bf16.mxu0 %v6832_v60  ;;  %v6927_v60 = vld [vmem:[#allocation5 + $0x210] ss:$36 sps:$4 sm:$0xff]   ;;  %v6936_v10 = vld [vmem:[#allocation5 + $0x2e8] ss:$36 sps:$4 sm:$0xff]  }
  0xf9   : > { %1978 = vmatpush1.bf16.msra.mxu1 %v6915_v13  ;;  %v6900_v13 = vld [vmem:[#allocation5 + $0x3c8] ss:$36 sps:$4 sm:$0xff]  }
  0xfa   : > { %1874 = vmatpush1.bf16.msra.mxu0 %v6830_v61  ;;  %1979 = vmatprep.subr.bf16.mxu1 %v6920_v45  ;;  %v6929_v61 = vld [vmem:[#allocation5 + $0x214] ss:$36 sps:$4 sm:$0xff]  }
  0xfb   : > { %1875 = vmatprep.subr.bf16.mxu0 %v6835_v62  ;;  %v6893_v62 = vld [vmem:[#allocation5 + $0x68] ss:$36 sps:$4 sm:$0xff]   ;;  %v6980_v45 = vld [vmem:[#allocation5 + $0x530] ss:$36 sps:$4 sm:$0xff]  }
  0xfd   : > { %1980 = vmatpush1.bf16.msra.mxu1 %v6918_v47  ;;  %v6982_v47 = vld [vmem:[#allocation5 + $0x5c0] ss:$36 sps:$4 sm:$0xff]  }
  0xfe   : > { %1876 = vmatpush1.bf16.msra.mxu0 %v6833_v1  ;;  %1981 = vmatprep.subr.bf16.mxu1 %v6923_v52  ;;  %v6932_v1 = vld [vmem:[#allocation5 + $0x25c] ss:$36 sps:$4 sm:$0xff]  }
  0xff   : > { %1877 = vmatprep.subr.bf16.mxu0 %v6838_v2  ;;  %v6895_v2 = vld [vmem:[#allocation5 + $0xb0] ss:$36 sps:$4 sm:$0xff]   ;;  %v6985_v52 = vld [vmem:[#allocation5 + $0x698] ss:$36 sps:$4 sm:$0xff]  }
 0x101   : > { %1982 = vmatpush1.bf16.msra.mxu1 %v6921_v51  ;;  %v6984_v51 = vld [vmem:[#allocation5 + $0x650] ss:$36 sps:$4 sm:$0xff]  }
 0x102   : > { %1878 = vmatpush1.bf16.msra.mxu0 %v6836_v3  ;;  %1983 = vmatprep.subr.bf16.mxu1 %v6926_v55  ;;  %v6935_v3 = vld [vmem:[#allocation5 + $0x2a4] ss:$36 sps:$4 sm:$0xff]  }
 0x103   : > { %1879 = vmatprep.subr.bf16.mxu0 %v6841_v6  ;;  %v6938_v6 = vld [vmem:[#allocation5 + $0x2ec] ss:$36 sps:$4 sm:$0xff]  }
 0x105   : > { %1984 = vmatpush1.bf16.msra.mxu1 %v6924_v58 }
 0x106   : > { %1880 = vmatpush1.bf16.msra.mxu0 %v6839_v11  ;;  %1985 = vmatprep.subr.bf16.mxu1 %v6929_v61  ;;  %v6941_v11 = vld [vmem:[#allocation5 + $0x334] ss:$36 sps:$4 sm:$0xff]  }
 0x107   : > { %1881 = vmatprep.subr.bf16.mxu0 %v6844_v12  ;;  %v6899_v12 = vld [vmem:[#allocation5 + $0x140] ss:$36 sps:$4 sm:$0xff]  }
 0x109   : > { %1986 = vmatpush1.bf16.msra.mxu1 %v6927_v60 }
 0x10a   : > { %1882 = vmatpush1.bf16.msra.mxu0 %v6842_v14  ;;  %1987 = vmatprep.subr.bf16.mxu1 %v6932_v1  ;;  %v6939_v14 = vld [vmem:[#allocation5 + $0x330] ss:$36 sps:$4 sm:$0xff]  }
 0x10b   : > { %1883 = vmatprep.subr.bf16.mxu0 %v6847_v16  ;;  %v6944_v16 = vld [vmem:[#allocation5 + $0x37c] ss:$36 sps:$4 sm:$0xff]  }
 0x10d   : > { %1988 = vmatpush1.bf16.msra.mxu1 %v6930_v0 }
 0x10e   : > { %1884 = vmatpush1.bf16.msra.mxu0 %v6845_v17  ;;  %1989 = vmatprep.subr.bf16.mxu1 %v6935_v3  ;;  %v6901_v17 = vld [vmem:[#allocation5 + $0x188] ss:$36 sps:$4 sm:$0xff]  }
 0x10f   : > { %1885 = vmatprep.subr.bf16.mxu0 %v6850_v18  ;;  %v6902_v18 = vld [vmem:[#allocation5 + $0x410] ss:$36 sps:$4 sm:$0xff]  }
 0x111   : > { %1990 = vmatpush1.bf16.msra.mxu1 %v6933_v5 }
 0x112   : > { %1886 = vmatpush1.bf16.msra.mxu0 %v6848_v19  ;;  %1991 = vmatprep.subr.bf16.mxu1 %v6938_v6  ;;  %v6947_v19 = vld [vmem:[#allocation5 + $0x3c4] ss:$36 sps:$4 sm:$0xff]  }
 0x113   : > { %1887 = vmatprep.subr.bf16.mxu0 %v6853_v20  ;;  %v6903_v20 = vld [vmem:[#allocation5 + $0x1d0] ss:$36 sps:$4 sm:$0xff]  }
 0x115   : > { %1992 = vmatpush1.bf16.msra.mxu1 %v6936_v10 }
 0x116   : > { %1888 = vmatpush1.bf16.msra.mxu0 %v6851_v21  ;;  %1993 = vmatprep.subr.bf16.mxu1 %v6941_v11  ;;  %v6907_v21 = vld [vmem:[#allocation5 + $0x458] ss:$36 sps:$4 sm:$0xff]  }
 0x117   : > { %1889 = vmatprep.subr.bf16.mxu0 %v6856_v22  ;;  %v6945_v22 = vld [vmem:[#allocation5 + $0x3c0] ss:$36 sps:$4 sm:$0xff]  }
 0x119   : > { %1994 = vmatpush1.bf16.msra.mxu1 %v6939_v14 }
 0x11a   : > { %1890 = vmatpush1.bf16.msra.mxu0 %v6854_v24  ;;  %1995 = vmatprep.subr.bf16.mxu1 %v6944_v16  ;;  %v6950_v24 = vld [vmem:[#allocation5 + $0x40c] ss:$36 sps:$4 sm:$0xff]  }
 0x11b   : > { %1891 = vmatprep.subr.bf16.mxu0 %v6859_v25  ;;  %v6908_v25 = vld [vmem:[#allocation5 + $0x218] ss:$36 sps:$4 sm:$0xff]  }
 0x11e   : > { %1892 = vmatpush1.bf16.msra.mxu0 %v6857_v26  ;;  %v6948_v26 = vld [vmem:[#allocation5 + $0x408] ss:$36 sps:$4 sm:$0xff]  }
 0x11f   : > { %1893 = vmatprep.subr.bf16.mxu0 %v6862_v27  ;;  %v6953_v27 = vld [vmem:[#allocation5 + $0x454] ss:$36 sps:$4 sm:$0xff]  }
 0x122   : > { %1894 = vmatpush1.bf16.msra.mxu0 %v6860_v28  ;;  %v6951_v28 = vld [vmem:[#allocation5 + $0x450] ss:$36 sps:$4 sm:$0xff]  }
 0x123   : > { %1895 = vmatprep.subr.bf16.mxu0 %v6865_v29  ;;  %v6956_v29 = vld [vmem:[#allocation5 + $0x49c] ss:$36 sps:$4 sm:$0xff]  }
 0x126   : > { %1896 = vmatpush1.bf16.msra.mxu0 %v6863_v31  ;;  %v6954_v31 = vld [vmem:[#allocation5 + $0x498] ss:$36 sps:$4 sm:$0xff]  }
 0x127   : > { %1918 = vmatprep.subr.bf16.mxu0 %v6868_v32  ;;  %v6959_v32 = vld [vmem:[#allocation5 + $0x4e4] ss:$36 sps:$4 sm:$0xff]  }
 0x129   : > { %1898 = vmatmul.mubr.bf16.vlgmr.msra.gmra.mrb[8].mxu0 %v7633_v9 }
 0x12a   : > { %1919 = vmatpush1.bf16.msra.mxu0 %v6866_v33  ;;  %1907 = vmatprep.mubr.bf16.mxu0 %v7637_v15  ;;  %v6957_v33 = vld [vmem:[#allocation5 + $0x4e0] ss:$36 sps:$4 sm:$0xff]  }
 0x12b   : > { %1920 = vmatprep.subr.bf16.mxu0 %v6871_v34  ;;  %v6962_v34 = vld [vmem:[#allocation5 + $0x52c] ss:$36 sps:$4 sm:$0xff]  }
 0x12e   : > { %1921 = vmatpush1.bf16.msra.mxu0 %v6869_v35  ;;  %v6960_v35 = vld [vmem:[#allocation5 + $0x528] ss:$36 sps:$4 sm:$0xff]  }
 0x12f   : > { %1922 = vmatprep.subr.bf16.mxu0 %v6874_v36  ;;  %v6965_v36 = vld [vmem:[#allocation5 + $0x574] ss:$36 sps:$4 sm:$0xff]  }
 0x131   : > { %1908 = vmatmul.mubr.bf16.gmra.mrb[12].mxu0 %v7645_v23 }
 0x132   : > { %1923 = vmatpush1.bf16.msra.mxu0 %v6872_v37  ;;  %1950 = vmatprep.mubr.bf16.mxu0 %v7380_v30  ;;  %v6963_v37 = vld [vmem:[#allocation5 + $0x570] ss:$36 sps:$4 sm:$0xff]  }
 0x133   : > { %1924 = vmatprep.subr.bf16.mxu0 %v6877_v38  ;;  %v6966_v38 = vld [vmem:[#allocation5 + $0x5b8] ss:$36 sps:$4 sm:$0xff]  }
 0x136   : > { %1925 = vmatpush1.bf16.msra.mxu0 %v6875_v39  ;;  %v6969_v39 = vld [vmem:[#allocation5 + $0x600] ss:$36 sps:$4 sm:$0xff]  }
 0x137   : > { %1926 = vmatprep.subr.bf16.mxu0 %v6880_v40  ;;  %v6974_v40 = vld [vmem:[#allocation5 + $0x64c] ss:$36 sps:$4 sm:$0xff]  }
 0x13a   : > { %1927 = vmatpush1.bf16.msra.mxu0 %v6878_v41  ;;  %v6972_v41 = vld [vmem:[#allocation5 + $0x648] ss:$36 sps:$4 sm:$0xff]  }
 0x13b   : > { %1928 = vmatprep.subr.bf16.mxu0 %v6883_v42  ;;  %v6977_v42 = vld [vmem:[#allocation5 + $0x694] ss:$36 sps:$4 sm:$0xff]  }
 0x13e   : > { %1929 = vmatpush1.bf16.msra.mxu0 %v6881_v43  ;;  %v6978_v43 = vld [vmem:[#allocation5 + $0x4a0] ss:$36 sps:$4 sm:$0xff]  }
 0x13f   : > { %1930 = vmatprep.subr.bf16.mxu0 %v6886_v44  ;;  %v6979_v44 = vld [vmem:[#allocation5 + $0x4e8] ss:$36 sps:$4 sm:$0xff]  }
 0x142   : > { %1931 = vmatpush1.bf16.msra.mxu0 %v6884_v46  ;;  %v6981_v46 = vld [vmem:[#allocation5 + $0x578] ss:$36 sps:$4 sm:$0xff]  }
 0x143   : > { %1932 = vmatprep.subr.bf16.mxu0 %v6889_v49  ;;  %v6983_v49 = vld [vmem:[#allocation5 + $0x608] ss:$36 sps:$4 sm:$0xff]  }
 0x146   : > { %1933 = vmatpush1.bf16.msra.mxu0 %v6887_v53 }
 0x147   : > { %5638 = vmatprep.subr.bf16.mxu0 %v6890_v54 }
 0x149   : > { %1951 = vmatmul.mubr.bf16.vlgmr.msra.gmra.mrb[8].mxu0 %v7653_v48 }
 0x14a   : > { %1960 = vmatprep.mubr.bf16.mxu0 %v7380_v30  ;;  %5639 = vmatpush3.bf16.msra.mxu0 %v6891_v57 }
 0x14b   : > { %5640 = vmatprep.subr.bf16.mxu0 %v6892_v59 }
 0x14e   : > { %5641 = vmatpush3.bf16.msra.mxu0 %v6893_v62 }
 0x14f   : > { %5642 = vmatprep.subr.bf16.mxu0 %v6894_v63 }
 0x151   : > { %1961 = vmatmul.mubr.bf16.gmra.mrb[12].mxu0 %v7661_v56 }
 0x152   : > { %5643 = vmatpush3.bf16.msra.mxu0 %v6895_v2  ;;  %2109 = vmatprep.mubr.bf16.mxu0 %v7627_v50  ;;  %v6942_v50 = vld [vmem:[#allocation5 + $0x378] ss:$36 sps:$4 sm:$0xff]  }
 0x153   : > { %5644 = vmatprep.subr.bf16.mxu0 %v6896_v4  ;;  %1996 = vmatpush1.bf16.msra.mxu1 %v6942_v50 }
 0x154   : > { %1997 = vmatprep.subr.bf16.mxu1 %v6947_v19 }
 0x156   : > { %5645 = vmatpush3.bf16.msra.mxu0 %v6897_v7 }
 0x157   : > { %5646 = vmatprep.subr.bf16.mxu0 %v6898_v8  ;;  %1998 = vmatpush1.bf16.msra.mxu1 %v6945_v22 }
 0x158   : > { %1999 = vmatprep.subr.bf16.mxu1 %v6950_v24 }
 0x15a   : > { %5647 = vmatpush3.bf16.msra.mxu0 %v6899_v12 }
 0x15b   : > { %5648 = vmatprep.subr.bf16.mxu0 %v6900_v13  ;;  %2000 = vmatpush1.bf16.msra.mxu1 %v6948_v26 }
 0x15c   : > { %2001 = vmatprep.subr.bf16.mxu1 %v6953_v27 }
 0x15e   : > { %5649 = vmatpush3.bf16.msra.mxu0 %v6901_v17 }
 0x15f   : > { %5650 = vmatprep.subr.bf16.mxu0 %v6902_v18  ;;  %2002 = vmatpush1.bf16.msra.mxu1 %v6951_v28 }
 0x160   : > { %2024 = vmatprep.subr.bf16.mxu1 %v6956_v29 }
 0x162   : > { %5651 = vmatpush3.bf16.msra.mxu0 %v6903_v20  ;;  %2004 = vmatmul.mubr.bf16.vlgmr.msra.gmra.mrb[8].mxu1 %v7633_v9 }
 0x163   : > { %5652 = vmatprep.subr.bf16.mxu0 %v6907_v21  ;;  %2025 = vmatpush1.bf16.msra.mxu1 %v6954_v31 }
 0x164   : > { %2013 = vmatprep.mubr.bf16.mxu1 %v7637_v15  ;;  %2026 = vmatprep.subr.bf16.mxu1 %v6959_v32 }
 0x166   : > { %5653 = vmatpush3.bf16.msra.mxu0 %v6908_v25 }
 0x167   : > { %2027 = vmatpush1.bf16.msra.mxu1 %v6957_v33 }
 0x168   : > { %2028 = vmatprep.subr.bf16.mxu1 %v6962_v34 }
 0x169   : > { %2110 = vmatmul.mubr.bf16.vlgmr.msra.gmra.mrb[16].mxu0 %v7633_v9  ;;  %v6968_v9 = vld [vmem:[#allocation5 + $0x5bc] ss:$36 sps:$4 sm:$0xff]  }
 0x16a   : > { %2117 = vmatprep.mubr.bf16.mxu0 %v7637_v15  ;;  %2014 = vmatmul.mubr.bf16.gmra.mrb[12].mxu1 %v7645_v23  ;;  %v6971_v15 = vld [vmem:[#allocation5 + $0x604] ss:$36 sps:$4 sm:$0xff]  }
 0x16b   : > { %2029 = vmatpush1.bf16.msra.mxu1 %v6960_v35  ;;  %2056 = vmatprep.mubr.bf16.mxu1 %v7380_v30 }
 0x16c   : > { %2030 = vmatprep.subr.bf16.mxu1 %v6965_v36 }
 0x16f   : > { %2031 = vmatpush1.bf16.msra.mxu1 %v6963_v37 }
 0x170   : > { %2032 = vmatprep.subr.bf16.mxu1 %v6968_v9 }
 0x171   : > { %2118 = vmatmul.mubr.bf16.gmra.mrb[20].mxu0 %v7645_v23  ;;  %v6975_v23 = vld [vmem:[#allocation5 + $0x690] ss:$36 sps:$4 sm:$0xff]  }
 0x173   : > { %2033 = vmatpush1.bf16.msra.mxu1 %v6966_v38 }
 0x174   : > { %2034 = vmatprep.subr.bf16.mxu1 %v6971_v15 }
 0x177   : > { %2035 = vmatpush1.bf16.msra.mxu1 %v6969_v39 }
 0x178   : > { %2036 = vmatprep.subr.bf16.mxu1 %v6974_v40 }
 0x17b   : > { %2037 = vmatpush1.bf16.msra.mxu1 %v6972_v41 }
 0x17c   : > { %2038 = vmatprep.subr.bf16.mxu1 %v6977_v42 }
 0x17f   : > { %2039 = vmatpush1.bf16.msra.mxu1 %v6975_v23 }
 0x180   : > { %5832 = vmatprep.subr.bf16.mxu1 %v6978_v43 }
 0x182   : > { %2057 = vmatmul.mubr.bf16.vlgmr.msra.gmra.mrb[8].mxu1 %v7653_v48 }
 0x183   : > { %5833 = vmatpush3.bf16.msra.mxu1 %v6978_v43  ;;  %2066 = vmatprep.mubr.bf16.mxu1 %v7380_v30 }
 0x184   : > { %5834 = vmatprep.subr.bf16.mxu1 %v6979_v44 }
 0x187   : > { %5835 = vmatpush3.bf16.msra.mxu1 %v6979_v44 }
 0x188   : > { %5836 = vmatprep.subr.bf16.mxu1 %v6980_v45 }
 0x18a   : > { %2067 = vmatmul.mubr.bf16.gmra.mrb[12].mxu1 %v7661_v56 }
 0x18b   : > { %5837 = vmatpush3.bf16.msra.mxu1 %v6980_v45  ;;  %5848 = vmatprep.mubr.bf16.mxu1 %v7653_v48 }
 0x18c   : > { %5838 = vmatprep.subr.bf16.mxu1 %v6981_v46 }
 0x18f   : > { %5839 = vmatpush3.bf16.msra.mxu1 %v6981_v46 }
 0x190   : > { %5840 = vmatprep.subr.bf16.mxu1 %v6982_v47 }
 0x193   : > { %5841 = vmatpush3.bf16.msra.mxu1 %v6982_v47 }
 0x194   : > { %5842 = vmatprep.subr.bf16.mxu1 %v6983_v49 }
 0x197   : > { %5843 = vmatpush3.bf16.msra.mxu1 %v6983_v49 }
 0x198   : > { %5844 = vmatprep.subr.bf16.mxu1 %v6984_v51 }
 0x19b   : > { %5845 = vmatpush3.bf16.msra.mxu1 %v6984_v51 }
 0x19c   : > { %5846 = vmatprep.subr.bf16.mxu1 %v6985_v52 }
 0x19f   : > { %5847 = vmatpush3.bf16.msra.mxu1 %v6985_v52 }
 0x1a2   : > { %5849 = vmatmul.mubr.bf16.vlgmr.msra.gmra.mrb[16].mxu1 %v7661_v56 }
 0x1bc   : > { %v1740_v53 = vpop.f32.mrb[0].mxu0  ;;  %v7687_v54 = vpop.f32.mrb[0].mxu1 }
 0x1bd   : > { %v1848_v48 = vpop.f32.mrb[1].mxu1  ;;  %2179 = vrot.lane.b32.xlu0 %v1740_v53, %s7381_s24  ;;  %v7690_v55 = vpop.f32.mrb[1].mxu0  ;;  %5868 = vmatprep.mubr.msk.f32.mxu0 %vm2503_vm0, %v1740_v53 }
 0x1be   : > { %v7693_v57 = vpop.f32.mrb[2].mxu0  ;;  %v7695_v58 = vpop.f32.mrb[2].mxu1 }
 0x1bf   : > { %v1852_v59 = vpop.f32.mrb[3].mxu1  ;;  %2181 = vrot.lane.b32.xlu1 %v7693_v57, %s7381_s24  ;;  %v7699_v56 = vpop.f32.mrb[3].mxu0 }
 0x1c0   : > { %v6470_v60 = vpack.i.bf16 %v1852_v59, %v1848_v48 }
 0x1c1   : > { %2191 = vrot.lane.b32.xlu0 %v7690_v55, %s7381_s24 }
 0x1c3   : > { %2193 = vrot.lane.b32.xlu1 %v7699_v56, %s7381_s24 }
 0x1c4   : > { %v7705_v61 = vpop.f32.mrb[4].mxu0  ;;  %v7707_v62 = vpop.f32.mrb[4].mxu1 }
 0x1c5   : > { %v1858_v63 = vpop.f32.mrb[5].mxu1  ;;  %6471 = vrot.lane.b32.xlu0 %v6470_v60, %s7381_s24  ;;  %v7710_v0 = vpop.f32.mrb[5].mxu0 }
 0x1c6   : > { %v7712_v1 = vpop.f32.mrb[6].mxu0  ;;  %v7714_v2 = vpop.f32.mrb[6].mxu1 }
 0x1c7   : > { %v1862_v3 = vpop.f32.mrb[7].mxu1  ;;  %2183 = vrot.lane.b32.xlu1 %v7705_v61, %s7381_s24  ;;  %v7718_v4 = vpop.f32.mrb[7].mxu0 }
 0x1c8   : > { %v6475_v5 = vpack.i.bf16 %v1862_v3, %v1858_v63 }
 0x1c9   : > { %2195 = vrot.lane.b32.xlu0 %v7710_v0, %s7381_s24 }
 0x1cb   : > { %2185 = vrot.lane.b32.xlu1 %v7712_v1, %s7381_s24 }
 0x1cd   : > { %6476 = vrot.lane.b32.xlu0 %v6475_v5, %s7381_s24 }
 0x21c   : > { %v1952_v6 = vpop.f32.mrb[8].mxu0 }
 0x21d   : > { %v1954_v7 = vpop.f32.mrb[9].mxu0 }
 0x21e   : > { %v1956_v8 = vpop.f32.mrb[10].mxu0 }
 0x21f   : > { %v6480_v10 = vpack.i.bf16 %v1956_v8, %v1952_v6  ;;  %v1958_v11 = vpop.f32.mrb[11].mxu0 }
 0x220   : > { %v6485_v12 = vpack.i.bf16 %v1958_v11, %v1954_v7 }
 0x221   : > { %6481 = vrot.lane.b32.xlu1 %v6480_v10, %s7381_s24 }
 0x224   : > { %v1962_v13 = vpop.f32.mrb[12].mxu0 }
 0x225   : > { %6486 = vrot.lane.b32.xlu1 %v6485_v12, %s7381_s24  ;;  %v1964_v14 = vpop.f32.mrb[13].mxu0 }
 0x226   : > { %v1966_v16 = vpop.f32.mrb[14].mxu0 }
 0x227   : > { %v6490_v17 = vpack.i.bf16 %v1966_v16, %v1962_v13  ;;  %v1968_v18 = vpop.f32.mrb[15].mxu0 }
 0x228   : > { %v6495_v50 = vpack.i.bf16 %v1968_v18, %v1964_v14 }
 0x229   : > { %6491 = vrot.lane.b32.xlu1 %v6490_v17, %s7381_s24 }
 0x22d   : > { %6496 = vrot.lane.b32.xlu1 %v6495_v50, %s7381_s24 }
 0x22f   : > { %v2180_v19 = vpop.permute.xlu0 %2179 }
 0x230   : > { %5890 = vmatprep.mubr.msk.f32.mxu1 %vm2503_vm0, %v2180_v19 }
 0x231   : > { %v7734_v34 = vpop.permute.xlu1 %2181 }
 0x233   : > { %v7730_v20 = vpop.permute.xlu0 %2191 }
 0x235   : > { %v7738_v35 = vpop.permute.xlu1 %2193 }
 0x237   : > { %v6472_v21 = vpop.permute.xlu0 %6471 }
 0x238   : > { %v6473_v22 = vunpack.i.l.bf16 %v6472_v21  ;;  %v6474_v24 = vunpack.i.h.bf16 %v6472_v21 }
 0x239   : > { %v7740_v36 = vpop.permute.xlu1 %2183 }
 0x23a   : > { %v6500_v25 = vpack.i.bf16 %v1848_v48, %v6473_v22  ;;  %v6502_v27 = vpack.i.bf16 %v1852_v59, %v6474_v24 }
 0x23b   : > { %v7732_v26 = vpop.permute.xlu0 %2195 }
 0x23c   : > { %6501 = vxpose.xlu0.b32.start [1/4] (short) (narrow) %v6500_v25, 64 }
 0x23d   : > { %v7742_v37 = vpop.permute.xlu1 %2185 }
 0x23f   : > { %v6477_v28 = vpop.permute.xlu0 %6476 }
 0x240   : > { %v6478_v29 = vunpack.i.l.bf16 %v6477_v28  ;;  %6503 = vxpose.xlu0.b32.cont [2/4] (short) (narrow) %v6502_v27, 64  ;;  %v6479_v31 = vunpack.i.h.bf16 %v6477_v28 }
 0x242   : > { %v6504_v32 = vpack.i.bf16 %v1858_v63, %v6478_v29  ;;  %v6506_v33 = vpack.i.bf16 %v1862_v3, %v6479_v31  ;;  %v5654_v31 = vpop.f32.mrb[16].mxu0 }
 0x244   : > { %6505 = vxpose.xlu0.b32.cont [3/4] (short) (narrow) %v6504_v32, 64 }
 0x248   : > { %6507 = vxpose.xlu0.b32.end [4/4] (short) (narrow) %v6506_v33, 64 }
 0x255   : > { %v7746_v29 = vpop.f32.mrb[8].mxu1 }
 0x281   : > { %2197 = vrot.lane.b32.xlu0 %v7718_v4, %s7381_s24 }
 0x293   : > { %v6482_v9 = vpop.permute.xlu1 %6481 }
 0x294   : > { %v6483_v38 = vunpack.i.l.bf16 %v6482_v9  ;;  %v6484_v15 = vunpack.i.h.bf16 %v6482_v9  ;;  %v7748_v9 = vpop.f32.mrb[9].mxu1 }
 0x296   : > { %v6548_v39 = vpack.i.bf16 %v6483_v38, %v1952_v6  ;;  %v6550_v42 = vpack.i.bf16 %v6484_v15, %v1956_v8  ;;  %v5655_v38 = vpop.f32.mrb[17].mxu0 }
 0x297   : > { %v6487_v40 = vpop.permute.xlu1 %6486 }
 0x298   : > { %6549 = vxpose.xlu1.b32.start [1/4] (short) (narrow) %v6548_v39, 64  ;;  %v6488_v41 = vunpack.i.l.bf16 %v6487_v40  ;;  %v6489_v44 = vunpack.i.h.bf16 %v6487_v40  ;;  %v7750_v39 = vpop.f32.mrb[10].mxu1  ;;  %v5656_v40 = vadd.f32 %v5655_v38, %v5654_v31 }
 0x29a   : > { %v6596_v45 = vpack.i.bf16 %v6488_v41, %v1954_v7  ;;  %v6598_v51 = vpack.i.bf16 %v6489_v44, %v1958_v11  ;;  %v7752_v41 = vpop.f32.mrb[11].mxu1 }
 0x29b   : > { %v6492_v23 = vpop.permute.xlu1 %6491  ;;  %v6654_v44 = vpack.i.bf16 %v7752_v41, %v7748_v9 }
 0x29c   : > { %v6493_v43 = vunpack.i.l.bf16 %v6492_v23  ;;  %6551 = vxpose.xlu1.b32.cont [2/4] (short) (narrow) %v6550_v42, 64  ;;  %v6494_v46 = vunpack.i.h.bf16 %v6492_v23  ;;  %v5657_v42 = vpop.f32.mrb[18].mxu0  ;;  %v6644_v23 = vpack.i.bf16 %v7750_v39, %v7746_v29 }
 0x29e   : > { %v6552_v47 = vpack.i.bf16 %v6493_v43, %v1962_v13  ;;  %v6554_v53 = vpack.i.bf16 %v6494_v46, %v1966_v16  ;;  %v7758_v43 = vpack.c.bf16 %v7750_v39, %v7746_v29  ;;  %v5658_v46 = vpop.f32.mrb[19].mxu0 }
 0x29f   : > { %6597 = vxpose.xlu0.b32.start [1/4] (short) (narrow) %v6596_v45, 64  ;;  %v6497_v49 = vpop.permute.xlu1 %6496  ;;  %v7762_v45 = vpop.f32.mrb[12].mxu1 }
 0x2a0   : > { %6553 = vxpose.xlu1.b32.cont [3/4] (short) (narrow) %v6552_v47, 64  ;;  %v6498_v52 = vunpack.i.l.bf16 %v6497_v49  ;;  %v6499_v48 = vunpack.i.h.bf16 %v6497_v49  ;;  %v7768_v47 = vpack.c.bf16 %v7752_v41, %v7748_v9  ;;  %v7770_v49 = vpop.f32.mrb[13].mxu1 }
 0x2a2   : > { %v6600_v59 = vpack.i.bf16 %v6498_v52, %v1964_v14  ;;  %v6602_v60 = vpack.i.bf16 %v6499_v48, %v1968_v18  ;;  %v5660_v52 = vpop.f32.mrb[20].mxu0 }
 0x2a3   : > { %6599 = vxpose.xlu0.b32.cont [2/4] (short) (narrow) %v6598_v51, 64  ;;  %v5659_v51 = vadd.f32 %v5658_v46, %v5657_v42 }
 0x2a4   : > { %6555 = vxpose.xlu1.b32.end [4/4] (short) (narrow) %v6554_v53, 64 }
 0x2a7   : > { %6601 = vxpose.xlu0.b32.cont [3/4] (short) (narrow) %v6600_v59, 64 }
 0x2ab   : > { %6603 = vxpose.xlu0.b32.end [4/4] (short) (narrow) %v6602_v60, 64  ;;  %v7772_v60 = vpop.f32.mrb[14].mxu1 }
 0x2bc   : > { %v6508_v63 = vpop.trf.xlu0 }
 0x2bd   : > { %v6512_v3 = vunpack.i.h.bf16 %v6508_v63  ;;  %v6509_v5 = vunpack.i.l.bf16 %v6508_v63 }
 0x2c0   : > { %v6513_v6 = vpop.trf.xlu0 }
 0x2c1   : > { %v6517_v7 = vunpack.i.h.bf16 %v6513_v6  ;;  %v6514_v8 = vunpack.i.l.bf16 %v6513_v6  ;;  %v5661_v6 = vpop.f32.mrb[21].mxu0 }
 0x2c3   : > { %v6140_v10 = vpack.c.bf16 %v6517_v7, %v6512_v3  ;;  %v6156_v12 = vpack.c.bf16 %v6514_v8, %v6509_v5  ;;  %v7774_v5 = vpop.f32.mrb[15].mxu1  ;;  %v6649_v7 = vpack.i.bf16 %v7772_v60, %v7762_v45  ;;  %v7780_v8 = vpack.c.bf16 %v7772_v60, %v7762_v45 }
 0x2c4   : > { %v6518_v13 = vpop.trf.xlu0 }
 0x2c5   : > { %6141 = vmatprep.subr.bf16.mxu0 %v6140_v10  ;;  %6157 = vmatprep.subr.bf16.mxu1 %v6156_v12  ;;  %v6522_v11 = vunpack.i.h.bf16 %v6518_v13  ;;  %v6519_v16 = vunpack.i.l.bf16 %v6518_v13  ;;  %v5850_v13 = vpop.f32.mrb[16].mxu1 }
 0x2c6   : > { %6143 = vmatpush3.bf16.msra.mxu0 %v6140_v10  ;;  %6159 = vmatpush3.bf16.msra.mxu1 %v6156_v12  ;;  %v6659_v10 = vpack.i.bf16 %v7774_v5, %v7770_v49  ;;  %v7786_v12 = vpack.c.bf16 %v7774_v5, %v7770_v49 }
 0x2c8   : > { %v6523_v17 = vpop.trf.xlu0 }
 0x2c9   : > { %v6527_v14 = vunpack.i.h.bf16 %v6523_v17  ;;  %v6524_v50 = vunpack.i.l.bf16 %v6523_v17 }
 0x2cb   : > { %v6144_v18 = vpack.c.bf16 %v6527_v14, %v6522_v11  ;;  %v6160_v19 = vpack.c.bf16 %v6524_v50, %v6519_v16  ;;  %v5663_v11 = vpop.f32.mrb[22].mxu0  ;;  %v2160_v14 = vpop.f32.mrb[17].mxu1  ;;  %v5662_v50 = vadd.f32 %v5661_v6, %v5660_v52 }
 0x2cc   : > { %v6528_v21 = vpop.trf.xlu0 }
 0x2cd   : > { %6145 = vmatprep.subr.bf16.mxu0 %v6144_v18  ;;  %6161 = vmatprep.subr.bf16.mxu1 %v6160_v19  ;;  %v6532_v22 = vunpack.i.h.bf16 %v6528_v21  ;;  %v6529_v24 = vunpack.i.l.bf16 %v6528_v21  ;;  %v5851_v21 = vpop.f32.mrb[18].mxu1 }
 0x2ce   : > { %6147 = vmatpush3.bf16.msra.mxu0 %v6144_v18  ;;  %6163 = vmatpush3.bf16.msra.mxu1 %v6160_v19  ;;  %v5664_v18 = vpop.f32.mrb[23].mxu0  ;;  %v7790_v19 = vadd.f32 %v5656_v40, %v2160_v14 }
 0x2d0   : > { %v6533_v25 = vpop.trf.xlu0 }
 0x2d1   : > { %v6537_v27 = vunpack.i.h.bf16 %v6533_v25  ;;  %v6534_v28 = vunpack.i.l.bf16 %v6533_v25  ;;  %v7792_v25 = vadd.f32 %v5850_v13, %v5662_v50 }
 0x2d2   : > { %2203 = vrot.lane.b32.xlu1 %v7687_v54, %s7381_s24 }
 0x2d3   : > { %v6148_v32 = vpack.c.bf16 %v6537_v27, %v6532_v22  ;;  %v6164_v33 = vpack.c.bf16 %v6534_v28, %v6529_v24  ;;  %v5665_v22 = vadd.f32 %v5664_v18, %v5663_v11  ;;  %v2163_v24 = vpop.f32.mrb[19].mxu1 }
 0x2d4   : > { %v6538_v15 = vpop.trf.xlu0  ;;  %v7794_v27 = vadd.f32 %v5659_v51, %v2163_v24 }
 0x2d5   : > { %6149 = vmatprep.subr.bf16.mxu0 %v6148_v32  ;;  %6165 = vmatprep.subr.bf16.mxu1 %v6164_v33  ;;  %v6542_v53 = vunpack.i.h.bf16 %v6538_v15  ;;  %v6539_v48 = vunpack.i.l.bf16 %v6538_v15  ;;  %v7796_v28 = vadd.f32 %v5851_v21, %v5665_v22 }
 0x2d6   : > { %6151 = vmatpush3.bf16.msra.mxu0 %v6148_v32  ;;  %6167 = vmatpush3.bf16.msra.mxu1 %v6164_v33  ;;  %v6664_v31 = vpack.i.bf16 %v7794_v27, %v7790_v19  ;;  %v7804_v32 = vpack.c.bf16 %v7794_v27, %v7790_v19 }
 0x2d7   : > { %2205 = vrot.lane.b32.xlu1 %v7695_v58, %s7381_s24 }
 0x2d8   : > { %v6543_v59 = vpop.trf.xlu0 }
 0x2d9   : > { %v6547_v63 = vunpack.i.h.bf16 %v6543_v59  ;;  %v6544_v3 = vunpack.i.l.bf16 %v6543_v59 }
 0x2db   : > { %2207 = vrot.lane.b32.xlu1 %v7707_v62, %s7381_s24  ;;  %v6152_v16 = vpack.c.bf16 %v6547_v63, %v6542_v53  ;;  %v6168_v17 = vpack.c.bf16 %v6544_v3, %v6539_v48 }
 0x2dd   : > { %6153 = vmatprep.subr.bf16.mxu0 %v6152_v16  ;;  %6169 = vmatprep.subr.bf16.mxu1 %v6168_v17 }
 0x2de   : > { %6155 = vmatpush3.bf16.msra.mxu0 %v6152_v16  ;;  %6171 = vmatpush3.bf16.msra.mxu1 %v6168_v17 }
 0x2df   : > { %2209 = vrot.lane.b32.xlu1 %v7714_v2, %s7381_s24 }
 0x2e1   : > { %5869 = vmatmul.mubr.msk.f32.vlgmr.msra.gmra.mrb[24].mxu0 %vm2503_vm0, %v7693_v57  ;;  %5891 = vmatmul.mubr.msk.f32.vlgmr.msra.gmra.mrb[20].mxu1 %vm2503_vm0, %v7734_v34 }
 0x2e2   : > { %5871 = vmatprep.mubr.msk.f32.mxu0 %vm2503_vm0, %v7705_v61  ;;  %5893 = vmatprep.mubr.msk.f32.mxu1 %vm2503_vm0, %v7740_v36 }
 0x2e5   : > { %5872 = vmatmul.mubr.msk.f32.gmra.mrb[26].mxu0 %vm2503_vm0, %v7712_v1  ;;  %5894 = vmatmul.mubr.msk.f32.gmra.mrb[22].mxu1 %vm2503_vm0, %v7742_v37 }
 0x2e6   : > { %5912 = vmatprep.mubr.msk.f32.mxu0 %vm2503_vm0, %v7690_v55  ;;  %5934 = vmatprep.mubr.msk.f32.mxu1 %vm2503_vm0, %v7730_v20 }
 0x2f3   : > { %v7822_v34 = vpop.permute.xlu0 %2197 }
 0x318   : > { %v6556_v57 = vpop.trf.xlu1 }
 0x319   : > { %v6560_v33 = vunpack.i.h.bf16 %v6556_v57  ;;  %v6557_v61 = vunpack.i.l.bf16 %v6556_v57 }
 0x31c   : > { %v6561_v38 = vpop.trf.xlu1 }
 0x31d   : > { %v6565_v15 = vunpack.i.h.bf16 %v6561_v38  ;;  %v6562_v36 = vunpack.i.l.bf16 %v6561_v38 }
 0x31f   : > { %v6604_v40 = vpop.trf.xlu0  ;;  %v6172_v42 = vpack.c.bf16 %v6562_v36, %v6557_v61  ;;  %v6188_v1 = vpack.c.bf16 %v6565_v15, %v6560_v33  ;;  %v6669_v15 = vpack.i.bf16 %v7796_v28, %v7792_v25  ;;  %v7828_v36 = vpack.c.bf16 %v7796_v28, %v7792_v25 }
 0x320   : > { %v6566_v46 = vpop.trf.xlu1  ;;  %v6608_v24 = vunpack.i.h.bf16 %v6604_v40  ;;  %v6605_v57 = vunpack.i.l.bf16 %v6604_v40 }
 0x321   : > { %6173 = vmatprep.subr.bf16.mxu0 %v6172_v42  ;;  %6189 = vmatprep.subr.bf16.mxu1 %v6188_v1  ;;  %v6570_v55 = vunpack.i.h.bf16 %v6566_v46  ;;  %v6567_v37 = vunpack.i.l.bf16 %v6566_v46 }
 0x322   : > { %6175 = vmatpush3.bf16.msra.mxu0 %v6172_v42  ;;  %6191 = vmatpush3.bf16.msra.mxu1 %v6188_v1 }
 0x323   : > { %v6609_v51 = vpop.trf.xlu0 }
 0x324   : > { %v6571_v20 = vpop.trf.xlu1  ;;  %v6613_v42 = vunpack.i.h.bf16 %v6609_v51  ;;  %v6610_v1 = vunpack.i.l.bf16 %v6609_v51 }
 0x325   : > { %v6575_v52 = vunpack.i.h.bf16 %v6571_v20  ;;  %v6572_v53 = vunpack.i.l.bf16 %v6571_v20 }
 0x327   : > { %v6614_v48 = vpop.trf.xlu0  ;;  %v6176_v59 = vpack.c.bf16 %v6572_v53, %v6567_v37  ;;  %v6192_v63 = vpack.c.bf16 %v6575_v52, %v6570_v55 }
 0x328   : > { %v6576_v3 = vpop.trf.xlu1  ;;  %v6618_v20 = vunpack.i.h.bf16 %v6614_v48  ;;  %v6615_v52 = vunpack.i.l.bf16 %v6614_v48 }
 0x329   : > { %6177 = vmatprep.subr.bf16.mxu0 %v6176_v59  ;;  %6193 = vmatprep.subr.bf16.mxu1 %v6192_v63  ;;  %v6580_v6 = vunpack.i.h.bf16 %v6576_v3  ;;  %v6577_v13 = vunpack.i.l.bf16 %v6576_v3 }
 0x32a   : > { %6179 = vmatpush3.bf16.msra.mxu0 %v6176_v59  ;;  %6195 = vmatpush3.bf16.msra.mxu1 %v6192_v63 }
 0x32b   : > { %v6619_v11 = vpop.trf.xlu0 }
 0x32c   : > { %v6581_v16 = vpop.trf.xlu1  ;;  %v6623_v63 = vunpack.i.h.bf16 %v6619_v11  ;;  %v6620_v3 = vunpack.i.l.bf16 %v6619_v11 }
 0x32d   : > { %v6585_v17 = vunpack.i.h.bf16 %v6581_v16  ;;  %v6582_v14 = vunpack.i.l.bf16 %v6581_v16 }
 0x32e   : > { %v6224_v48 = vpack.c.bf16 %v6623_v63, %v6618_v20 }
 0x32f   : > { %v6180_v50 = vpack.c.bf16 %v6582_v14, %v6577_v13  ;;  %v6196_v18 = vpack.c.bf16 %v6585_v17, %v6580_v6  ;;  %v6624_v21 = vpop.trf.xlu0  ;;  %v6204_v6 = vpack.c.bf16 %v6610_v1, %v6605_v57  ;;  %v6220_v13 = vpack.c.bf16 %v6613_v42, %v6608_v24  ;;  %v7871_v1 = vld [vmem:[#allocation8 + $0x18] sm:$0xff] }
 0x330   : > { %v6586_v22 = vpop.trf.xlu1  ;;  %v6628_v16 = vunpack.i.h.bf16 %v6624_v21  ;;  %v6625_v17 = vunpack.i.l.bf16 %v6624_v21 }
 0x331   : > { %6181 = vmatprep.subr.bf16.mxu0 %v6180_v50  ;;  %6197 = vmatprep.subr.bf16.mxu1 %v6196_v18  ;;  %v6590_v33 = vunpack.i.h.bf16 %v6586_v22  ;;  %v6587_v61 = vunpack.i.l.bf16 %v6586_v22 }
 0x332   : > { %6183 = vmatpush3.bf16.msra.mxu0 %v6180_v50  ;;  %6199 = vmatpush3.bf16.msra.mxu1 %v6196_v18  ;;  %v6208_v18 = vpack.c.bf16 %v6620_v3, %v6615_v52 }
 0x333   : > { %v6629_v38 = vpop.trf.xlu0 }
 0x334   : > { %v6591_v46 = vpop.trf.xlu1  ;;  %v6633_v51 = vunpack.i.h.bf16 %v6629_v38  ;;  %v6630_v14 = vunpack.i.l.bf16 %v6629_v38 }
 0x335   : > { %v6595_v55 = vunpack.i.h.bf16 %v6591_v46  ;;  %v6592_v37 = vunpack.i.l.bf16 %v6591_v46 }
 0x336   : > { %v6212_v11 = vpack.c.bf16 %v6630_v14, %v6625_v17  ;;  %v6228_v21 = vpack.c.bf16 %v6633_v51, %v6628_v16 }
 0x337   : > { %v6184_v40 = vpack.c.bf16 %v6592_v37, %v6587_v61  ;;  %v6200_v53 = vpack.c.bf16 %v6595_v55, %v6590_v33  ;;  %v6634_v59 = vpop.trf.xlu0  ;;  %v7861_v61 = vld [vmem:[#allocation8] sm:$0xff] }
 0x338   : > { %v6638_v22 = vunpack.i.h.bf16 %v6634_v59  ;;  %v6635_v24 = vunpack.i.l.bf16 %v6634_v59 }
 0x339   : > { %6185 = vmatprep.subr.bf16.mxu0 %v6184_v40  ;;  %6201 = vmatprep.subr.bf16.mxu1 %v6200_v53 }
 0x33a   : > { %6187 = vmatpush3.bf16.msra.mxu0 %v6184_v40  ;;  %6203 = vmatpush3.bf16.msra.mxu1 %v6200_v53  ;;  %v7878_v53 = vld [vmem:[#allocation8 + $0x10] sm:$0xff] }
 0x33b   : > { %6205 = vmatprep.subr.bf16.mxu0 %v6204_v6  ;;  %6221 = vmatprep.subr.bf16.mxu1 %v6220_v13  ;;  %v6639_v50 = vpop.trf.xlu0 }
 0x33c   : > { %v6643_v57 = vunpack.i.h.bf16 %v6639_v50  ;;  %v6640_v33 = vunpack.i.l.bf16 %v6639_v50 }
 0x33d   : > { %5913 = vmatmul.mubr.msk.f32.vlgmr.msra.gmra.mrb[28].mxu0 %vm2503_vm0, %v7699_v56  ;;  %5935 = vmatmul.mubr.msk.f32.vlgmr.msra.gmra.mrb[24].mxu1 %vm2503_vm0, %v7738_v35 }
 0x33e   : > { %5915 = vmatprep.mubr.msk.f32.mxu0 %vm2503_vm0, %v7710_v0  ;;  %5937 = vmatprep.mubr.msk.f32.mxu1 %vm2503_vm0, %v7732_v26  ;;  %v6216_v0 = vpack.c.bf16 %v6640_v33, %v6635_v24  ;;  %v6232_v26 = vpack.c.bf16 %v6643_v57, %v6638_v22 }
 0x33f   : > { %6207 = vmatpush3.bf16.msra.mxu0 %v6204_v6  ;;  %6223 = vmatpush3.bf16.msra.mxu1 %v6220_v13 }
 0x340   : > { %6209 = vmatprep.subr.bf16.mxu0 %v6208_v18  ;;  %6225 = vmatprep.subr.bf16.mxu1 %v6224_v48 }
 0x341   : > { %5916 = vmatmul.mubr.msk.f32.gmra.mrb[30].mxu0 %vm2503_vm0, %v7718_v4  ;;  %5938 = vmatmul.mubr.msk.f32.gmra.mrb[26].mxu1 %vm2503_vm0, %v7822_v34 }
 0x342   : > { %5956 = vmatprep.mubr.msk.f32.mxu0 %vm2503_vm0, %v7687_v54 }
 0x343   : > { %6211 = vmatpush3.bf16.msra.mxu0 %v6208_v18  ;;  %6227 = vmatpush3.bf16.msra.mxu1 %v6224_v48 }
 0x344   : > { %v2204_v56 = vpop.permute.xlu1 %2203  ;;  %6213 = vmatprep.subr.bf16.mxu0 %v6212_v11  ;;  %6229 = vmatprep.subr.bf16.mxu1 %v6228_v21 }
 0x345   : > { %5978 = vmatprep.mubr.msk.f32.mxu1 %vm2503_vm0, %v2204_v56 }
 0x347   : > { %6215 = vmatpush3.bf16.msra.mxu0 %v6212_v11  ;;  %6231 = vmatpush3.bf16.msra.mxu1 %v6228_v21 }
 0x348   : > { %6217 = vmatprep.subr.bf16.mxu0 %v6216_v0  ;;  %6233 = vmatprep.subr.bf16.mxu1 %v6232_v26 }
 0x349   : > { %v2206_v4 = vpop.permute.xlu1 %2205 }
 0x34b   : > { %6219 = vmatpush3.bf16.msra.mxu0 %v6216_v0  ;;  %6235 = vmatpush3.bf16.msra.mxu1 %v6232_v26 }
 0x34c   : > { %6237 = vmatprep.subr.bf16.mxu0 %v7758_v43 }
 0x34d   : > { %v2208_v35 = vpop.permute.xlu1 %2207 }
 0x34e   : > { %5957 = vmatmul.mubr.msk.f32.vlgmr.msra.gmra.mrb[32].mxu0 %vm2503_vm0, %v7695_v58  ;;  %5979 = vmatmul.mubr.msk.f32.vlgmr.msra.gmra.mrb[28].mxu1 %vm2503_vm0, %v2206_v4  ;;  %v7859_v58 = vld [vmem:[#allocation8 + $0x8] sm:$0xff] }
 0x34f   : > { %5959 = vmatprep.mubr.msk.f32.mxu0 %vm2503_vm0, %v7707_v62  ;;  %5981 = vmatprep.mubr.msk.f32.mxu1 %vm2503_vm0, %v2208_v35 }
 0x350   : > { %6239 = vmatpush3.bf16.msra.mxu0 %v7758_v43 }
 0x351   : > { %v2210_v54 = vpop.permute.xlu1 %2209  ;;  %6241 = vmatprep.subr.bf16.mxu0 %v7780_v8 }
 0x352   : > { %5960 = vmatmul.mubr.msk.f32.gmra.mrb[34].mxu0 %vm2503_vm0, %v7714_v2  ;;  %5982 = vmatmul.mubr.msk.f32.gmra.mrb[30].mxu1 %vm2503_vm0, %v2210_v54 }
 0x354   : > { %6243 = vmatpush3.bf16.msra.mxu0 %v7780_v8 }
 0x355   : > { %6253 = vmatprep.subr.bf16.mxu0 %v7768_v47 }
 0x3b4   : > { %v5870_v34 = vpop.f32.mrb[24].mxu0  ;;  %v5892_v62 = vpop.f32.mrb[20].mxu1 }
 0x3b5   : > { %v7864_v43 = vadd.f32 %v5870_v34, %v7859_v58  ;;  %v2578_v38 = vpop.f32.mrb[25].mxu0  ;;  %v2671_v42 = vpop.f32.mrb[21].mxu1 }
 0x3b6   : > { %v7867_v2 = vadd.f32 %v2578_v38, %v7861_v61  ;;  %v7920_v38 = vadd.f32 %v5892_v62, %v7859_v58 }
 0x3b7   : > { %v3066_v8 = vsel %vm3062_vm1, %v7864_v43, -inf }
 0x3b8   : > { %v5895_v46 = vpop.f32.mrb[22].mxu1  ;;  %3067 = vmax.xlane.f32.xlu1 %v3066_v8  ;;  %v5873_v55 = vpop.f32.mrb[26].mxu0  ;;  %v3063_v40 = vsel %vm3062_vm1, %v7867_v2, -inf  ;;  %v3078_v62 = vsel %vm3062_vm1, %v7920_v38, -inf }
 0x3b9   : > { %v2588_v37 = vpop.f32.mrb[27].mxu0  ;;  %v2681_v20 = vpop.f32.mrb[23].mxu1  ;;  %v7874_v52 = vadd.f32 %v5873_v55, %v7871_v1  ;;  %v7925_v55 = vadd.f32 %v2671_v42, %v7861_v61 }
 0x3ba   : > { %v7881_v59 = vadd.f32 %v2588_v37, %v7878_v53 }
 0x3bb   : > { %v3072_v63 = vsel %vm3062_vm1, %v7874_v52, -inf  ;;  %v3075_v42 = vsel %vm3062_vm1, %v7925_v55, -inf }
 0x3bc   : > { %3064 = vmax.xlane.f32.xlu1 %v3063_v40  ;;  %v3069_v3 = vsel %vm3062_vm1, %v7881_v59, -inf }
 0x3c0   : > { %3073 = vmax.xlane.f32.xlu1 %v3072_v63 }
 0x3c4   : > { %3070 = vmax.xlane.f32.xlu1 %v3069_v3 }
 0x410   : > { %v5914_v6 = vpop.f32.mrb[28].mxu0  ;;  %v5936_v13 = vpop.f32.mrb[24].mxu1 }
 0x411   : > { %v7888_v16 = vadd.f32 %v5914_v6, %v7859_v58  ;;  %v2764_v17 = vpop.f32.mrb[29].mxu0  ;;  %v7890_v51 = vpop.f32.mrb[25].mxu1 }
 0x412   : > { %v7893_v14 = vadd.f32 %v2764_v17, %v7861_v61 }
 0x413   : > { %v3090_v50 = vsel %vm3062_vm1, %v7888_v16, -inf }
 0x414   : > { %v5917_v18 = vpop.f32.mrb[30].mxu0  ;;  %v5939_v48 = vpop.f32.mrb[26].mxu1  ;;  %3091 = vmax.xlane.f32.xlu1 %v3090_v50  ;;  %v3087_v24 = vsel %vm3062_vm1, %v7893_v14, -inf }
 0x415   : > { %v2774_v11 = vpop.f32.mrb[31].mxu0  ;;  %v7897_v21 = vpop.f32.mrb[27].mxu1  ;;  %v7900_v22 = vadd.f32 %v5917_v18, %v7871_v1 }
 0x416   : > { %v7905_v57 = vadd.f32 %v2774_v11, %v7878_v53  ;;  %v7942_v11 = vadd.f32 %v5895_v46, %v7871_v1 }
 0x417   : > { %v3096_v33 = vsel %vm3062_vm1, %v7900_v22, -inf }
 0x418   : > { %3088 = vmax.xlane.f32.xlu1 %v3087_v24  ;;  %v3093_v56 = vsel %vm3062_vm1, %v7905_v57, -inf }
 0x41c   : > { %3097 = vmax.xlane.f32.xlu1 %v3096_v33  ;;  %v7947_v33 = vadd.f32 %v2681_v20, %v7878_v53 }
 0x420   : > { %3094 = vmax.xlane.f32.xlu1 %v3093_v56  ;;  %v3084_v56 = vsel %vm3062_vm1, %v7942_v11, -inf }
 0x421   : > { %v5958_v0 = vpop.f32.mrb[32].mxu0  ;;  %v7911_v26 = vpop.f32.mrb[28].mxu1 }
 0x422   : > { %v7914_v4 = vadd.f32 %v5958_v0, %v7859_v58  ;;  %v2950_v35 = vpop.f32.mrb[33].mxu0  ;;  %v3043_v54 = vpop.f32.mrb[29].mxu1  ;;  %v3081_v0 = vsel %vm3062_vm1, %v7947_v33, -inf }
 0x423   : > { %v7917_v34 = vadd.f32 %v2950_v35, %v7861_v61 }
 0x424   : > { %v3114_v8 = vsel %vm3062_vm1, %v7914_v4, -inf }
 0x425   : > { %v5983_v37 = vpop.f32.mrb[30].mxu1  ;;  %3115 = vmax.xlane.f32.xlu0 %v3114_v8  ;;  %v5961_v40 = vpop.f32.mrb[34].mxu0  ;;  %v3111_v63 = vsel %vm3062_vm1, %v7917_v34, -inf }
 0x426   : > { %v2960_v3 = vpop.f32.mrb[35].mxu0  ;;  %v3053_v6 = vpop.f32.mrb[31].mxu1  ;;  %3112 = vmax.xlane.f32.xlu1 %v3111_v63  ;;  %v7930_v17 = vadd.f32 %v5961_v40, %v7871_v1 }
 0x427   : > { %v7935_v50 = vadd.f32 %v2960_v3, %v7878_v53  ;;  %v7961_v3 = vadd.f32 %v5936_v13, %v7859_v58 }
 0x428   : > { %v3120_v18 = vsel %vm3062_vm1, %v7930_v17, -inf }
 0x429   : > { %3079 = vmax.xlane.f32.xlu0 %v3078_v62  ;;  %v3117_v24 = vsel %vm3062_vm1, %v7935_v50, -inf  ;;  %v3102_v39 = vsel %vm3062_vm1, %v7961_v3, -inf }
 0x42a   : > { %3076 = vmax.xlane.f32.xlu1 %v3075_v42 }
 0x42d   : > { %3121 = vmax.xlane.f32.xlu0 %v3120_v18 }
 0x42e   : > { %3118 = vmax.xlane.f32.xlu1 %v3117_v24 }
 0x432   : > { %3085 = vmax.xlane.f32.xlu1 %v3084_v56 }
 0x436   : > { %3082 = vmax.xlane.f32.xlu1 %v3081_v0 }
 0x445   : > { %v3068_v35 = vpop.xlane.xlu1 %3067 }
 0x446   : > { %v3136_v46 = vsub.f32 %v7864_v43, %v3068_v35  ;;  %v7967_v43 = vadd.f32 %v5939_v48, %v7871_v1  ;;  %v7978_v48 = vadd.f32 %v7890_v51, %v7861_v61  ;;  %v7988_v35 = vadd.f32 %v7897_v21, %v7878_v53 }
 0x447   : > { %6645 = vrot.lane.b32.xlu1 %v6644_v23, %s7381_s24  ;;  %v7997_v51 = vadd.f32 %v3043_v54, %v7861_v61 }
 0x448   : > { %v3161_v8 = vmul.f32 1.442695, %v3136_v46  ;;  %v3108_v13 = vsel %vm3062_vm1, %v7967_v43, -inf  ;;  %v3099_v0 = vsel %vm3062_vm1, %v7978_v48, -inf }
 0x449   : > { %v3065_v20 = vpop.xlane.xlu1 %3064  ;;  %v3123_v21 = vsel %vm3062_vm1, %v7997_v51, -inf }
 0x44a   : > { %7082 = vpow2.f32 %v3161_v8  ;;  %v3135_v62 = vsub.f32 %v7867_v2, %v3065_v20  ;;  %v3105_v8 = vsel %vm3062_vm1, %v7988_v35, -inf  ;;  %v8002_v20 = vadd.f32 %v5983_v37, %v7871_v1 }
 0x44b   : > { %v8018_v1 = vadd.f32 %v7911_v26, %v7859_v58 }
 0x44c   : > { %v3159_v29 = vmul.f32 1.442695, %v3135_v62  ;;  %v3132_v45 = vsel %vm3062_vm1, %v8002_v20, -inf }
 0x44d   : > { %v3074_v63 = vpop.xlane.xlu1 %3073 }
 0x44e   : > { %7084 = vpow2.f32 %v3159_v29  ;;  %v3138_v62 = vsub.f32 %v7874_v52, %v3074_v63 }
 0x450   : > { %v3165_v60 = vmul.f32 1.442695, %v3138_v62 }
 0x451   : > { %v3071_v23 = vpop.xlane.xlu1 %3070 }
 0x452   : > { %v3137_v18 = vsub.f32 %v7881_v59, %v3071_v23 }
 0x454   : > { %v7958_v40 = vpop.eup %7082  ;;  %v3163_v2 = vmul.f32 1.442695, %v3137_v18 }
 0x455   : > { %v3210_v42 = vsel %vm3062_vm1, %v7958_v40, 0.0 }
 0x456   : > { %3211 = vadd.xlane.f32.xlu0 %v3210_v42  ;;  %7086 = vpow2.f32 %v3163_v2  ;;  %v8008_v42 = vadd.f32 %v3053_v6, %v7878_v53  ;;  %v3126_v53 = vsel %vm3062_vm1, %v8018_v1, -inf }
 0x457   : > { %7088 = vpow2.f32 %v3165_v60 }
 0x458   : > { %v7974_v24 = vpop.eup %7084 }
 0x459   : > { %v3207_v56 = vsel %vm3062_vm1, %v7974_v24, 0.0 }
 0x45a   : > { %3103 = vmax.xlane.f32.xlu0 %v3102_v39 }
 0x45e   : > { %3109 = vmax.xlane.f32.xlu0 %v3108_v13 }
 0x460   : > { %v7984_v59 = vpop.eup %7086 }
 0x461   : > { %v3213_v46 = vsel %vm3062_vm1, %v7984_v59, 0.0  ;;  %v8014_v61 = vpop.eup %7088 }
 0x462   : > { %v3216_v52 = vsel %vm3062_vm1, %v8014_v61, 0.0 }
 0x46b   : > { %3208 = vadd.xlane.f32.xlu1 %v3207_v56 }
 0x46f   : > { %3100 = vmax.xlane.f32.xlu1 %v3099_v0 }
 0x473   : > { %3214 = vadd.xlane.f32.xlu1 %v3213_v46 }
 0x474   : > { %6650 = vrot.lane.b32.xlu0 %v6649_v7, %s7381_s24  ;;  %v3129_v7 = vsel %vm3062_vm1, %v8008_v42, -inf }
 0x477   : > { %3106 = vmax.xlane.f32.xlu1 %v3105_v8 }
 0x47b   : > { %3124 = vmax.xlane.f32.xlu1 %v3123_v21 }
 0x47f   : > { %3133 = vmax.xlane.f32.xlu1 %v3132_v45 }
 0x483   : > { %3130 = vmax.xlane.f32.xlu1 %v3129_v7 }
 0x493   : > { %3217 = vadd.xlane.f32.xlu0 %v3216_v52 }
 0x497   : > { %3127 = vmax.xlane.f32.xlu0 %v3126_v53 }
 0x4a1   : > { %v3092_v54 = vpop.xlane.xlu1 %3091 }
 0x4a2   : > { %v3144_v37 = vsub.f32 %v7888_v16, %v3092_v54 }
 0x4a4   : > { %v3177_v6 = vmul.f32 1.442695, %v3144_v37 }
 0x4a5   : > { %v3089_v63 = vpop.xlane.xlu1 %3088 }
 0x4a6   : > { %7090 = vpow2.f32 %v3177_v6  ;;  %v3143_v29 = vsub.f32 %v7893_v14, %v3089_v63 }
 0x4a8   : > { %v3175_v39 = vmul.f32 1.442695, %v3143_v29 }
 0x4a9   : > { %v3098_v23 = vpop.xlane.xlu1 %3097 }
 0x4aa   : > { %7092 = vpow2.f32 %v3175_v39  ;;  %v3146_v58 = vsub.f32 %v7900_v22, %v3098_v23 }
 0x4ac   : > { %v3181_v26 = vmul.f32 1.442695, %v3146_v58 }
 0x4ad   : > { %v3095_v18 = vpop.xlane.xlu1 %3094 }
 0x4ae   : > { %7094 = vpow2.f32 %v3181_v26  ;;  %v3145_v13 = vsub.f32 %v7905_v57, %v3095_v18 }
 0x4b0   : > { %v8028_v2 = vpop.eup %7090  ;;  %v3179_v56 = vmul.f32 1.442695, %v3145_v13 }
 0x4b1   : > { %v3234_v16 = vsel %vm3062_vm1, %v8028_v2, 0.0 }
 0x4b2   : > { %7096 = vpow2.f32 %v3179_v56  ;;  %v3116_v0 = vpop.xlane.xlu0 %3115  ;;  %3235 = vadd.xlane.f32.xlu0 %v3234_v16 }
 0x4b3   : > { %v3152_v14 = vsub.f32 %v7914_v4, %v3116_v0  ;;  %v3113_v46 = vpop.xlane.xlu1 %3112 }
 0x4b4   : > { %v8033_v8 = vpop.eup %7092  ;;  %v3151_v22 = vsub.f32 %v7917_v34, %v3113_v46 }
 0x4b5   : > { %v3193_v21 = vmul.f32 1.442695, %v3152_v14  ;;  %v3231_v57 = vsel %vm3062_vm1, %v8033_v8, 0.0 }
 0x4b6   : > { %v3191_v62 = vmul.f32 1.442695, %v3151_v22  ;;  %v3080_v45 = vpop.xlane.xlu0 %3079  ;;  %3232 = vadd.xlane.f32.xlu1 %v3231_v57 }
 0x4b7   : > { %7098 = vpow2.f32 %v3193_v21  ;;  %v3140_v60 = vsub.f32 %v7920_v38, %v3080_v45  ;;  %v3077_v7 = vpop.xlane.xlu1 %3076 }
 0x4b8   : > { %v8039_v52 = vpop.eup %7094  ;;  %7100 = vpow2.f32 %v3191_v62  ;;  %v3139_v4 = vsub.f32 %v7925_v55, %v3077_v7 }
 0x4b9   : > { %v3169_v53 = vmul.f32 1.442695, %v3140_v60  ;;  %v3240_v34 = vsel %vm3062_vm1, %v8039_v52, 0.0 }
 0x4ba   : > { %v3167_v54 = vmul.f32 1.442695, %v3139_v4  ;;  %3241 = vadd.xlane.f32.xlu0 %v3240_v34  ;;  %v8076_v7 = vpop.xlane.xlu0 %3121 }
 0x4bb   : > { %7102 = vpow2.f32 %v3169_v53  ;;  %v8044_v37 = vpop.xlane.xlu1 %3118 }
 0x4bc   : > { %v8046_v6 = vpop.eup %7096  ;;  %7104 = vpow2.f32 %v3167_v54 }
 0x4bd   : > { %v3237_v38 = vsel %vm3062_vm1, %v8046_v6, 0.0 }
 0x4be   : > { %3238 = vadd.xlane.f32.xlu1 %v3237_v38 }
 0x4bf   : > { %v3086_v63 = vpop.xlane.xlu1 %3085 }
 0x4c0   : > { %v3142_v29 = vsub.f32 %v7942_v11, %v3086_v63 }
 0x4c1   : > { %v8051_v55 = vpop.eup %7098 }
 0x4c2   : > { %v8053_v39 = vpop.eup %7100  ;;  %v3173_v23 = vmul.f32 1.442695, %v3142_v29  ;;  %v3258_v58 = vsel %vm3062_vm1, %v8051_v55, 0.0 }
 0x4c3   : > { %3259 = vadd.xlane.f32.xlu0 %v3258_v58  ;;  %v3083_v26 = vpop.xlane.xlu1 %3082  ;;  %v3255_v18 = vsel %vm3062_vm1, %v8053_v39, 0.0 }
 0x4c4   : > { %7106 = vpow2.f32 %v3173_v23  ;;  %v3141_v13 = vsub.f32 %v7947_v33, %v3083_v26  ;;  %3256 = vadd.xlane.f32.xlu1 %v3255_v18 }
 0x4c5   : > { %v8060_v56 = vpop.eup %7102 }
 0x4c6   : > { %v3171_v11 = vmul.f32 1.442695, %v3141_v13  ;;  %v3222_v16 = vsel %vm3062_vm1, %v8060_v56, 0.0  ;;  %v8064_v0 = vpop.eup %7104 }
 0x4c7   : > { %3223 = vadd.xlane.f32.xlu0 %v3222_v16  ;;  %v6646_v14 = vpop.permute.xlu1 %6645  ;;  %v3219_v57 = vsel %vm3062_vm1, %v8064_v0, 0.0 }
 0x4c8   : > { %7108 = vpow2.f32 %v3171_v11  ;;  %v6648_v46 = vunpack.i.h.bf16 %v6646_v14  ;;  %v6647_v22 = vunpack.i.l.bf16 %v6646_v14 }
 0x4ca   : > { %v6244_v21 = vpack.c.bf16 %v6648_v46, %v6647_v22 }
 0x4cb   : > { %3220 = vadd.xlane.f32.xlu0 %v3219_v57 }
 0x4cc   : > { %6245 = vmatprep.subr.bf16.mxu1 %v6244_v21 }
 0x4cd   : > { %6247 = vmatpush3.bf16.msra.mxu1 %v6244_v21 }
 0x4ce   : > { %v8068_v33 = vpop.eup %7106 }
 0x4cf   : > { %v3228_v62 = vsel %vm3062_vm1, %v8068_v33, 0.0 }
 0x4d0   : > { %3229 = vadd.xlane.f32.xlu0 %v3228_v62 }
 0x4d2   : > { %v8072_v45 = vpop.eup %7108 }
 0x4d3   : > { %v3225_v60 = vsel %vm3062_vm1, %v8072_v45, 0.0 }
 0x4d4   : > { %3226 = vadd.xlane.f32.xlu1 %v3225_v60 }
 0x4e3   : > { %v3212_v4 = vpop.xlane.xlu0 %3211 }
 0x4e5   : > { %6655 = vrot.lane.b32.xlu1 %v6654_v44, %s7381_s24 }
 0x4e7   : > { %v3104_v53 = vpop.xlane.xlu0 %3103 }
 0x4e8   : > { %v3148_v34 = vsub.f32 %v7961_v3, %v3104_v53  ;;  %v3153_v3 = vsub.f32 %v7935_v50, %v8044_v37 }
 0x4ea   : > { %v3185_v54 = vmul.f32 1.442695, %v3148_v34  ;;  %v3195_v14 = vmul.f32 1.442695, %v3153_v3 }
 0x4eb   : > { %v3110_v38 = vpop.xlane.xlu0 %3109 }
 0x4ec   : > { %7110 = vpow2.f32 %v3185_v54  ;;  %v3150_v63 = vsub.f32 %v7967_v43, %v3110_v38 }
 0x4ee   : > { %v3189_v29 = vmul.f32 1.442695, %v3150_v63 }
 0x4ef   : > { %v6651_v23 = vpop.permute.xlu0 %6650 }
 0x4f0   : > { %7112 = vpow2.f32 %v3189_v29  ;;  %v6653_v58 = vunpack.i.h.bf16 %v6651_v23  ;;  %v6652_v26 = vunpack.i.l.bf16 %v6651_v23 }
 0x4f1   : > { %7114 = vrcp.f32 %v3212_v4 }
 0x4f2   : > { %v6248_v18 = vpack.c.bf16 %v6653_v58, %v6652_v26 }
 0x4f4   : > { %6249 = vmatprep.subr.bf16.mxu1 %v6248_v18 }
 0x4f5   : > { %6251 = vmatpush3.bf16.msra.mxu1 %v6248_v18 }
 0x4f6   : > { %v8084_v13 = vpop.eup %7110 }
 0x4f7   : > { %v3246_v9 = vsel %vm3062_vm1, %v8084_v13, 0.0 }
 0x4f8   : > { %v3209_v41 = vpop.xlane.xlu1 %3208  ;;  %3247 = vadd.xlane.f32.xlu0 %v3246_v9 }
 0x4f9   : > { %7116 = vrcp.f32 %v3209_v41 }
 0x4fa   : > { %v8088_v44 = vpop.eup %7112 }
 0x4fb   : > { %v3252_v43 = vsel %vm3062_vm1, %v8088_v44, 0.0  ;;  %v7115_v21 = vpop.eup %7114 }
 0x4fc   : > { %v3101_v11 = vpop.xlane.xlu1 %3100  ;;  %3253 = vadd.xlane.f32.xlu0 %v3252_v43  ;;  %v3304_v50 = vmul.f32 %v7115_v21, %v7958_v40 }
 0x4fd   : > { %v3147_v16 = vsub.f32 %v7978_v48, %v3101_v11 }
 0x4ff   : > { %v3183_v46 = vmul.f32 1.442695, %v3147_v16 }
 0x500   : > { %v3215_v22 = vpop.xlane.xlu1 %3214 }
 0x501   : > { %7118 = vpow2.f32 %v3183_v46 }
 0x502   : > { %7120 = vrcp.f32 %v3215_v22 }
 0x503   : > { %v7117_v57 = vpop.eup %7116  ;;  %7122 = vpow2.f32 %v3195_v14 }
 0x504   : > { %v3107_v62 = vpop.xlane.xlu1 %3106  ;;  %v3303_v60 = vmul.f32 %v7117_v57, %v7974_v24 }
 0x505   : > { %v3149_v37 = vsub.f32 %v7988_v35, %v3107_v62 }
 0x506   : > { %5992 = vmatprep.mubr.msk.f32.mxu0 %vm3062_vm1, %v3303_v60 }
 0x507   : > { %v3187_v4 = vmul.f32 1.442695, %v3149_v37  ;;  %5993 = vmatmul.mubr.msk.f32.vlgmr.msra.gmra.mrb[36].mxu0 %vm3062_vm1, %v3304_v50 }
 0x508   : > { %6255 = vmatpush3.bf16.msra.mxu0 %v7768_v47  ;;  %v3125_v48 = vpop.xlane.xlu1 %3124 }
 0x509   : > { %7124 = vpow2.f32 %v3187_v4  ;;  %6257 = vmatprep.subr.bf16.mxu0 %v7786_v12  ;;  %v3155_v53 = vsub.f32 %v7997_v51, %v3125_v48 }
 0x50b   : > { %v8103_v34 = vpop.eup %7118  ;;  %v3199_v24 = vmul.f32 1.442695, %v3155_v53 }
 0x50c   : > { %v7121_v54 = vpop.eup %7120  ;;  %6259 = vmatpush3.bf16.msra.mxu0 %v7786_v12  ;;  %v3134_v40 = vpop.xlane.xlu1 %3133  ;;  %v3243_v35 = vsel %vm3062_vm1, %v8103_v34, 0.0 }
 0x50d   : > { %v8108_v38 = vpop.eup %7122  ;;  %7126 = vpow2.f32 %v3199_v24  ;;  %6269 = vmatprep.subr.bf16.mxu0 %v7804_v32  ;;  %3244 = vadd.xlane.f32.xlu1 %v3243_v35  ;;  %v3305_v47 = vmul.f32 %v7121_v54, %v7984_v59  ;;  %v3158_v9 = vsub.f32 %v8002_v20, %v3134_v40 }
 0x50e   : > { %v3261_v63 = vsel %vm3062_vm1, %v8108_v38, 0.0 }
 0x50f   : > { %5995 = vmatprep.mubr.msk.f32.mxu0 %vm3062_vm1, %v3305_v47  ;;  %v3205_v43 = vmul.f32 1.442695, %v3158_v9 }
 0x510   : > { %v3131_v51 = vpop.xlane.xlu1 %3130 }
 0x511   : > { %v3157_v12 = vsub.f32 %v8008_v42, %v3131_v51  ;;  %3262 = vadd.xlane.f32.xlu1 %v3261_v63  ;;  %v3154_v42 = vsub.f32 %v7930_v17, %v8076_v7 }
 0x512   : > { %6660 = vrot.lane.b32.xlu0 %v6659_v10, %s7381_s24 }
 0x513   : > { %v8120_v29 = vpop.eup %7124  ;;  %v3203_v23 = vmul.f32 1.442695, %v3157_v12  ;;  %v3197_v49 = vmul.f32 1.442695, %v3154_v42 }
 0x514   : > { %v3249_v59 = vsel %vm3062_vm1, %v8120_v29, 0.0 }
 0x515   : > { %7128 = vpow2.f32 %v3203_v23  ;;  %3250 = vadd.xlane.f32.xlu1 %v3249_v59 }
 0x517   : > { %v8124_v58 = vpop.eup %7126 }
 0x518   : > { %v3267_v26 = vsel %vm3062_vm1, %v8124_v58, 0.0 }
 0x519   : > { %3268 = vadd.xlane.f32.xlu1 %v3267_v26 }
 0x51f   : > { %v8130_v18 = vpop.eup %7128 }
 0x520   : > { %v3218_v5 = vpop.xlane.xlu0 %3217  ;;  %v3273_v10 = vsel %vm3062_vm1, %v8130_v18, 0.0 }
 0x521   : > { %7130 = vrcp.f32 %v3218_v5  ;;  %3274 = vadd.xlane.f32.xlu1 %v3273_v10 }
 0x522   : > { %7132 = vpow2.f32 %v3197_v49 }
 0x524   : > { %v3128_v41 = vpop.xlane.xlu0 %3127 }
 0x525   : > { %v3156_v3 = vsub.f32 %v8018_v1, %v3128_v41 }
 0x527   : > { %v3201_v11 = vmul.f32 1.442695, %v3156_v3 }
 0x529   : > { %7134 = vpow2.f32 %v3201_v11 }
 0x52a   : > { %7136 = vpow2.f32 %v3205_v43 }
 0x52b   : > { %v7131_v16 = vpop.eup %7130 }
 0x52c   : > { %v3306_v17 = vmul.f32 %v7131_v16, %v8014_v61  ;;  %v8137_v7 = vpop.eup %7132 }
 0x52d   : > { %v3264_v14 = vsel %vm3062_vm1, %v8137_v7, 0.0 }
 0x52e   : > { %5996 = vmatmul.mubr.msk.f32.gmra.mrb[38].mxu0 %vm3062_vm1, %v3306_v17 }
 0x531   : > { %3265 = vadd.xlane.f32.xlu0 %v3264_v14 }
 0x532   : > { %6665 = vrot.lane.b32.xlu1 %v6664_v31, %s7381_s24 }
 0x533   : > { %v8146_v20 = vpop.eup %7134 }
 0x534   : > { %v3270_v1 = vsel %vm3062_vm1, %v8146_v20, 0.0  ;;  %v8150_v46 = vpop.eup %7136 }
 0x535   : > { %3271 = vadd.xlane.f32.xlu0 %v3270_v1  ;;  %v3276_v61 = vsel %vm3062_vm1, %v8150_v46, 0.0 }
 0x539   : > { %3277 = vadd.xlane.f32.xlu0 %v3276_v61  ;;  %v6986_v61 = vld [vmem:[#allocation7 + $0x60] ss:$12 sps:$4 sm:$0xff]  }
 0x53f   : > { %v3236_v22 = vpop.xlane.xlu0 %3235 }
 0x540   : > { %7138 = vrcp.f32 %v3236_v22  ;;  %v6988_v22 = vld [vmem:[#allocation7 + $0x64] ss:$12 sps:$4 sm:$0xff]  }
 0x543   : > { %v3233_v21 = vpop.xlane.xlu1 %3232 }
 0x544   : > { %7140 = vrcp.f32 %v3233_v21 }
 0x547   : > { %v3242_v57 = vpop.xlane.xlu0 %3241 }
 0x548   : > { %7142 = vrcp.f32 %v3242_v57 }
 0x54a   : > { %v7139_v27 = vpop.eup %7138 }
 0x54b   : > { %v3239_v19 = vpop.xlane.xlu1 %3238  ;;  %v3312_v60 = vmul.f32 %v7139_v27, %v8028_v2 }
 0x54c   : > { %7144 = vrcp.f32 %v3239_v19  ;;  %v6989_v19 = vld [vmem:[#allocation7 + $0x78] ss:$12 sps:$4 sm:$0xff]  }
 0x54e   : > { %v7141_v31 = vpop.eup %7140 }
 0x54f   : > { %6670 = vrot.lane.b32.xlu0 %v6669_v15, %s7381_s24  ;;  %v3311_v62 = vmul.f32 %v7141_v31, %v8033_v8 }
 0x550   : > { %v3260_v50 = vpop.xlane.xlu0 %3259 }
 0x551   : > { %7146 = vrcp.f32 %v3260_v50  ;;  %v3257_v37 = vpop.xlane.xlu1 %3256  ;;  %6020 = vmatprep.mubr.msk.f32.mxu0 %vm3062_vm1, %v3311_v62  ;;  %v6994_v50 = vld [vmem:[#allocation7 + $0x94] ss:$12 sps:$4 sm:$0xff]  }
 0x552   : > { %7148 = vrcp.f32 %v3257_v37  ;;  %6021 = vmatmul.mubr.msk.f32.vlgmr.msra.gmra.mrb[40].mxu0 %vm3062_vm1, %v3312_v60  ;;  %v7143_v48 = vpop.eup %7142  ;;  %v6998_v37 = vld [vmem:[#allocation7 + $0xac] ss:$12 sps:$4 sm:$0xff]  }
 0x553   : > { %6271 = vmatpush3.bf16.msra.mxu0 %v7804_v32  ;;  %v3314_v2 = vmul.f32 %v7143_v48, %v8039_v52 }
 0x554   : > { %v3224_v4 = vpop.xlane.xlu0 %3223  ;;  %6273 = vmatprep.subr.bf16.mxu0 %v7828_v36 }
 0x555   : > { %7150 = vrcp.f32 %v3224_v4  ;;  %v6996_v4 = vld [vmem:[#allocation7 + $0xa8] ss:$12 sps:$4 sm:$0xff]  }
 0x556   : > { %v7145_v25 = vpop.eup %7144 }
 0x557   : > { %6275 = vmatpush3.bf16.msra.mxu0 %v7828_v36  ;;  %v3313_v28 = vmul.f32 %v7145_v25, %v8046_v6  ;;  %v7003_v25 = vld [vmem:[#allocation7 + $0x4] ss:$12 sps:$4 sm:$0xff]  }
 0x558   : > { %v3221_v15 = vpop.xlane.xlu0 %3220  ;;  %4024 = vmatprep.subr.bf16.mxu0 %v6988_v22  ;;  %v7012_v22 = vld [vmem:[#allocation7 + $0x20] ss:$12 sps:$4 sm:$0xff]  }
 0x559   : > { %7152 = vrcp.f32 %v3221_v15  ;;  %6023 = vmatprep.mubr.msk.f32.mxu0 %vm3062_vm1, %v3313_v28 }
 0x55a   : > { %6024 = vmatmul.mubr.msk.f32.gmra.mrb[42].mxu0 %vm3062_vm1, %v3314_v2 }
 0x55b   : > { %v7147_v8 = vpop.eup %7146 }
 0x55c   : > { %v7149_v32 = vpop.eup %7148  ;;  %v3320_v24 = vmul.f32 %v7147_v8, %v8051_v55 }
 0x55d   : > { %v3319_v53 = vmul.f32 %v7149_v32, %v8053_v39  ;;  %v3230_v54 = vpop.xlane.xlu0 %3229 }
 0x55e   : > { %7154 = vrcp.f32 %v3230_v54  ;;  %v6995_v54 = vld [vmem:[#allocation7 + $0x68] ss:$12 sps:$4 sm:$0xff]  }
 0x55f   : > { %6048 = vmatprep.mubr.msk.f32.mxu0 %vm3062_vm1, %v3319_v53  ;;  %v7151_v6 = vpop.eup %7150 }
 0x560   : > { %6049 = vmatmul.mubr.msk.f32.vlgmr.msra.gmra.mrb[44].mxu0 %vm3062_vm1, %v3320_v24  ;;  %v3308_v35 = vmul.f32 %v7151_v6, %v8060_v56 }
 0x561   : > { %v3227_v36 = vpop.xlane.xlu1 %3226  ;;  %4025 = vmatpush1.bf16.msra.mxu0 %v6986_v61 }
 0x562   : > { %7156 = vrcp.f32 %v3227_v36 }
 0x563   : > { %v7153_v52 = vpop.eup %7152 }
 0x564   : > { %v3307_v40 = vmul.f32 %v7153_v52, %v8064_v0 }
 0x565   : > { %v6656_v47 = vpop.permute.xlu1 %6655 }
 0x566   : > { %v6658_v51 = vunpack.i.h.bf16 %v6656_v47  ;;  %v6657_v63 = vunpack.i.l.bf16 %v6656_v47  ;;  %6006 = vmatprep.mubr.msk.f32.mxu1 %vm3062_vm1, %v3307_v40  ;;  %v6999_v40 = vld [vmem:[#allocation7 + $0x80] ss:$12 sps:$4 sm:$0xff]  }
 0x567   : > { %6007 = vmatmul.mubr.msk.f32.vlgmr.msra.gmra.mrb[32].mxu1 %vm3062_vm1, %v3308_v35 }
 0x568   : > { %v6260_v55 = vpack.c.bf16 %v6658_v51, %v6657_v63  ;;  %v7155_v39 = vpop.eup %7154  ;;  %v7000_v51 = vld [vmem:[#allocation7 + $0x98] ss:$12 sps:$4 sm:$0xff]   ;;  %v7004_v63 = vld [vmem:[#allocation7 + $0xb0] ss:$12 sps:$4 sm:$0xff]  }
 0x569   : > { %v3310_v59 = vmul.f32 %v7155_v39, %v8068_v33 }
 0x56a   : > { %6261 = vmatprep.subr.bf16.mxu1 %v6260_v55 }
 0x56b   : > { %6263 = vmatpush3.bf16.msra.mxu1 %v6260_v55 }
 0x56c   : > { %v7157_v12 = vpop.eup %7156 }
 0x56d   : > { %v3309_v23 = vmul.f32 %v7157_v12, %v8072_v45 }
 0x56f   : > { %6009 = vmatprep.mubr.msk.f32.mxu1 %vm3062_vm1, %v3309_v23 }
 0x570   : > { %6010 = vmatmul.mubr.msk.f32.gmra.mrb[34].mxu1 %vm3062_vm1, %v3310_v59 }
 0x585   : > { %v3248_v56 = vpop.xlane.xlu0 %3247 }
 0x586   : > { %7158 = vrcp.f32 %v3248_v56 }
 0x589   : > { %v3254_v0 = vpop.xlane.xlu0 %3253 }
 0x58d   : > { %v6661_v26 = vpop.permute.xlu0 %6660 }
 0x58e   : > { %v6663_v42 = vunpack.i.h.bf16 %v6661_v26  ;;  %v6662_v49 = vunpack.i.l.bf16 %v6661_v26 }
 0x590   : > { %v6264_v5 = vpack.c.bf16 %v6663_v42, %v6662_v49  ;;  %v7159_v33 = vpop.eup %7158 }
 0x591   : > { %v3316_v11 = vmul.f32 %v7159_v33, %v8084_v13  ;;  %v6991_v13 = vld [vmem:[#allocation7 + $0x7c] ss:$12 sps:$4 sm:$0xff]  }
 0x592   : > { %6265 = vmatprep.subr.bf16.mxu1 %v6264_v5  ;;  %4026 = vmatprep.subr.bf16.mxu0 %v6991_v13  ;;  %v7019_v13 = vld [vmem:[#allocation7 + $0xc4] ss:$12 sps:$4 sm:$0xff]  }
 0x593   : > { %6267 = vmatpush3.bf16.msra.mxu1 %v6264_v5  ;;  %4027 = vmatpush1.bf16.msra.mxu0 %v6989_v19  ;;  %v7017_v19 = vld [vmem:[#allocation7 + $0xc0] ss:$12 sps:$4 sm:$0xff]  }
 0x594   : > { %4028 = vmatprep.subr.bf16.mxu0 %v6994_v50  ;;  %v7031_v50 = vld [vmem:[#allocation7 + $0x10c] ss:$12 sps:$4 sm:$0xff]  }
 0x59a   : > { %v3245_v10 = vpop.xlane.xlu1 %3244 }
 0x59b   : > { %7160 = vrcp.f32 %v3245_v10 }
 0x59e   : > { %v3263_v9 = vpop.xlane.xlu1 %3262 }
 0x59f   : > { %7162 = vrcp.f32 %v3263_v9 }
 0x5a0   : > { %7164 = vrcp.f32 %v3254_v0 }
 0x5a2   : > { %v3251_v45 = vpop.xlane.xlu1 %3250 }
 0x5a3   : > { %7166 = vrcp.f32 %v3251_v45 }
 0x5a5   : > { %v7161_v41 = vpop.eup %7160 }
 0x5a6   : > { %v3269_v3 = vpop.xlane.xlu1 %3268  ;;  %v3315_v43 = vmul.f32 %v7161_v41, %v8103_v34  ;;  %v7001_v41 = vld [vmem:[#allocation7] ss:$12 sps:$4 sm:$0xff]  }
 0x5a7   : > { %7168 = vrcp.f32 %v3269_v3 }
 0x5a8   : > { %6034 = vmatprep.mubr.msk.f32.mxu1 %vm3062_vm1, %v3315_v43  ;;  %v7007_v43 = vld [vmem:[#allocation7 + $0x1c] ss:$12 sps:$4 sm:$0xff]  }
 0x5a9   : > { %v7163_v16 = vpop.eup %7162  ;;  %6035 = vmatmul.mubr.msk.f32.vlgmr.msra.gmra.mrb[36].mxu1 %vm3062_vm1, %v3316_v11  ;;  %v7005_v11 = vld [vmem:[#allocation7 + $0x18] ss:$12 sps:$4 sm:$0xff]  }
 0x5aa   : > { %v3321_v17 = vmul.f32 %v7163_v16, %v8108_v38  ;;  %v7165_v14 = vpop.eup %7164  ;;  %v7011_v16 = vld [vmem:[#allocation7 + $0x34] ss:$12 sps:$4 sm:$0xff]  }
 0x5ab   : > { %v3318_v34 = vmul.f32 %v7165_v14, %v8088_v44  ;;  %v6992_v44 = vld [vmem:[#allocation7 + $0x90] ss:$12 sps:$4 sm:$0xff]  }
 0x5ac   : > { %6051 = vmatprep.mubr.msk.f32.mxu0 %vm3062_vm1, %v3321_v17  ;;  %4029 = vmatpush1.bf16.msra.mxu0 %v6992_v44  ;;  %v7028_v44 = vld [vmem:[#allocation7 + $0xe0] ss:$12 sps:$4 sm:$0xff]  }
 0x5ad   : > { %v7167_v1 = vpop.eup %7166  ;;  %4030 = vmatprep.subr.bf16.mxu0 %v6998_v37  ;;  %v7029_v37 = vld [vmem:[#allocation7 + $0x108] ss:$12 sps:$4 sm:$0xff]  }
 0x5ae   : > { %v3275_v21 = vpop.xlane.xlu1 %3274  ;;  %v3317_v57 = vmul.f32 %v7167_v1, %v8120_v29  ;;  %v7009_v1 = vld [vmem:[#allocation7 + $0x30] ss:$12 sps:$4 sm:$0xff]  }
 0x5b0   : > { %6037 = vmatprep.mubr.msk.f32.mxu1 %vm3062_vm1, %v3317_v57  ;;  %4031 = vmatpush1.bf16.msra.mxu0 %v6996_v4  ;;  %v7013_v57 = vld [vmem:[#allocation7 + $0x48] ss:$12 sps:$4 sm:$0xff]   ;;  %v7032_v4 = vld [vmem:[#allocation7 + $0xf8] ss:$12 sps:$4 sm:$0xff]  }
 0x5b1   : > { %v7169_v27 = vpop.eup %7168  ;;  %6038 = vmatmul.mubr.msk.f32.gmra.mrb[38].mxu1 %vm3062_vm1, %v3318_v34  ;;  %4196 = vmatprep.subr.bf16.mxu0 %v7003_v25  ;;  %v7016_v34 = vld [vmem:[#allocation7 + $0x38] ss:$12 sps:$4 sm:$0xff]   ;;  %v7033_v25 = vld [vmem:[#allocation7 + $0x110] ss:$12 sps:$4 sm:$0xff]  }
 0x5b2   : > { %v6666_v38 = vpop.permute.xlu1 %6665  ;;  %v3323_v31 = vmul.f32 %v7169_v27, %v8124_v58  ;;  %v7020_v27 = vld [vmem:[#allocation7 + $0x50] ss:$12 sps:$4 sm:$0xff]  }
 0x5b3   : > { %v6668_v62 = vunpack.i.h.bf16 %v6666_v38  ;;  %v6667_v60 = vunpack.i.l.bf16 %v6666_v38  ;;  %v7023_v38 = vld [vmem:[#allocation7 + $0xdc] ss:$12 sps:$4 sm:$0xff]  }
 0x5b4   : > { %6062 = vmatprep.mubr.msk.f32.mxu1 %vm3062_vm1, %v3323_v31  ;;  %v7021_v31 = vld [vmem:[#allocation7 + $0xd8] ss:$12 sps:$4 sm:$0xff]  }
 0x5b5   : > { %v6276_v29 = vpack.c.bf16 %v6668_v62, %v6667_v60  ;;  %v7024_v62 = vld [vmem:[#allocation7 + $0xc8] ss:$12 sps:$4 sm:$0xff]  }
 0x5b6   : > { %v7027_v60 = vld [vmem:[#allocation7 + $0xf4] ss:$12 sps:$4 sm:$0xff]  }
 0x5b7   : > { %6277 = vmatprep.subr.bf16.mxu1 %v6276_v29 }
 0x5b8   : > { %6279 = vmatpush3.bf16.msra.mxu1 %v6276_v29  ;;  %v7025_v29 = vld [vmem:[#allocation7 + $0xf0] ss:$12 sps:$4 sm:$0xff]  }
 0x5be   : > { %v3266_v48 = vpop.xlane.xlu0 %3265 }
 0x5bf   : > { %7170 = vrcp.f32 %v3266_v48  ;;  %v7036_v48 = vld [vmem:[#allocation7 + $0x124] ss:$12 sps:$4 sm:$0xff]  }
 0x5c2   : > { %v3272_v58 = vpop.xlane.xlu0 %3271 }
 0x5c3   : > { %7172 = vrcp.f32 %v3272_v58  ;;  %v7034_v58 = vld [vmem:[#allocation7 + $0x120] ss:$12 sps:$4 sm:$0xff]  }
 0x5c4   : > { %7174 = vrcp.f32 %v3275_v21  ;;  %v7015_v21 = vld [vmem:[#allocation7 + $0x4c] ss:$12 sps:$4 sm:$0xff]  }
 0x5c6   : > { %v3278_v28 = vpop.xlane.xlu0 %3277 }
 0x5c7   : > { %7176 = vrcp.f32 %v3278_v28  ;;  %v7039_v28 = vld [vmem:[#allocation7 + $0x13c] ss:$12 sps:$4 sm:$0xff]  }
 0x5c9   : > { %v7171_v15 = vpop.eup %7170 }
 0x5ca   : > { %v6671_v2 = vpop.permute.xlu0 %6670  ;;  %v3322_v8 = vmul.f32 %v7171_v15, %v8137_v7  ;;  %v7043_v15 = vld [vmem:[#allocation7 + $0x128] ss:$12 sps:$4 sm:$0xff]  }
 0x5cb   : > { %v6673_v32 = vunpack.i.h.bf16 %v6671_v2  ;;  %v6672_v53 = vunpack.i.l.bf16 %v6671_v2  ;;  %v7037_v2 = vld [vmem:[#allocation7 + $0x138] ss:$12 sps:$4 sm:$0xff]  }
 0x5cc   : > { %6052 = vmatmul.mubr.msk.f32.gmra.mrb[46].mxu0 %vm3062_vm1, %v3322_v8  ;;  %v7042_v8 = vld [vmem:[#allocation7 + $0x154] ss:$12 sps:$4 sm:$0xff]  }
 0x5cd   : > { %v6280_v24 = vpack.c.bf16 %v6673_v32, %v6672_v53  ;;  %4056 = vmatprep.mubr.bf16.mxu0 %v7380_v30  ;;  %v7173_v36 = vpop.eup %7172  ;;  %v7047_v32 = vld [vmem:[#allocation7 + $0x140] ss:$12 sps:$4 sm:$0xff]   ;;  %v7040_v53 = vld [vmem:[#allocation7 + $0x150] ss:$12 sps:$4 sm:$0xff]  }
 0x5ce   : > { %v7175_v6 = vpop.eup %7174  ;;  %v3324_v52 = vmul.f32 %v7173_v36, %v8146_v20  ;;  %v7044_v36 = vld [vmem:[#allocation7 + $0x168] ss:$12 sps:$4 sm:$0xff]  }
 0x5cf   : > { %6281 = vmatprep.subr.bf16.mxu1 %v6280_v24  ;;  %v3325_v47 = vmul.f32 %v7175_v6, %v8130_v18  ;;  %v7008_v18 = vld [vmem:[#allocation7 + $0x8] ss:$12 sps:$4 sm:$0xff]   ;;  %v7051_v6 = vld [vmem:[#allocation7 + $0x184] ss:$12 sps:$4 sm:$0xff]  }
 0x5d0   : > { %6283 = vmatpush3.bf16.msra.mxu1 %v6280_v24  ;;  %v7046_v24 = vld [vmem:[#allocation7 + $0x16c] ss:$12 sps:$4 sm:$0xff]  }
 0x5d1   : > { %6068 = vmatprep.subr.bf16.mxu1 %v6995_v54  ;;  %v7177_v35 = vpop.eup %7176 }
 0x5d2   : > { %v3326_v7 = vmul.f32 %v7177_v35, %v8150_v46 }
 0x5d3   : > { %6063 = vmatmul.mubr.msk.f32.vlgmr.msra.gmra.mrb[40].mxu1 %vm3062_vm1, %v3324_v52  ;;  %v7052_v52 = vld [vmem:[#allocation7 + $0x170] ss:$12 sps:$4 sm:$0xff]  }
 0x5d4   : > { %6065 = vmatprep.mubr.msk.f32.mxu1 %vm3062_vm1, %v3325_v47  ;;  %6069 = vmatpush3.bf16.msra.mxu1 %v6995_v54  ;;  %v7048_v54 = vld [vmem:[#allocation7 + $0x158] ss:$12 sps:$4 sm:$0xff]  }
 0x5d5   : > { %6070 = vmatprep.subr.bf16.mxu1 %v6999_v40 }
 0x5d7   : > { %6066 = vmatmul.mubr.msk.f32.gmra.mrb[42].mxu1 %vm3062_vm1, %v3326_v7  ;;  %v7049_v7 = vld [vmem:[#allocation7 + $0x180] ss:$12 sps:$4 sm:$0xff]  }
 0x5d8   : > { %6071 = vmatpush3.bf16.msra.mxu1 %v6999_v40  ;;  %v7062_v40 = vld [vmem:[#allocation7 + $0x188] ss:$12 sps:$4 sm:$0xff]  }
 0x5d9   : > { %6072 = vmatprep.subr.bf16.mxu1 %v7000_v51 }
 0x5da   : > { %v5994_v20 = vpop.f32.mrb[36].mxu0 }
 0x5db   : > { %v3405_v55 = vpop.f32.mrb[37].mxu0 }
 0x5dc   : > { %v3909_v39 = vpack.c.bf16 %v5994_v20, %v3405_v55  ;;  %6073 = vmatpush3.bf16.msra.mxu1 %v7000_v51  ;;  %v7053_v20 = vld [vmem:[#allocation7 + $0x198] ss:$12 sps:$4 sm:$0xff]   ;;  %v7058_v55 = vld [vmem:[#allocation7 + $0x1b4] ss:$12 sps:$4 sm:$0xff]  }
 0x5dd   : > { %6074 = vmatprep.subr.bf16.mxu1 %v7004_v63 }
 0x5e0   : > { %6075 = vmatpush3.bf16.msra.mxu1 %v7004_v63  ;;  %v7055_v63 = vld [vmem:[#allocation7 + $0x19c] ss:$12 sps:$4 sm:$0xff]  }
 0x5e1   : > { %6080 = vmatprep.subr.bf16.mxu1 %v7008_v18 }
 0x601   : > { %v5997_v12 = vpop.f32.mrb[38].mxu0 }
 0x602   : > { %v3415_v23 = vpop.f32.mrb[39].mxu0 }
 0x603   : > { %v8202_v59 = vpack.c.bf16 %v5997_v12, %v3415_v23  ;;  %v7056_v12 = vld [vmem:[#allocation7 + $0x1b0] ss:$12 sps:$4 sm:$0xff]  }
 0x625   : > { %v6022_v46 = vpop.f32.mrb[40].mxu0 }
 0x626   : > { %v3599_v56 = vpop.f32.mrb[41].mxu0 }
 0x627   : > { %v8204_v0 = vpack.c.bf16 %v6022_v46, %v3599_v56  ;;  %v7063_v46 = vld [vmem:[#allocation7 + $0x1a0] ss:$12 sps:$4 sm:$0xff]   ;;  %v7059_v56 = vld [vmem:[#allocation7 + $0x1c8] ss:$12 sps:$4 sm:$0xff]  }
 0x62d   : > { %v6025_v26 = vpop.f32.mrb[42].mxu0 }
 0x62e   : > { %v3609_v42 = vpop.f32.mrb[43].mxu0 }
 0x62f   : > { %v8206_v49 = vpack.c.bf16 %v6025_v26, %v3609_v42  ;;  %v7064_v26 = vld [vmem:[#allocation7 + $0x1b8] ss:$12 sps:$4 sm:$0xff]   ;;  %v7065_v42 = vld [vmem:[#allocation7 + $0x1e0] ss:$12 sps:$4 sm:$0xff]  }
 0x633   : > { %v6050_v5 = vpop.f32.mrb[44].mxu0 }
 0x634   : > { %v3793_v10 = vpop.f32.mrb[45].mxu0 }
 0x635   : > { %v8208_v9 = vpack.c.bf16 %v6050_v5, %v3793_v10  ;;  %v7068_v5 = vld [vmem:[#allocation7 + $0x1d0] ss:$12 sps:$4 sm:$0xff]   ;;  %v7069_v10 = vld [vmem:[#allocation7 + $0x1f8] ss:$12 sps:$4 sm:$0xff]  }
 0x63a   : > { %v6008_v45 = vpop.f32.mrb[32].mxu1 }
 0x63b   : > { %v3502_v33 = vpop.f32.mrb[33].mxu1 }
 0x63c   : > { %v3911_v3 = vpack.c.bf16 %v6008_v45, %v3502_v33  ;;  %v7075_v45 = vld [vmem:[#allocation7 + $0x214] ss:$12 sps:$4 sm:$0xff]  }
 0x63d   : > { %v7072_v33 = vld [vmem:[#allocation7 + $0x1e8] ss:$12 sps:$4 sm:$0xff]  }
 0x63e   : > { %5549 = vmatmul.mubr.msk.bf16.vlgmr.msra.gmra.mrb[48].mxu0 %vm2503_vm0, %v3911_v3  ;;  %6076 = vmatprep.mubr.msk.bf16.mxu1 %vm2503_vm0, %v3911_v3  ;;  %v7079_v3 = vld [vmem:[#allocation7 + $0x22c] ss:$12 sps:$4 sm:$0xff]  }
 0x63f   : > { %4197 = vmatpush1.bf16.msra.mxu0 %v7001_v41  ;;  %4066 = vmatprep.mubr.bf16.mxu0 %v7380_v30  ;;  %v7073_v41 = vld [vmem:[#allocation7 + $0x210] ss:$12 sps:$4 sm:$0xff]  }
 0x640   : > { %4198 = vmatprep.subr.bf16.mxu0 %v7007_v43  ;;  %v7077_v43 = vld [vmem:[#allocation7 + $0x228] ss:$12 sps:$4 sm:$0xff]  }
 0x643   : > { %v6011_v17 = vpop.f32.mrb[34].mxu1  ;;  %4199 = vmatpush1.bf16.msra.mxu0 %v7005_v11 }
 0x644   : > { %v3512_v14 = vpop.f32.mrb[35].mxu1  ;;  %4200 = vmatprep.subr.bf16.mxu0 %v7011_v16 }
 0x645   : > { %v3912_v61 = vpack.c.bf16 %v6011_v17, %v3512_v14  ;;  %v7076_v17 = vld [vmem:[#allocation7 + $0x200] ss:$12 sps:$4 sm:$0xff]   ;;  %v7080_v14 = vld [vmem:[#allocation7 + $0x218] ss:$12 sps:$4 sm:$0xff]  }
 0x647   : > { %5550 = vmatmul.mubr.msk.bf16.gmra.mrb[52].mxu0 %vm2503_vm0, %v3912_v61  ;;  %6077 = vmatmul.mubr.msk.bf16.vlgmr.msra.gmra.mrb[44].mxu1 %vm2503_vm0, %v3912_v61 }
 0x648   : > { %6081 = vmatpush3.bf16.msra.mxu1 %v7008_v18  ;;  %4201 = vmatpush1.bf16.msra.mxu0 %v7009_v1 }
 0x649   : > { %6088 = vmatprep.mubr.msk.bf16.mxu1 %vm2503_vm0, %v3909_v39  ;;  %6082 = vmatprep.subr.bf16.mxu1 %v7012_v22 }
 0x64a   : > { %4202 = vmatprep.subr.bf16.mxu0 %v7015_v21  ;;  %4228 = vmatprep.mubr.bf16.mxu0 %v7380_v30  ;;  %v7081_v21 = vld [vmem:[#allocation7 + $0x230] ss:$12 sps:$4 sm:$0xff]  }
 0x64c   : > { %6083 = vmatpush3.bf16.msra.mxu1 %v7012_v22  ;;  %4203 = vmatpush1.bf16.msra.mxu0 %v7013_v57 }
 0x64d   : > { %6084 = vmatprep.subr.bf16.mxu1 %v7016_v34  ;;  %4385 = vmatprep.subr.bf16.mxu0 %v7019_v13 }
 0x64f   : > { %5565 = vmatmul.mubr.msk.bf16.vlgmr.msra.gmra.mrb[48].mxu0 %vm2503_vm0, %v3909_v39 }
 0x650   : > { %6085 = vmatpush3.bf16.msra.mxu1 %v7016_v34  ;;  %4386 = vmatpush1.bf16.msra.mxu0 %v7017_v19  ;;  %v5104_v19 = vlaneseq }
 0x651   : > { %6086 = vmatprep.subr.bf16.mxu1 %v7020_v27  ;;  %4387 = vmatprep.subr.bf16.mxu0 %v7023_v38 }
 0x652   : > { %4238 = vmatprep.mubr.bf16.mxu0 %v7380_v30 }
 0x654   : > { %6087 = vmatpush3.bf16.msra.mxu1 %v7020_v27  ;;  %4388 = vmatpush1.bf16.msra.mxu0 %v7021_v31  ;;  %v5105_v27 = vshrl.u32 %v5104_v19, 7  ;;  %v5102_v31 = vld [vmem:[%s8326_s3] sm:$0x7] }
 0x655   : > { %6092 = vmatprep.subr.bf16.mxu1 %v7024_v62  ;;  %4389 = vmatprep.subr.bf16.mxu0 %v7027_v60 }
 0x656   : > { %v5106_v38 = vsub.s32 0, %v5105_v27 }
 0x657   : > { %6089 = vmatmul.mubr.msk.bf16.vlgmr.msra.gmra.mrb[44].mxu1 %vm2503_vm0, %v8202_v59  ;;  %5566 = vmatmul.mubr.msk.bf16.gmra.mrb[52].mxu0 %vm2503_vm0, %v8202_v59  ;;  %v7061_v59 = vld [vmem:[#allocation7 + $0x1cc] ss:$12 sps:$4 sm:$0xff]  }
 0x658   : > { %6093 = vmatpush3.bf16.msra.mxu1 %v7024_v62  ;;  %6100 = vmatprep.mubr.msk.bf16.mxu1 %vm2503_vm0, %v8204_v0  ;;  %v5110_v62 = vsub.s32 1, %v5105_v27  ;;  %v5107_v60 = vrot.slane %v5102_v31, %v5106_v38 }
 0x659   : > { %4390 = vmatpush1.bf16.msra.mxu0 %v7025_v29  ;;  %6094 = vmatprep.subr.bf16.mxu1 %v7028_v44 }
 0x65a   : > { %4391 = vmatprep.subr.bf16.mxu0 %v7031_v50  ;;  %4417 = vmatprep.mubr.bf16.mxu0 %v7380_v30  ;;  %v5111_v29 = vrot.slane %v5102_v31, %v5110_v62 }
 0x65c   : > { %6095 = vmatpush3.bf16.msra.mxu1 %v7028_v44 }
 0x65d   : > { %4392 = vmatpush1.bf16.msra.mxu0 %v7029_v37  ;;  %6096 = vmatprep.subr.bf16.mxu1 %v7032_v4  ;;  %v5114_v37 = vsub.s32 2, %v5105_v27 }
 0x65e   : > { %4586 = vmatprep.subr.bf16.mxu0 %v7036_v48 }
 0x660   : > { %5581 = vmatmul.mubr.msk.bf16.vlgmr.msra.gmra.mrb[48].mxu0 %vm2503_vm0, %v8204_v0  ;;  %6097 = vmatpush3.bf16.msra.mxu1 %v7032_v4  ;;  %v7067_v0 = vld [vmem:[#allocation7 + $0x1e4] ss:$12 sps:$4 sm:$0xff]  }
 0x661   : > { %6098 = vmatprep.subr.bf16.mxu1 %v7033_v25  ;;  %4427 = vmatprep.mubr.bf16.mxu0 %v7380_v30 }
 0x662   : > { %4587 = vmatpush1.bf16.msra.mxu0 %v7034_v58 }
 0x663   : > { %4588 = vmatprep.subr.bf16.mxu0 %v7039_v28 }
 0x664   : > { %6099 = vmatpush3.bf16.msra.mxu1 %v7033_v25 }
 0x665   : > { %6104 = vmatprep.subr.bf16.mxu1 %v7043_v15 }
 0x666   : > { %4589 = vmatpush1.bf16.msra.mxu0 %v7037_v2 }
 0x667   : > { %6101 = vmatmul.mubr.msk.bf16.vlgmr.msra.gmra.mrb[44].mxu1 %vm2503_vm0, %v8206_v49  ;;  %4590 = vmatprep.subr.bf16.mxu0 %v7042_v8 }
 0x668   : > { %5582 = vmatmul.mubr.msk.bf16.gmra.mrb[52].mxu0 %vm2503_vm0, %v8206_v49  ;;  %6105 = vmatpush3.bf16.msra.mxu1 %v7043_v15  ;;  %v7071_v49 = vld [vmem:[#allocation7 + $0x1fc] ss:$12 sps:$4 sm:$0xff]   ;;  %v5115_v15 = vrot.slane %v5102_v31, %v5114_v37 }
 0x669   : > { %6106 = vmatprep.subr.bf16.mxu1 %v7047_v32  ;;  %4618 = vmatprep.mubr.bf16.mxu0 %v7380_v30 }
 0x66a   : > { %4591 = vmatpush1.bf16.msra.mxu0 %v7040_v53 }
 0x66b   : > { %4592 = vmatprep.subr.bf16.mxu0 %v7046_v24 }
 0x66c   : > { %6107 = vmatpush3.bf16.msra.mxu1 %v7047_v32 }
 0x66d   : > { %6108 = vmatprep.subr.bf16.mxu1 %v7048_v54 }
 0x66e   : > { %4593 = vmatpush1.bf16.msra.mxu0 %v7044_v36 }
 0x66f   : > { %4787 = vmatprep.subr.bf16.mxu0 %v7051_v6 }
 0x670   : > { %6109 = vmatpush3.bf16.msra.mxu1 %v7048_v54 }
 0x671   : > { %6110 = vmatprep.subr.bf16.mxu1 %v7052_v52 }
 0x674   : > { %6111 = vmatpush3.bf16.msra.mxu1 %v7052_v52 }
 0x675   : > { %6116 = vmatprep.subr.bf16.mxu1 %v7062_v40 }
 0x67c   : > { %v6036_v35 = vpop.f32.mrb[36].mxu1 }
 0x67d   : > { %v3696_v47 = vpop.f32.mrb[37].mxu1 }
 0x67e   : > { %v3915_v51 = vpack.c.bf16 %v6036_v35, %v3696_v47 }
 0x680   : > { %5597 = vmatmul.mubr.msk.bf16.vlgmr.msra.gmra.mrb[48].mxu0 %vm2503_vm0, %v3915_v51  ;;  %6112 = vmatprep.mubr.msk.bf16.mxu1 %vm2503_vm0, %v3915_v51 }
 0x681   : > { %4788 = vmatpush1.bf16.msra.mxu0 %v7049_v7  ;;  %4628 = vmatprep.mubr.bf16.mxu0 %v7380_v30 }
 0x682   : > { %4789 = vmatprep.subr.bf16.mxu0 %v7055_v63 }
 0x684   : > { %v6039_v39 = vpop.f32.mrb[38].mxu1 }
 0x685   : > { %v3706_v18 = vpop.f32.mrb[39].mxu1  ;;  %4790 = vmatpush1.bf16.msra.mxu0 %v7053_v20 }
 0x686   : > { %v3916_v23 = vpack.c.bf16 %v6039_v39, %v3706_v18  ;;  %4791 = vmatprep.subr.bf16.mxu0 %v7058_v55 }
 0x688   : > { %5598 = vmatmul.mubr.msk.bf16.gmra.mrb[52].mxu0 %vm2503_vm0, %v3916_v23  ;;  %6113 = vmatmul.mubr.msk.bf16.vlgmr.msra.gmra.mrb[44].mxu1 %vm2503_vm0, %v3916_v23 }
 0x689   : > { %4792 = vmatpush1.bf16.msra.mxu0 %v7056_v12  ;;  %6124 = vmatprep.mubr.msk.bf16.mxu1 %vm2503_vm0, %v8208_v9 }
 0x68a   : > { %4793 = vmatprep.subr.bf16.mxu0 %v7061_v59  ;;  %4819 = vmatprep.mubr.bf16.mxu0 %v7380_v30 }
 0x68b   : > { %6117 = vmatpush3.bf16.msra.mxu1 %v7062_v40 }
 0x68c   : > { %6118 = vmatprep.subr.bf16.mxu1 %v7063_v46 }
 0x68d   : > { %4794 = vmatpush1.bf16.msra.mxu0 %v7059_v56 }
 0x68e   : > { %4988 = vmatprep.subr.bf16.mxu0 %v7067_v0 }
 0x68f   : > { %6119 = vmatpush3.bf16.msra.mxu1 %v7063_v46 }
 0x690   : > { %5613 = vmatmul.mubr.msk.bf16.vlgmr.msra.gmra.mrb[48].mxu0 %vm2503_vm0, %v8208_v9  ;;  %6120 = vmatprep.subr.bf16.mxu1 %v7064_v26 }
 0x691   : > { %4989 = vmatpush1.bf16.msra.mxu0 %v7065_v42  ;;  %4829 = vmatprep.mubr.bf16.mxu0 %v7380_v30 }
 0x692   : > { %4990 = vmatprep.subr.bf16.mxu0 %v7071_v49 }
 0x693   : > { %6121 = vmatpush3.bf16.msra.mxu1 %v7064_v26 }
 0x694   : > { %6122 = vmatprep.subr.bf16.mxu1 %v7068_v5 }
 0x695   : > { %4991 = vmatpush1.bf16.msra.mxu0 %v7069_v10 }
 0x696   : > { %4992 = vmatprep.subr.bf16.mxu0 %v7075_v45 }
 0x697   : > { %6123 = vmatpush3.bf16.msra.mxu1 %v7068_v5 }
 0x698   : > { %6128 = vmatprep.subr.bf16.mxu1 %v7072_v33 }
 0x699   : > { %4993 = vmatpush1.bf16.msra.mxu0 %v7073_v41 }
 0x69a   : > { %4994 = vmatprep.subr.bf16.mxu0 %v7079_v3 }
 0x69d   : > { %4995 = vmatpush1.bf16.msra.mxu0 %v7077_v43 }
 0x69f   : > { %v6053_v9 = vpop.f32.mrb[46].mxu0 }
 0x6a0   : > { %v3803_v11 = vpop.f32.mrb[47].mxu0 }
 0x6a1   : > { %v3918_v16 = vpack.c.bf16 %v6053_v9, %v3803_v11 }
 0x6a3   : > { %5614 = vmatmul.mubr.msk.bf16.gmra.mrb[52].mxu0 %vm2503_vm0, %v3918_v16  ;;  %6125 = vmatmul.mubr.msk.bf16.vlgmr.msra.gmra.mrb[44].mxu1 %vm2503_vm0, %v3918_v16 }
 0x6a4   : > { %6129 = vmatpush3.bf16.msra.mxu1 %v7072_v33  ;;  %5020 = vmatprep.mubr.bf16.mxu0 %v7380_v30 }
 0x6a5   : > { %6130 = vmatprep.subr.bf16.mxu1 %v7076_v17 }
 0x6a6   : > { %v6064_v1 = vpop.f32.mrb[40].mxu1 }
 0x6a7   : > { %v3890_v61 = vpop.f32.mrb[41].mxu1 }
 0x6a8   : > { %v3919_v22 = vpack.c.bf16 %v6064_v1, %v3890_v61  ;;  %6131 = vmatpush3.bf16.msra.mxu1 %v7076_v17 }
 0x6a9   : > { %6132 = vmatprep.subr.bf16.mxu1 %v7080_v14 }
 0x6aa   : > { %v6067_v57 = vpop.f32.mrb[42].mxu1  ;;  %6136 = vmatprep.mubr.msk.bf16.mxu1 %vm2503_vm0, %v3919_v22 }
 0x6ab   : > { %v3900_v34 = vpop.f32.mrb[43].mxu1  ;;  %5629 = vmatmul.mubr.msk.bf16.vlgmr.msra.gmra.mrb[48].mxu0 %vm2503_vm0, %v3919_v22 }
 0x6ac   : > { %v3920_v13 = vpack.c.bf16 %v6067_v57, %v3900_v34  ;;  %6133 = vmatpush3.bf16.msra.mxu1 %v7080_v14  ;;  %5030 = vmatprep.mubr.bf16.mxu0 %v7380_v30 }
 0x6ad   : > { %6134 = vmatprep.subr.bf16.mxu1 %v7081_v21 }
 0x6b0   : > { %6135 = vmatpush3.bf16.msra.mxu1 %v7081_v21 }
 0x6b3   : > { %6137 = vmatmul.mubr.msk.bf16.vlgmr.msra.gmra.mrb[44].mxu1 %vm2503_vm0, %v3920_v13  ;;  %5630 = vmatmul.mubr.msk.bf16.gmra.mrb[52].mxu0 %vm2503_vm0, %v3920_v13 }
 0x77e   : > { %v5022_v44 = vpop.f32.mrb[48].mxu0 }
 0x77f   : > { %v5119_v30 = vadd.f32 %v5107_v60, %v5022_v44  ;;  %v5024_v50 = vpop.f32.mrb[49].mxu0 }
 0x780   : > { %v5120_v4 = vadd.f32 %v5111_v29, %v5024_v50  ;;  %v5026_v48 = vpop.f32.mrb[50].mxu0 }
 0x781   : > { %5131 = vst [vmem:[%s8258_s13] sm:$0xff] %v5119_v30  ;;  %v5122_v25 = vadd.f32 %v5107_v60, %v5026_v48  ;;  %v5028_v58 = vpop.f32.mrb[51].mxu0 }
 0x782   : > { %5132 = vst [vmem:[%s8258_s13 + $0x8] sm:$0xff] %v5120_v4  ;;  %v5123_v28 = vadd.f32 %v5111_v29, %v5028_v58 }
 0x783   : > { %5134 = vst [vmem:[%s8258_s13 + $0x18] sm:$0xff] %v5122_v25 }
 0x784   : > { %5135 = vst [vmem:[%s8258_s13 + $0x20] sm:$0xff] %v5123_v28 }
 0x786   : > { %v6138_v2 = vpop.f32.mrb[44].mxu1  ;;  %v5032_v8 = vpop.f32.mrb[52].mxu0 }
 0x787   : > { %v5127_v32 = vadd.f32 %v6138_v2, %v5115_v15  ;;  %v5125_v53 = vadd.f32 %v5107_v60, %v5032_v8  ;;  %v5075_v24 = vpop.f32.mrb[45].mxu1  ;;  %v5034_v54 = vpop.f32.mrb[53].mxu0 }
 0x788   : > { %v5121_v36 = vadd.f32 %v5115_v15, %v5075_v24  ;;  %v5126_v6 = vadd.f32 %v5111_v29, %v5034_v54  ;;  %v6139_v52 = vpop.f32.mrb[46].mxu1  ;;  %v5036_v40 = vpop.f32.mrb[54].mxu0 }
 0x789   : > { %5139 = vst [vmem:[%s8258_s13 + $0x40] sm:$0xff] %v5127_v32  ;;  %5137 = vst [vmem:[%s8258_s13 + $0x30] sm:$0xff] %v5125_v53  ;;  %v5130_v35 = vadd.f32 %v6139_v52, %v5115_v15  ;;  %v5128_v47 = vadd.f32 %v5107_v60, %v5036_v40  ;;  %v5078_v7 = vpop.f32.mrb[47].mxu1  ;;  %v5038_v51 = vpop.f32.mrb[55].mxu0 }
 0x78a   : > { %5133 = vst [vmem:[%s8258_s13 + $0x10] sm:$0xff] %v5121_v36  ;;  %5138 = vst [vmem:[%s8258_s13 + $0x38] sm:$0xff] %v5126_v6  ;;  %v5124_v63 = vadd.f32 %v5115_v15, %v5078_v7  ;;  %v5129_v20 = vadd.f32 %v5111_v29, %v5038_v51 }
 0x78b   : > { %5142 = vst [vmem:[%s8258_s13 + $0x58] sm:$0xff] %v5130_v35  ;;  %5140 = vst [vmem:[%s8258_s13 + $0x48] sm:$0xff] %v5128_v47 }
 0x78c   : > { %5136 = vst [vmem:[%s8258_s13 + $0x28] sm:$0xff] %v5124_v63  ;;  %5141 = vst [vmem:[%s8258_s13 + $0x50] sm:$0xff] %v5129_v20 }
 0x78d   : > { %7305 = shalt.err (!%p7302_p4)
}
 0x78e   : > { %s7306_s8 = scalar_lea.hbm %s8271_s27, 1536  ;;  %s7310_s26 = scalar_lea.hbm %s8328_s5, 3072 }
 0x78f   : > { %p7307_p9 = scmp.ne.s32.totalorder %s8271_s27, %s7306_s8  ;;  %p7311_p8 = scmp.lt.u32.totalorder %s8271_s27, %s8328_s5 }
 0x790   : > { %p7312_p13 = scmp.lt.u32.totalorder %s7310_s26, %s7306_s8  ;;  %p7314_p10 = scmp.lt.u32.totalorder %s7306_s8, %s8271_s27 }
 0x791   : > { %p7308_p0 = pnand %p7307_p9, %p7557_p5 }
 0x792   : > { %p7313_p6 = por %p7312_p13, %p7311_p8 }
 0x793   : > { %p7309_p11 = pneg %p7308_p0 }
 0x794   : > { %p7315_p3 = por %p7314_p10, %p7313_p6 }
 0x796   : > { %p7316_p7 = pnand %p7315_p3, %p7309_p11 }
 0x798   : > { %7319 = shalt.err (!%p7316_p7)
}
 0x799   : > { %s7383_s28 = smov 384   ;;  %s7384_s22 = smov 24  }
 0x79a   : > { %6394 = dma.vmem_to_hbm [thread:$0]  (%p7557_p5), %s8275_s12, 1536, %s8271_s27, %s5144_s10, %s7383_s28, %s7383_s28, %s7384_s22  }
 0x79b PF: > { %s5173_s29 = sand.u32 1, %s7354_s18   ;;  %p8346_p12 = scmp.ne.s32.totalorder %s8333_s25, 0 }
 0x79c   : > { %p8347_p2 = scmp.ge.s32.totalorder %s7366_s21, 2  ;;  %s5174_s6 = scalar_lea.sflag [#allocation4], %s5173_s29 }
 0x79e   : > { %p6411_p1 = pnand %p8347_p2, %p8346_p12 }
 0x7a0   : > { %7349 = dma.done.wait (!%p6411_p1), %s5174_s6, 1536  }
 0x7a1   : > { %7351 = vsyncadd (!%p6411_p1), %s5174_s6, 4294965760  ;;  %p20_p4 = scmp.ge.s32.totalorder %s7543_s16, 4   ;;  %s8348_s18 = smov %s7358_s19 }
 0x7a2   : > { %s8349_s19 = smov %s7362_s20  ;;  %s8350_s20 = smov %s7553_s30 }
 0x7a3   : > { %s8351_s21 = smov %s7543_s16  ;;  %22 = sbr.rel (!%p20_p4) target bundleno = 7 (0x7), region = 102 }
 0x7aa   :  { %5179 = vsyncpa [#allocation3], 1 }
 0x7ab   :  { %5181 = vsyncpa [#allocation3 + $0x1], 1 }
 0x7ac   :  { %5182 = vsyncpa [#allocation6], 1 }
 0x7ad   :  { %5183 = vsyncpa [#allocation9], 1 }
 0x7ae   :  { %5184 = vsyncpa [#allocation4], 1 }
 0x7af   :  { %5186 = vsyncpa [#allocation4 + $0x1], 1 }

</bundles_post_ra>
